<compile_context>
chip_gen: v5e
topology: v5e:2x2
jax: 0.10.0
libtpu: 0.0.40
codegen_flags: <defaults>
</compile_context>

<pallas_src>
import functools

import jax
import jax.numpy as jnp
from jax.experimental import pallas as pl
from jax.experimental.pallas import tpu as pltpu


_VMEM_LIMIT = 32 * 1024 * 1024  # within default scoped VMEM on v5e/v6e/v7x


def _pick_row_tile(m: int, target: int = 512) -> int:
    """Row tile for the linear kernels.

    Large tiles amortize the ~0.35us per-grid-step overhead, but keep at least
    2 grid steps (when the row count allows) so both TensorCores of a v7x chip
    get work even when the whole problem would fit in a single tile.
    """
    tm = min(target, m)
    if pl.cdiv(m, tm) < 2 and m >= 16:
        tm = -(-((m + 1) // 2) // 8) * 8  # ~half the rows, multiple of 8
    return max(tm, 8)


# ---------------------------------------------------------------------------
# Fused linear:  y[M, Nout] = x[M, K] @ w[K, Nout] + b[1, Nout]
# ---------------------------------------------------------------------------
def _linear_kernel(x_ref, w_ref, b_ref, o_ref):
    acc = jnp.dot(x_ref[...], w_ref[...], preferred_element_type=jnp.float32)
    acc = acc + b_ref[...]                      # f32 bias, fused (no extra pass)
    o_ref[...] = acc.astype(o_ref.dtype)


def linear(x, w, b, *, out_dtype=None, target_tm: int = 512):
    """x: [M, K], w: [K, Nout] (in-major, pre-cast), b: [Nout] (f32)."""
    M, K = x.shape
    K2, Nout = w.shape
    assert K == K2
    out_dtype = out_dtype or x.dtype
    b2 = b.reshape(1, Nout).astype(jnp.float32)
    tm = _pick_row_tile(M, target_tm)
    grid = (pl.cdiv(M, tm),)                    # ragged edge masked by Pallas
    return pl.pallas_call(
        _linear_kernel,
        out_shape=jax.ShapeDtypeStruct((M, Nout), out_dtype),
        grid_spec=pltpu.PrefetchScalarGridSpec(
            num_scalar_prefetch=0,
            grid=grid,
            in_specs=[
                pl.BlockSpec((tm, K), lambda i: (i, 0)),
                pl.BlockSpec((K, Nout), lambda i: (0, 0)),   # weight resident
                pl.BlockSpec((1, Nout), lambda i: (0, 0)),
            ],
            out_specs=pl.BlockSpec((tm, Nout), lambda i: (i, 0)),
        ),
        compiler_params=pltpu.CompilerParams(
            dimension_semantics=("parallel",),
            vmem_limit_bytes=_VMEM_LIMIT,
        ),
    )(x, w, b2)


# ---------------------------------------------------------------------------
# Multi-head attention: per-batch block, heads split/merged in-kernel.
# qkv block: [1, N, 3C] (scale already folded into the q columns).
# output   : [1, N, C]  (lane-dense; C is a multiple of 128 in PVT configs).
# ---------------------------------------------------------------------------
def _attn_kernel(qkv_ref, o_ref, *, num_heads, compute_dtype, approx_recip):
    C = o_ref.shape[-1]
    Dh = C // num_heads
    qkv = qkv_ref[0]                       # [N, 3C]
    q = qkv[:, 0 * C:1 * C]                # already scaled by head_dim**-0.5
    k = qkv[:, 1 * C:2 * C]
    v = qkv[:, 2 * C:3 * C]
    for h in range(num_heads):             # static unroll; heads are few
        sl = slice(h * Dh, (h + 1) * Dh)
        qh = q[:, sl]                      # [N, Dh] lane slice
        kh = k[:, sl]
        vh = v[:, sl]
        # scores: contract head dim of both operands (no explicit k^T).
        s = jax.lax.dot_general(qh, kh, (((1,), (1,)), ((), ())),
                                preferred_element_type=jnp.float32)   # [N, N]
        m = jnp.max(s, axis=-1, keepdims=True)
        p = jnp.exp(s - m)                 # f32 softmax math (v5e-safe)
        l = jnp.sum(p, axis=-1, keepdims=True)
        oh = jax.lax.dot_general(p.astype(compute_dtype), vh,
                                 (((1,), (0,)), ((), ())),
                                 preferred_element_type=jnp.float32)  # [N, Dh]
        # Deferred normalization on [N, Dh] (not [N, N]); approx -> EUP slot.
        if approx_recip:
            oh = oh * pl.reciprocal(l, approx=True)
        else:
            oh = oh / l
        # Head merge = write into this head's lane slice of the dense block.
        o_ref[0, :, sl] = oh.astype(o_ref.dtype)


def attention_core(qkv, num_heads, *, compute_dtype, out_dtype, approx_recip):
    B, N, C3 = qkv.shape
    C = C3 // 3
    assert C % num_heads == 0
    return pl.pallas_call(
        functools.partial(_attn_kernel, num_heads=num_heads,
                          compute_dtype=compute_dtype,
                          approx_recip=approx_recip),
        out_shape=jax.ShapeDtypeStruct((B, N, C), out_dtype),
        grid_spec=pltpu.PrefetchScalarGridSpec(
            num_scalar_prefetch=0,
            grid=(B,),
            in_specs=[pl.BlockSpec((1, N, C3), lambda b: (b, 0, 0))],
            out_specs=pl.BlockSpec((1, N, C), lambda b: (b, 0, 0)),
        ),
        compiler_params=pltpu.CompilerParams(
            dimension_semantics=("parallel",),
            vmem_limit_bytes=_VMEM_LIMIT,
        ),
    )(qkv)


# ---------------------------------------------------------------------------
# Parameter packing + full Attention.forward
# ---------------------------------------------------------------------------
def prepare_params(wq, wkv, wproj, bproj, *, num_heads, qk_scale=None,
                   compute_dtype=jnp.bfloat16):
    """Pack torch-convention weights ([out, in]) into fused kernel params.

    - q and kv projections fused into one [C, 3C] weight (columns: q | k | v).
    - softmax scale folded into the q columns (exact: (xWq)*s == x(Wq*s)).
    - matmul operands pre-cast to `compute_dtype` (bf16 default: MXU-native on
      v6e/v7x, halves HBM traffic); accumulation stays f32 in the kernels.
    """
    C = wq.shape[1]
    head_dim = C // num_heads
    scale = qk_scale or head_dim ** -0.5
    wqkv_t = jnp.concatenate([wq.T * scale, wkv.T], axis=1)     # [C, 3C]
    return {
        "wqkv_t": wqkv_t.astype(compute_dtype),
        "bqkv": jnp.zeros((3 * C,), jnp.float32),               # qkv_bias=False
        "wproj_t": wproj.T.astype(compute_dtype),
        "bproj": bproj.astype(jnp.float32),
    }


def attention_forward(x, H, W, params, *, num_heads, sr_ratio=1):
    # TODO(synk): sr_ratio > 1 spatial-reduction branch not implemented.
    assert sr_ratio == 1
    del H, W
    B, N, C = x.shape
    compute_dtype = params["wqkv_t"].dtype
    approx_recip = compute_dtype != jnp.float32

    x2d = x.reshape(B * N, C).astype(compute_dtype)

    # One fused projection for q, k and v: [B*N, 3C], lane-dense output.
    qkv2d = linear(x2d, params["wqkv_t"], params["bqkv"], out_dtype=compute_dtype)
    qkv = qkv2d.reshape(B, N, 3 * C)            # contiguous reshape, no copy

    # Per-batch multi-head attention; no strided head-split/merge HBM glue.
    o = attention_core(qkv, num_heads, compute_dtype=compute_dtype,
                       out_dtype=compute_dtype, approx_recip=approx_recip)

    out2d = linear(o.reshape(B * N, C), params["wproj_t"], params["bproj"],
                   out_dtype=x.dtype)
    return out2d.reshape(B, N, C)


# ---------------------------------------------------------------------------
# Pure-JAX reference (mirrors the torch forward, qkv_bias=False)
# ---------------------------------------------------------------------------
def ref_forward(x, wq, wkv, wp, bp, num_heads, scale):
    pH = jax.lax.Precision.HIGHEST
    B, N, C = x.shape
    Dh = C // num_heads
    q = jnp.einsum("bnc,oc->bno", x, wq, precision=pH)
    q = q.reshape(B, N, num_heads, Dh).transpose(0, 2, 1, 3)
    kv = jnp.einsum("bnc,oc->bno", x, wkv, precision=pH)
    kv = kv.reshape(B, N, 2, num_heads, Dh).transpose(2, 0, 3, 1, 4)
    k, v = kv[0], kv[1]
    attn = jnp.einsum("bhqd,bhkd->bhqk", q, k, precision=pH) * scale
    attn = jax.nn.softmax(attn, axis=-1)
    out = jnp.einsum("bhqk,bhkd->bhqd", attn, v, precision=pH)
    out = out.transpose(0, 2, 1, 3).reshape(B, N, C)
    return jnp.einsum("bnc,oc->bno", out, wp, precision=pH) + bp


if __name__ == "__main__":
    key = jax.random.PRNGKey(0)
    B, Hs, Ws = 2, 8, 8
    dim, num_heads = 128, 8
    N = Hs * Ws
    head_dim = dim // num_heads
    scale = head_dim ** -0.5

    ks = jax.random.split(key, 5)
    x = jax.random.normal(ks[0], (B, N, dim), dtype=jnp.float32)
    # PyTorch nn.Linear convention: weight is [out_features, in_features].
    wq = jax.random.normal(ks[1], (dim, dim), dtype=jnp.float32) * dim ** -0.5
    wkv = jax.random.normal(ks[2], (2 * dim, dim), dtype=jnp.float32) * dim ** -0.5
    wproj = jax.random.normal(ks[3], (dim, dim), dtype=jnp.float32) * dim ** -0.5
    bproj = jax.random.normal(ks[4], (dim,), dtype=jnp.float32) * 0.1

    ref = ref_forward(x, wq, wkv, wproj, bproj, num_heads, scale)

    fwd = jax.jit(
        functools.partial(attention_forward, num_heads=num_heads, sr_ratio=1),
        static_argnums=(1, 2),
    )

    # f32 mode: tight structural/numerical check (exact deferred division).
    p32 = prepare_params(wq, wkv, wproj, bproj, num_heads=num_heads,
                         compute_dtype=jnp.float32)
    out32 = jax.block_until_ready(fwd(x, Hs, Ws, p32))
    assert out32.shape == (B, N, dim) and out32.dtype == x.dtype
    d32 = float(jnp.max(jnp.abs(out32 - ref)))
    assert jnp.allclose(out32, ref, atol=3e-3, rtol=3e-3), \
        f"f32 mismatch, max abs diff {d32}"

    # bf16 mode (default / recommended on v6e & v7x): bf16 MXU operands with
    # f32 accumulation + approx EUP reciprocal -> looser tolerance vs f32 ref.
    pbf = prepare_params(wq, wkv, wproj, bproj, num_heads=num_heads,
                         compute_dtype=jnp.bfloat16)
    outbf = jax.block_until_ready(fwd(x, Hs, Ws, pbf))
    assert outbf.shape == (B, N, dim) and outbf.dtype == x.dtype
    dbf = float(jnp.max(jnp.abs(outbf - ref)))
    assert jnp.allclose(outbf, ref, atol=6e-2, rtol=6e-2), \
        f"bf16 mismatch, max abs diff {dbf}"

    print("KERNEL_OK")
</pallas_src>

<mosaic_0001>
module attributes {stable_mosaic.version = 11 : i64} {
  func.func @_linear_kernel(%arg0: i32, %arg1: memref<64x128xf32, #tpu.memory_space<vmem>>, %arg2: memref<128x128xf32, #tpu.memory_space<vmem>>, %arg3: memref<1x128xf32, #tpu.memory_space<vmem>>, %arg4: memref<64x128xf32, #tpu.memory_space<vmem>>) attributes {dimension_semantics = [#tpu.dimension_semantics<parallel>], iteration_bounds = array<i64: 2>, scalar_prefetch = 0 : i64, scratch_operands = 0 : i64, tpu.core_type = #tpu.core_type<tc>, window_params = [{transform_indices = @transform_0, window_bounds = array<i64: 64, 128>}, {pipeline_mode = #tpu.pipeline_mode<synchronous>, transform_indices = @transform_1, window_bounds = array<i64: 128, 128>}, {pipeline_mode = #tpu.pipeline_mode<synchronous>, transform_indices = @transform_2, window_bounds = array<i64: 1, 128>}, {transform_indices = @transform_3, window_bounds = array<i64: 64, 128>}]} {
    %c0 = arith.constant 0 : index
    %c0_0 = arith.constant 0 : index
    %0 = vector.load %arg1[%c0, %c0_0] : memref<64x128xf32, #tpu.memory_space<vmem>>, vector<64x128xf32>
    %c0_1 = arith.constant 0 : index
    %c0_2 = arith.constant 0 : index
    %1 = vector.load %arg2[%c0_1, %c0_2] : memref<128x128xf32, #tpu.memory_space<vmem>>, vector<128x128xf32>
    %cst = arith.constant dense<0.000000e+00> : vector<64x128xf32>
    %2 = tpu.matmul %0, %1, %cst {dimension_numbers = #tpu.dot_dimension_numbers<[1], [0], [0], [1], [0, 0, 1, 1], [], []>} : vector<64x128xf32>, vector<128x128xf32>, vector<64x128xf32> -> vector<64x128xf32>
    %c0_3 = arith.constant 0 : index
    %c0_4 = arith.constant 0 : index
    %3 = vector.load %arg3[%c0_3, %c0_4] : memref<1x128xf32, #tpu.memory_space<vmem>>, vector<1x128xf32>
    %4 = vector.broadcast %3 : vector<1x128xf32> to vector<64x128xf32>
    %5 = arith.addf %2, %4 : vector<64x128xf32>
    %c0_5 = arith.constant 0 : index
    %c0_6 = arith.constant 0 : index
    %6 = vector.load %arg4[%c0_5, %c0_6] : memref<64x128xf32, #tpu.memory_space<vmem>>, vector<64x128xf32>
    tpu.vector_store %arg4[%c0_5, %c0_6], %5 {strides = array<i32>} : memref<64x128xf32, #tpu.memory_space<vmem>>, vector<64x128xf32>,
    return
  }
  func.func @transform_0(%arg0: i32) -> (i32, i32) {
    %c0_i32 = arith.constant 0 : i32
    %c0_i32_0 = arith.constant 0 : i32
    return %arg0, %c0_i32 : i32, i32
  }
  func.func @transform_1(%arg0: i32) -> (i32, i32) {
    %c0_i32 = arith.constant 0 : i32
    %c0_i32_0 = arith.constant 0 : i32
    %c0_i32_1 = arith.constant 0 : i32
    return %c0_i32, %c0_i32_0 : i32, i32
  }
  func.func @transform_2(%arg0: i32) -> (i32, i32) {
    %c0_i32 = arith.constant 0 : i32
    %c0_i32_0 = arith.constant 0 : i32
    %c0_i32_1 = arith.constant 0 : i32
    return %c0_i32, %c0_i32_0 : i32, i32
  }
  func.func @transform_3(%arg0: i32) -> (i32, i32) {
    %c0_i32 = arith.constant 0 : i32
    %c0_i32_0 = arith.constant 0 : i32
    return %arg0, %c0_i32 : i32, i32
  }
}

module attributes {stable_mosaic.version = 11 : i64} {
  func.func @_linear_kernel(%arg0: i32, %arg1: memref<64x128xf32, #tpu.memory_space<vmem>>, %arg2: memref<128x384xf32, #tpu.memory_space<vmem>>, %arg3: memref<1x384xf32, #tpu.memory_space<vmem>>, %arg4: memref<64x384xf32, #tpu.memory_space<vmem>>) attributes {dimension_semantics = [#tpu.dimension_semantics<parallel>], iteration_bounds = array<i64: 2>, scalar_prefetch = 0 : i64, scratch_operands = 0 : i64, tpu.core_type = #tpu.core_type<tc>, window_params = [{transform_indices = @transform_0, window_bounds = array<i64: 64, 128>}, {pipeline_mode = #tpu.pipeline_mode<synchronous>, transform_indices = @transform_1, window_bounds = array<i64: 128, 384>}, {pipeline_mode = #tpu.pipeline_mode<synchronous>, transform_indices = @transform_2, window_bounds = array<i64: 1, 384>}, {transform_indices = @transform_3, window_bounds = array<i64: 64, 384>}]} {
    %c0 = arith.constant 0 : index
    %c0_0 = arith.constant 0 : index
    %0 = vector.load %arg1[%c0, %c0_0] : memref<64x128xf32, #tpu.memory_space<vmem>>, vector<64x128xf32>
    %c0_1 = arith.constant 0 : index
    %c0_2 = arith.constant 0 : index
    %1 = vector.load %arg2[%c0_1, %c0_2] : memref<128x384xf32, #tpu.memory_space<vmem>>, vector<128x384xf32>
    %cst = arith.constant dense<0.000000e+00> : vector<64x384xf32>
    %2 = tpu.matmul %0, %1, %cst {dimension_numbers = #tpu.dot_dimension_numbers<[1], [0], [0], [1], [0, 0, 1, 1], [], []>} : vector<64x128xf32>, vector<128x384xf32>, vector<64x384xf32> -> vector<64x384xf32>
    %c0_3 = arith.constant 0 : index
    %c0_4 = arith.constant 0 : index
    %3 = vector.load %arg3[%c0_3, %c0_4] : memref<1x384xf32, #tpu.memory_space<vmem>>, vector<1x384xf32>
    %4 = vector.broadcast %3 : vector<1x384xf32> to vector<64x384xf32>
    %5 = arith.addf %2, %4 : vector<64x384xf32>
    %c0_5 = arith.constant 0 : index
    %c0_6 = arith.constant 0 : index
    %6 = vector.load %arg4[%c0_5, %c0_6] : memref<64x384xf32, #tpu.memory_space<vmem>>, vector<64x384xf32>
    tpu.vector_store %arg4[%c0_5, %c0_6], %5 {strides = array<i32>} : memref<64x384xf32, #tpu.memory_space<vmem>>, vector<64x384xf32>,
    return
  }
  func.func @transform_0(%arg0: i32) -> (i32, i32) {
    %c0_i32 = arith.constant 0 : i32
    %c0_i32_0 = arith.constant 0 : i32
    return %arg0, %c0_i32 : i32, i32
  }
  func.func @transform_1(%arg0: i32) -> (i32, i32) {
    %c0_i32 = arith.constant 0 : i32
    %c0_i32_0 = arith.constant 0 : i32
    %c0_i32_1 = arith.constant 0 : i32
    return %c0_i32, %c0_i32_0 : i32, i32
  }
  func.func @transform_2(%arg0: i32) -> (i32, i32) {
    %c0_i32 = arith.constant 0 : i32
    %c0_i32_0 = arith.constant 0 : i32
    %c0_i32_1 = arith.constant 0 : i32
    return %c0_i32, %c0_i32_0 : i32, i32
  }
  func.func @transform_3(%arg0: i32) -> (i32, i32) {
    %c0_i32 = arith.constant 0 : i32
    %c0_i32_0 = arith.constant 0 : i32
    return %arg0, %c0_i32 : i32, i32
  }
}

module attributes {stable_mosaic.version = 11 : i64} {
  func.func @_attn_kernel(%arg0: i32, %arg1: memref<1x64x384xf32, #tpu.memory_space<vmem>>, %arg2: memref<1x64x128xf32, #tpu.memory_space<vmem>>) attributes {dimension_semantics = [#tpu.dimension_semantics<parallel>], iteration_bounds = array<i64: 2>, scalar_prefetch = 0 : i64, scratch_operands = 0 : i64, tpu.core_type = #tpu.core_type<tc>, window_params = [{transform_indices = @transform_0, window_bounds = array<i64: 1, 64, 384>}, {transform_indices = @transform_1, window_bounds = array<i64: 1, 64, 128>}]} {
    %c0 = arith.constant 0 : index
    %c0_0 = arith.constant 0 : index
    %c0_1 = arith.constant 0 : index
    %0 = vector.load %arg1[%c0, %c0_0, %c0_1] : memref<1x64x384xf32, #tpu.memory_space<vmem>>, vector<1x64x384xf32>
    %1 = vector.shape_cast %0 : vector<1x64x384xf32> to vector<64x384xf32>
    %2 = vector.extract_strided_slice %1 {offsets = [0, 0], sizes = [64, 128], strides = [1, 1]} : vector<64x384xf32> to vector<64x128xf32>
    %3 = vector.extract_strided_slice %1 {offsets = [0, 128], sizes = [64, 128], strides = [1, 1]} : vector<64x384xf32> to vector<64x128xf32>
    %4 = vector.extract_strided_slice %1 {offsets = [0, 256], sizes = [64, 128], strides = [1, 1]} : vector<64x384xf32> to vector<64x128xf32>
    %5 = vector.extract_strided_slice %2 {offsets = [0, 0], sizes = [64, 16], strides = [1, 1]} : vector<64x128xf32> to vector<64x16xf32>
    %6 = vector.extract_strided_slice %3 {offsets = [0, 0], sizes = [64, 16], strides = [1, 1]} : vector<64x128xf32> to vector<64x16xf32>
    %7 = vector.extract_strided_slice %4 {offsets = [0, 0], sizes = [64, 16], strides = [1, 1]} : vector<64x128xf32> to vector<64x16xf32>
    %cst = arith.constant dense<0.000000e+00> : vector<64x64xf32>
    %8 = tpu.matmul %5, %6, %cst {dimension_numbers = #tpu.dot_dimension_numbers<[1], [1], [0], [0], [0, 0, 1, 0], [], []>} : vector<64x16xf32>, vector<64x16xf32>, vector<64x64xf32> -> vector<64x64xf32>
    %cst_2 = arith.constant dense<0xFF800000> : vector<64xf32>
    %9 = vector.multi_reduction <maximumf>, %8, %cst_2 [1] : vector<64x64xf32> to vector<64xf32>
    %10 = vector.shape_cast %9 : vector<64xf32> to vector<64x1xf32>
    %11 = vector.broadcast %10 : vector<64x1xf32> to vector<64x64xf32>
    %12 = arith.subf %8, %11 : vector<64x64xf32>
    %13 = math.exp %12 : vector<64x64xf32>
    %cst_3 = arith.constant dense<0.000000e+00> : vector<64xf32>
    %14 = vector.multi_reduction <add>, %13, %cst_3 [1] : vector<64x64xf32> to vector<64xf32>
    %15 = vector.shape_cast %14 : vector<64xf32> to vector<64x1xf32>
    %cst_4 = arith.constant dense<0.000000e+00> : vector<64x16xf32>
    %16 = tpu.matmul %13, %7, %cst_4 {dimension_numbers = #tpu.dot_dimension_numbers<[1], [0], [0], [1], [0, 0, 1, 1], [], []>} : vector<64x64xf32>, vector<64x16xf32>, vector<64x16xf32> -> vector<64x16xf32>
    %17 = vector.broadcast %15 : vector<64x1xf32> to vector<64x16xf32>
    %18 = arith.divf %16, %17 : vector<64x16xf32>
    %c0_5 = arith.constant 0 : index
    %c0_6 = arith.constant 0 : index
    %c0_7 = arith.constant 0 : index
    %19 = vector.load %arg2[%c0_5, %c0_6, %c0_7] : memref<1x64x128xf32, #tpu.memory_space<vmem>>, vector<1x64x16xf32>
    %20 = vector.shape_cast %19 : vector<1x64x16xf32> to vector<64x16xf32>
    %21 = vector.shape_cast %18 : vector<64x16xf32> to vector<1x64x16xf32>
    tpu.vector_store %arg2[%c0_5, %c0_6, %c0_7], %21 {strides = array<i32>} : memref<1x64x128xf32, #tpu.memory_space<vmem>>, vector<1x64x16xf32>,
    %22 = vector.extract_strided_slice %2 {offsets = [0, 16], sizes = [64, 16], strides = [1, 1]} : vector<64x128xf32> to vector<64x16xf32>
    %23 = vector.extract_strided_slice %3 {offsets = [0, 16], sizes = [64, 16], strides = [1, 1]} : vector<64x128xf32> to vector<64x16xf32>
    %24 = vector.extract_strided_slice %4 {offsets = [0, 16], sizes = [64, 16], strides = [1, 1]} : vector<64x128xf32> to vector<64x16xf32>
    %cst_8 = arith.constant dense<0.000000e+00> : vector<64x64xf32>
    %25 = tpu.matmul %22, %23, %cst_8 {dimension_numbers = #tpu.dot_dimension_numbers<[1], [1], [0], [0], [0, 0, 1, 0], [], []>} : vector<64x16xf32>, vector<64x16xf32>, vector<64x64xf32> -> vector<64x64xf32>
    %cst_9 = arith.constant dense<0xFF800000> : vector<64xf32>
    %26 = vector.multi_reduction <maximumf>, %25, %cst_9 [1] : vector<64x64xf32> to vector<64xf32>
    %27 = vector.shape_cast %26 : vector<64xf32> to vector<64x1xf32>
    %28 = vector.broadcast %27 : vector<64x1xf32> to vector<64x64xf32>
    %29 = arith.subf %25, %28 : vector<64x64xf32>
    %30 = math.exp %29 : vector<64x64xf32>
    %cst_10 = arith.constant dense<0.000000e+00> : vector<64xf32>
    %31 = vector.multi_reduction <add>, %30, %cst_10 [1] : vector<64x64xf32> to vector<64xf32>
    %32 = vector.shape_cast %31 : vector<64xf32> to vector<64x1xf32>
    %cst_11 = arith.constant dense<0.000000e+00> : vector<64x16xf32>
    %33 = tpu.matmul %30, %24, %cst_11 {dimension_numbers = #tpu.dot_dimension_numbers<[1], [0], [0], [1], [0, 0, 1, 1], [], []>} : vector<64x64xf32>, vector<64x16xf32>, vector<64x16xf32> -> vector<64x16xf32>
    %34 = vector.broadcast %32 : vector<64x1xf32> to vector<64x16xf32>
    %35 = arith.divf %33, %34 : vector<64x16xf32>
    %c0_12 = arith.constant 0 : index
    %c0_13 = arith.constant 0 : index
    %c16 = arith.constant 16 : index
    %36 = vector.load %arg2[%c0_12, %c0_13, %c16] : memref<1x64x128xf32, #tpu.memory_space<vmem>>, vector<1x64x16xf32>
    %37 = vector.shape_cast %36 : vector<1x64x16xf32> to vector<64x16xf32>
    %38 = vector.shape_cast %35 : vector<64x16xf32> to vector<1x64x16xf32>
    tpu.vector_store %arg2[%c0_12, %c0_13, %c16], %38 {strides = array<i32>} : memref<1x64x128xf32, #tpu.memory_space<vmem>>, vector<1x64x16xf32>,
    %39 = vector.extract_strided_slice %2 {offsets = [0, 32], sizes = [64, 16], strides = [1, 1]} : vector<64x128xf32> to vector<64x16xf32>
    %40 = vector.extract_strided_slice %3 {offsets = [0, 32], sizes = [64, 16], strides = [1, 1]} : vector<64x128xf32> to vector<64x16xf32>
    %41 = vector.extract_strided_slice %4 {offsets = [0, 32], sizes = [64, 16], strides = [1, 1]} : vector<64x128xf32> to vector<64x16xf32>
    %cst_14 = arith.constant dense<0.000000e+00> : vector<64x64xf32>
    %42 = tpu.matmul %39, %40, %cst_14 {dimension_numbers = #tpu.dot_dimension_numbers<[1], [1], [0], [0], [0, 0, 1, 0], [], []>} : vector<64x16xf32>, vector<64x16xf32>, vector<64x64xf32> -> vector<64x64xf32>
    %cst_15 = arith.constant dense<0xFF800000> : vector<64xf32>
    %43 = vector.multi_reduction <maximumf>, %42, %cst_15 [1] : vector<64x64xf32> to vector<64xf32>
    %44 = vector.shape_cast %43 : vector<64xf32> to vector<64x1xf32>
    %45 = vector.broadcast %44 : vector<64x1xf32> to vector<64x64xf32>
    %46 = arith.subf %42, %45 : vector<64x64xf32>
    %47 = math.exp %46 : vector<64x64xf32>
    %cst_16 = arith.constant dense<0.000000e+00> : vector<64xf32>
    %48 = vector.multi_reduction <add>, %47, %cst_16 [1] : vector<64x64xf32> to vector<64xf32>
    %49 = vector.shape_cast %48 : vector<64xf32> to vector<64x1xf32>
    %cst_17 = arith.constant dense<0.000000e+00> : vector<64x16xf32>
    %50 = tpu.matmul %47, %41, %cst_17 {dimension_numbers = #tpu.dot_dimension_numbers<[1], [0], [0], [1], [0, 0, 1, 1], [], []>} : vector<64x64xf32>, vector<64x16xf32>, vector<64x16xf32> -> vector<64x16xf32>
    %51 = vector.broadcast %49 : vector<64x1xf32> to vector<64x16xf32>
    %52 = arith.divf %50, %51 : vector<64x16xf32>
    %c0_18 = arith.constant 0 : index
    %c0_19 = arith.constant 0 : index
    %c32 = arith.constant 32 : index
    %53 = vector.load %arg2[%c0_18, %c0_19, %c32] : memref<1x64x128xf32, #tpu.memory_space<vmem>>, vector<1x64x16xf32>
    %54 = vector.shape_cast %53 : vector<1x64x16xf32> to vector<64x16xf32>
    %55 = vector.shape_cast %52 : vector<64x16xf32> to vector<1x64x16xf32>
    tpu.vector_store %arg2[%c0_18, %c0_19, %c32], %55 {strides = array<i32>} : memref<1x64x128xf32, #tpu.memory_space<vmem>>, vector<1x64x16xf32>,
    %56 = vector.extract_strided_slice %2 {offsets = [0, 48], sizes = [64, 16], strides = [1, 1]} : vector<64x128xf32> to vector<64x16xf32>
    %57 = vector.extract_strided_slice %3 {offsets = [0, 48], sizes = [64, 16], strides = [1, 1]} : vector<64x128xf32> to vector<64x16xf32>
    %58 = vector.extract_strided_slice %4 {offsets = [0, 48], sizes = [64, 16], strides = [1, 1]} : vector<64x128xf32> to vector<64x16xf32>
    %cst_20 = arith.constant dense<0.000000e+00> : vector<64x64xf32>
    %59 = tpu.matmul %56, %57, %cst_20 {dimension_numbers = #tpu.dot_dimension_numbers<[1], [1], [0], [0], [0, 0, 1, 0], [], []>} : vector<64x16xf32>, vector<64x16xf32>, vector<64x64xf32> -> vector<64x64xf32>
    %cst_21 = arith.constant dense<0xFF800000> : vector<64xf32>
    %60 = vector.multi_reduction <maximumf>, %59, %cst_21 [1] : vector<64x64xf32> to vector<64xf32>
    %61 = vector.shape_cast %60 : vector<64xf32> to vector<64x1xf32>
    %62 = vector.broadcast %61 : vector<64x1xf32> to vector<64x64xf32>
    %63 = arith.subf %59, %62 : vector<64x64xf32>
    %64 = math.exp %63 : vector<64x64xf32>
    %cst_22 = arith.constant dense<0.000000e+00> : vector<64xf32>
    %65 = vector.multi_reduction <add>, %64, %cst_22 [1] : vector<64x64xf32> to vector<64xf32>
    %66 = vector.shape_cast %65 : vector<64xf32> to vector<64x1xf32>
    %cst_23 = arith.constant dense<0.000000e+00> : vector<64x16xf32>
    %67 = tpu.matmul %64, %58, %cst_23 {dimension_numbers = #tpu.dot_dimension_numbers<[1], [0], [0], [1], [0, 0, 1, 1], [], []>} : vector<64x64xf32>, vector<64x16xf32>, vector<64x16xf32> -> vector<64x16xf32>
    %68 = vector.broadcast %66 : vector<64x1xf32> to vector<64x16xf32>
    %69 = arith.divf %67, %68 : vector<64x16xf32>
    %c0_24 = arith.constant 0 : index
    %c0_25 = arith.constant 0 : index
    %c48 = arith.constant 48 : index
    %70 = vector.load %arg2[%c0_24, %c0_25, %c48] : memref<1x64x128xf32, #tpu.memory_space<vmem>>, vector<1x64x16xf32>
    %71 = vector.shape_cast %70 : vector<1x64x16xf32> to vector<64x16xf32>
    %72 = vector.shape_cast %69 : vector<64x16xf32> to vector<1x64x16xf32>
    tpu.vector_store %arg2[%c0_24, %c0_25, %c48], %72 {strides = array<i32>} : memref<1x64x128xf32, #tpu.memory_space<vmem>>, vector<1x64x16xf32>,
    %73 = vector.extract_strided_slice %2 {offsets = [0, 64], sizes = [64, 16], strides = [1, 1]} : vector<64x128xf32> to vector<64x16xf32>
    %74 = vector.extract_strided_slice %3 {offsets = [0, 64], sizes = [64, 16], strides = [1, 1]} : vector<64x128xf32> to vector<64x16xf32>
    %75 = vector.extract_strided_slice %4 {offsets = [0, 64], sizes = [64, 16], strides = [1, 1]} : vector<64x128xf32> to vector<64x16xf32>
    %cst_26 = arith.constant dense<0.000000e+00> : vector<64x64xf32>
    %76 = tpu.matmul %73, %74, %cst_26 {dimension_numbers = #tpu.dot_dimension_numbers<[1], [1], [0], [0], [0, 0, 1, 0], [], []>} : vector<64x16xf32>, vector<64x16xf32>, vector<64x64xf32> -> vector<64x64xf32>
    %cst_27 = arith.constant dense<0xFF800000> : vector<64xf32>
    %77 = vector.multi_reduction <maximumf>, %76, %cst_27 [1] : vector<64x64xf32> to vector<64xf32>
    %78 = vector.shape_cast %77 : vector<64xf32> to vector<64x1xf32>
    %79 = vector.broadcast %78 : vector<64x1xf32> to vector<64x64xf32>
    %80 = arith.subf %76, %79 : vector<64x64xf32>
    %81 = math.exp %80 : vector<64x64xf32>
    %cst_28 = arith.constant dense<0.000000e+00> : vector<64xf32>
    %82 = vector.multi_reduction <add>, %81, %cst_28 [1] : vector<64x64xf32> to vector<64xf32>
    %83 = vector.shape_cast %82 : vector<64xf32> to vector<64x1xf32>
    %cst_29 = arith.constant dense<0.000000e+00> : vector<64x16xf32>
    %84 = tpu.matmul %81, %75, %cst_29 {dimension_numbers = #tpu.dot_dimension_numbers<[1], [0], [0], [1], [0, 0, 1, 1], [], []>} : vector<64x64xf32>, vector<64x16xf32>, vector<64x16xf32> -> vector<64x16xf32>
    %85 = vector.broadcast %83 : vector<64x1xf32> to vector<64x16xf32>
    %86 = arith.divf %84, %85 : vector<64x16xf32>
    %c0_30 = arith.constant 0 : index
    %c0_31 = arith.constant 0 : index
    %c64 = arith.constant 64 : index
    %87 = vector.load %arg2[%c0_30, %c0_31, %c64] : memref<1x64x128xf32, #tpu.memory_space<vmem>>, vector<1x64x16xf32>
    %88 = vector.shape_cast %87 : vector<1x64x16xf32> to vector<64x16xf32>
    %89 = vector.shape_cast %86 : vector<64x16xf32> to vector<1x64x16xf32>
    tpu.vector_store %arg2[%c0_30, %c0_31, %c64], %89 {strides = array<i32>} : memref<1x64x128xf32, #tpu.memory_space<vmem>>, vector<1x64x16xf32>,
    %90 = vector.extract_strided_slice %2 {offsets = [0, 80], sizes = [64, 16], strides = [1, 1]} : vector<64x128xf32> to vector<64x16xf32>
    %91 = vector.extract_strided_slice %3 {offsets = [0, 80], sizes = [64, 16], strides = [1, 1]} : vector<64x128xf32> to vector<64x16xf32>
    %92 = vector.extract_strided_slice %4 {offsets = [0, 80], sizes = [64, 16], strides = [1, 1]} : vector<64x128xf32> to vector<64x16xf32>
    %cst_32 = arith.constant dense<0.000000e+00> : vector<64x64xf32>
    %93 = tpu.matmul %90, %91, %cst_32 {dimension_numbers = #tpu.dot_dimension_numbers<[1], [1], [0], [0], [0, 0, 1, 0], [], []>} : vector<64x16xf32>, vector<64x16xf32>, vector<64x64xf32> -> vector<64x64xf32>
    %cst_33 = arith.constant dense<0xFF800000> : vector<64xf32>
    %94 = vector.multi_reduction <maximumf>, %93, %cst_33 [1] : vector<64x64xf32> to vector<64xf32>
    %95 = vector.shape_cast %94 : vector<64xf32> to vector<64x1xf32>
    %96 = vector.broadcast %95 : vector<64x1xf32> to vector<64x64xf32>
    %97 = arith.subf %93, %96 : vector<64x64xf32>
    %98 = math.exp %97 : vector<64x64xf32>
    %cst_34 = arith.constant dense<0.000000e+00> : vector<64xf32>
    %99 = vector.multi_reduction <add>, %98, %cst_34 [1] : vector<64x64xf32> to vector<64xf32>
    %100 = vector.shape_cast %99 : vector<64xf32> to vector<64x1xf32>
    %cst_35 = arith.constant dense<0.000000e+00> : vector<64x16xf32>
    %101 = tpu.matmul %98, %92, %cst_35 {dimension_numbers = #tpu.dot_dimension_numbers<[1], [0], [0], [1], [0, 0, 1, 1], [], []>} : vector<64x64xf32>, vector<64x16xf32>, vector<64x16xf32> -> vector<64x16xf32>
    %102 = vector.broadcast %100 : vector<64x1xf32> to vector<64x16xf32>
    %103 = arith.divf %101, %102 : vector<64x16xf32>
    %c0_36 = arith.constant 0 : index
    %c0_37 = arith.constant 0 : index
    %c80 = arith.constant 80 : index
    %104 = vector.load %arg2[%c0_36, %c0_37, %c80] : memref<1x64x128xf32, #tpu.memory_space<vmem>>, vector<1x64x16xf32>
    %105 = vector.shape_cast %104 : vector<1x64x16xf32> to vector<64x16xf32>
    %106 = vector.shape_cast %103 : vector<64x16xf32> to vector<1x64x16xf32>
    tpu.vector_store %arg2[%c0_36, %c0_37, %c80], %106 {strides = array<i32>} : memref<1x64x128xf32, #tpu.memory_space<vmem>>, vector<1x64x16xf32>,
    %107 = vector.extract_strided_slice %2 {offsets = [0, 96], sizes = [64, 16], strides = [1, 1]} : vector<64x128xf32> to vector<64x16xf32>
    %108 = vector.extract_strided_slice %3 {offsets = [0, 96], sizes = [64, 16], strides = [1, 1]} : vector<64x128xf32> to vector<64x16xf32>
    %109 = vector.extract_strided_slice %4 {offsets = [0, 96], sizes = [64, 16], strides = [1, 1]} : vector<64x128xf32> to vector<64x16xf32>
    %cst_38 = arith.constant dense<0.000000e+00> : vector<64x64xf32>
    %110 = tpu.matmul %107, %108, %cst_38 {dimension_numbers = #tpu.dot_dimension_numbers<[1], [1], [0], [0], [0, 0, 1, 0], [], []>} : vector<64x16xf32>, vector<64x16xf32>, vector<64x64xf32> -> vector<64x64xf32>
    %cst_39 = arith.constant dense<0xFF800000> : vector<64xf32>
    %111 = vector.multi_reduction <maximumf>, %110, %cst_39 [1] : vector<64x64xf32> to vector<64xf32>
    %112 = vector.shape_cast %111 : vector<64xf32> to vector<64x1xf32>
    %113 = vector.broadcast %112 : vector<64x1xf32> to vector<64x64xf32>
    %114 = arith.subf %110, %113 : vector<64x64xf32>
    %115 = math.exp %114 : vector<64x64xf32>
    %cst_40 = arith.constant dense<0.000000e+00> : vector<64xf32>
    %116 = vector.multi_reduction <add>, %115, %cst_40 [1] : vector<64x64xf32> to vector<64xf32>
    %117 = vector.shape_cast %116 : vector<64xf32> to vector<64x1xf32>
    %cst_41 = arith.constant dense<0.000000e+00> : vector<64x16xf32>
    %118 = tpu.matmul %115, %109, %cst_41 {dimension_numbers = #tpu.dot_dimension_numbers<[1], [0], [0], [1], [0, 0, 1, 1], [], []>} : vector<64x64xf32>, vector<64x16xf32>, vector<64x16xf32> -> vector<64x16xf32>
    %119 = vector.broadcast %117 : vector<64x1xf32> to vector<64x16xf32>
    %120 = arith.divf %118, %119 : vector<64x16xf32>
    %c0_42 = arith.constant 0 : index
    %c0_43 = arith.constant 0 : index
    %c96 = arith.constant 96 : index
    %121 = vector.load %arg2[%c0_42, %c0_43, %c96] : memref<1x64x128xf32, #tpu.memory_space<vmem>>, vector<1x64x16xf32>
    %122 = vector.shape_cast %121 : vector<1x64x16xf32> to vector<64x16xf32>
    %123 = vector.shape_cast %120 : vector<64x16xf32> to vector<1x64x16xf32>
    tpu.vector_store %arg2[%c0_42, %c0_43, %c96], %123 {strides = array<i32>} : memref<1x64x128xf32, #tpu.memory_space<vmem>>, vector<1x64x16xf32>,
    %124 = vector.extract_strided_slice %2 {offsets = [0, 112], sizes = [64, 16], strides = [1, 1]} : vector<64x128xf32> to vector<64x16xf32>
    %125 = vector.extract_strided_slice %3 {offsets = [0, 112], sizes = [64, 16], strides = [1, 1]} : vector<64x128xf32> to vector<64x16xf32>
    %126 = vector.extract_strided_slice %4 {offsets = [0, 112], sizes = [64, 16], strides = [1, 1]} : vector<64x128xf32> to vector<64x16xf32>
    %cst_44 = arith.constant dense<0.000000e+00> : vector<64x64xf32>
    %127 = tpu.matmul %124, %125, %cst_44 {dimension_numbers = #tpu.dot_dimension_numbers<[1], [1], [0], [0], [0, 0, 1, 0], [], []>} : vector<64x16xf32>, vector<64x16xf32>, vector<64x64xf32> -> vector<64x64xf32>
    %cst_45 = arith.constant dense<0xFF800000> : vector<64xf32>
    %128 = vector.multi_reduction <maximumf>, %127, %cst_45 [1] : vector<64x64xf32> to vector<64xf32>
    %129 = vector.shape_cast %128 : vector<64xf32> to vector<64x1xf32>
    %130 = vector.broadcast %129 : vector<64x1xf32> to vector<64x64xf32>
    %131 = arith.subf %127, %130 : vector<64x64xf32>
    %132 = math.exp %131 : vector<64x64xf32>
    %cst_46 = arith.constant dense<0.000000e+00> : vector<64xf32>
    %133 = vector.multi_reduction <add>, %132, %cst_46 [1] : vector<64x64xf32> to vector<64xf32>
    %134 = vector.shape_cast %133 : vector<64xf32> to vector<64x1xf32>
    %cst_47 = arith.constant dense<0.000000e+00> : vector<64x16xf32>
    %135 = tpu.matmul %132, %126, %cst_47 {dimension_numbers = #tpu.dot_dimension_numbers<[1], [0], [0], [1], [0, 0, 1, 1], [], []>} : vector<64x64xf32>, vector<64x16xf32>, vector<64x16xf32> -> vector<64x16xf32>
    %136 = vector.broadcast %134 : vector<64x1xf32> to vector<64x16xf32>
    %137 = arith.divf %135, %136 : vector<64x16xf32>
    %c0_48 = arith.constant 0 : index
    %c0_49 = arith.constant 0 : index
    %c112 = arith.constant 112 : index
    %138 = vector.load %arg2[%c0_48, %c0_49, %c112] : memref<1x64x128xf32, #tpu.memory_space<vmem>>, vector<1x64x16xf32>
    %139 = vector.shape_cast %138 : vector<1x64x16xf32> to vector<64x16xf32>
    %140 = vector.shape_cast %137 : vector<64x16xf32> to vector<1x64x16xf32>
    tpu.vector_store %arg2[%c0_48, %c0_49, %c112], %140 {strides = array<i32>} : memref<1x64x128xf32, #tpu.memory_space<vmem>>, vector<1x64x16xf32>,
    return
  }
  func.func @transform_0(%arg0: i32) -> (i32, i32, i32) {
    %c0_i32 = arith.constant 0 : i32
    %c0_i32_0 = arith.constant 0 : i32
    %c0_i32_1 = arith.constant 0 : i32
    return %arg0, %c0_i32, %c0_i32_0 : i32, i32, i32
  }
  func.func @transform_1(%arg0: i32) -> (i32, i32, i32) {
    %c0_i32 = arith.constant 0 : i32
    %c0_i32_0 = arith.constant 0 : i32
    %c0_i32_1 = arith.constant 0 : i32
    return %arg0, %c0_i32, %c0_i32_0 : i32, i32, i32
  }
}

</mosaic_0001>

<bundles_post_ra>
// kernel: attention_forward.3
= control target key start
LH: loop header
LB: loop body
LE: loop exit
PB: predicated region body
PF: predicated region fallthrough
CT: control target
= control target key end

     0   :  { %8 = vsyncpa [#allocation3], 0  ;;  %s949_s0 = inlined_call_operand.hbm [shape: f32[128,128], index: 0, kind: input, shape index: {}]   ;;  %s950_s1 = inlined_call_operand.hbm [shape: f32[128,384], index: 1, kind: input, shape index: {}]   ;;  %s951_s2 = inlined_call_operand.vmem [shape: f32[1,384], index: 2, kind: input, shape index: {}]   ;;  %s952_s3 = inlined_call_operand.vmem [shape: f32[128,384], index: 3, kind: output, shape index: {}]  }
   0x1   :  { %10 = vsyncpa [#allocation3 + $0x1], 0 }
   0x2   :  { %11 = vsyncpa [#allocation5], 0  ;;  %s732_s12 = smov 0   ;;  %s734_s13 = smov 0  }
   0x3   :  { %s736_s14 = smov 0   ;;  %s738_s15 = smov 0  }
   0x4 LB: > { %s504_s16 = sadd.s32 4294967295, %s705_s15   ;;  %p37_p0 = scmp.ne.s32.totalorder %s697_s13, %s693_s12  ;;  %s705_s15 = sphi %s738_s15, %s960_s15   ;;  %s701_s14 = sphi %s736_s14, %s959_s14   ;;  %s697_s13 = sphi %s734_s13, %s958_s13   ;;  %s693_s12 = sphi %s732_s12, %s957_s12  }
   0x5   : > { %p754_p1 = scmp.eq.s32.totalorder %s504_s16, 0  ;;  %p506_p2 = scmp.ge.s32.totalorder %s705_s15, 1 }
   0x6   : > { %p116_p3 = scmp.lt.s32.totalorder %s705_s15, 3  ;;  %s127_s21 = sshll.u32 %s950_s1, 4  ;;  %s128_s21 = int_to_ptr.hbm [resolvable:$true] %s127_s21 }
   0x7   : > { %p762_p4 = por %p754_p1, %p37_p0  ;;  %s707_s23 = smov [#allocation4]  }
   0x8   : > { %p769_p5 = pnand %p506_p2, %p116_p3  ;;  %s129_s24 = sshll.u32 %s707_s23, 4  ;;  %s130_s24 = int_to_ptr.vmem [resolvable:$true] %s129_s24 }
   0x9   : > { %s778_s25 = sadd.s32 1, %s705_s15   ;;  %s708_s26 = smov 384  }
   0xa   : > { %p559_p6 = pneg %p769_p5  ;;  %s709_s27 = smov 24  }
   0xb   : > { %s21_s28 = ssub.s32 %s705_s15, %s778_s25  ;;  %s24_s29 = sadd.s32 1, %s701_s14 }
   0xc   : > { %p560_p7 = pnand %p559_p6, %p754_p1  ;;  %p22_p8 = scmp.eq.s32.totalorder %s21_s28, 0 }
   0xd   : > { %p31_p9 = scmp.ne.s32.totalorder %s701_s14, %s697_s13  ;;  %p32_p10 = scmp.eq.s32.totalorder %s705_s15, 0 }
   0xe   : > { %562 = dma.hbm_to_vmem [thread:$0]  (!%p560_p7), %s128_s21, 6144, %s130_s24, [#allocation5], %s708_s26, %s708_s26, %s709_s27  }
   0xf   : > { %p568_p11 = scmp.lt.s32.totalorder %s705_s15, 2  ;;  %p33_p12 = por %p32_p10, %p31_p9 }
  0x10   : > { %s788_s30 = scalar_select %p22_p8, %s701_s14, %s24_s29  }
  0x11   : > { %s146_s4 = sand.u32 1, %s701_s14   ;;  %s519_s6 = sshll.u32 %s705_s15, 6 }
  0x12   : > { %s509_s5 = sshll.u32 %s146_s4, 6  ;;  %s155_s9 = scalar_lea.hbm %s949_s0, %s519_s6 }
  0x13   : > { %s150_s10 = scalar_lea.vmem [#allocation2], %s509_s5  ;;  %s156_s12 = sshll.u32 %s155_s9, 4  ;;  %s157_s12 = int_to_ptr.hbm [resolvable:$true] %s156_s12 }
  0x14   : > { %s158_s11 = sshll.u32 %s150_s10, 4  ;;  %p795_p13 = pnand %p568_p11, %p33_p12  ;;  %s159_s11 = int_to_ptr.vmem [resolvable:$true] %s158_s11 }
  0x15   : > { %s147_s20 = scalar_lea.sflag [#allocation3], %s146_s4  ;;  %s637_s21 = sshra.s32 %s157_s12, 4  ;;  %s638_s21 = int_to_ptr.hbm [resolvable:$true] %s637_s21 }
  0x16   : > { %s639_s23 = scalar_lea.hbm %s638_s21, 64  ;;  %p641_p2 = pneg %p795_p13 }
  0x17   : > { %p640_p0 = scmp.ne.s32.totalorder %s638_s21, %s639_s23  ;;  %s644_s27 = scalar_lea.hbm %s949_s0, 128 }
  0x18   : > { %p645_p7 = scmp.lt.s32.totalorder %s638_s21, %s949_s0  ;;  %p646_p8 = scmp.lt.s32.totalorder %s644_s27, %s639_s23 }
  0x19   : > { %p642_p3 = pnand %p641_p2, %p640_p0 }
  0x1a   : > { %p647_p9 = por %p646_p8, %p645_p7 }
  0x1b   : > { %p643_p6 = pneg %p642_p3 }
  0x1d   : > { %p648_p10 = pnand %p647_p9, %p643_p6 }
  0x1f   : > { %651 = shalt.err (!%p648_p10)
}
  0x20   : > { %s710_s4 = smov 128   ;;  %s711_s5 = smov 8  }
  0x21   : > { %566 = dma.hbm_to_vmem [thread:$0]  (!%p795_p13), %s157_s12, 1024, %s159_s11, %s147_s20, %s710_s4, %s710_s4, %s711_s5  }
  0x22   : > { %170 = sbr.rel (%p769_p5) target bundleno = 265 (0x109), region = 32  ;;  %s172_s6 = sand.u32 (!%p769_p5), 1, %s697_s13  }
  0x23   : > { %s513_s7 = sshll.u32 (!%p769_p5), %s172_s6, 6  ;;  %s173_s8 = scalar_lea.sflag (!%p769_p5), [#allocation3], %s172_s6 }
  0x24   : > { %s812_s9 = scalar_lea.vmem (!%p769_p5), [#allocation2], %s513_s7 }
  0x27   : > { %684 = dma.done.wait (%p762_p4), %s173_s8, 1024  }
  0x28   : > { %686 = vsyncadd (%p762_p4), %s173_s8, 4294966272 }
  0x29   : > { %688 = dma.done.wait (%p754_p1), [#allocation5], 6144  }
  0x2a   : > { %690 = vsyncadd (%p754_p1), [#allocation5], 4294961152  ;;  %v269_v0 = vld [vmem:[#allocation4 + $0x178] sm:$0xff]  ;;  %v266_v1 = vld [vmem:[#allocation4 + $0x160] sm:$0xff]  ;;  %s515_s17 = sshll.u32 %s504_s16, 3 }
  0x2b   : > { %360 = vmatpush.msra.mxu2 %v269_v0  ;;  %v263_v2 = vld [vmem:[#allocation4 + $0x148] sm:$0xff]  ;;  %v822_v3 = vld [vmem:[#allocation4 + $0x170] sm:$0xff]  ;;  %v825_v4 = vld [vmem:[#allocation4 + $0x158] sm:$0xff]  ;;  %p208_p1 = scmp.lt.s32.totalorder %s515_s17, 15 }
  0x2c   : > { %319 = vmatpush.msra.mxu1 %v822_v3  ;;  %v260_v5 = vld [vmem:[#allocation4 + $0x130] sm:$0xff]  ;;  %v827_v6 = vld [vmem:[#allocation4 + $0x140] sm:$0xff]  ;;  %v267_v7 = vld [vmem:[#allocation4 + $0x168] sm:$0xff] }
  0x2d   : > { %361 = vmatpush.msra.mxu2 %v266_v1  ;;  %v257_v8 = vld [vmem:[#allocation4 + $0x118] sm:$0xff]  ;;  %v830_v9 = vld [vmem:[#allocation4 + $0x128] sm:$0xff]  ;;  %278 = vmatpush.msra.mxu0 %v267_v7  ;;  %v264_v10 = vld [vmem:[#allocation4 + $0x150] sm:$0xff]  ;;  %s962_s17 = smov (!%p208_p1, %s515_s17), 15 }
  0x2e   : > { %320 = vmatpush.msra.mxu1 %v825_v4  ;;  %520 = vmatpush.msra.mxu3 %v267_v7  ;;  %v261_v11 = vld [vmem:[#allocation4 + $0x138] sm:$0xff]  ;;  %v254_v12 = vld [vmem:[#allocation4 + $0x100] sm:$0xff]  ;;  %v833_v13 = vld [vmem:[#allocation4 + $0x110] sm:$0xff]  ;;  %s552_s10 = smul.u32 24, %s962_s17 }
  0x2f   : > { %362 = vmatpush.msra.mxu2 %v263_v2  ;;  %279 = vmatpush.msra.mxu0 %v264_v10  ;;  %v258_v14 = vld [vmem:[#allocation4 + $0x120] sm:$0xff]  ;;  %v251_v15 = vld [vmem:[#allocation4 + $0xe8] sm:$0xff]  ;;  %v836_v16 = vld [vmem:[#allocation4 + $0xf8] sm:$0xff] }
  0x30   : > { %321 = vmatpush.msra.mxu1 %v827_v6  ;;  %521 = vmatpush.msra.mxu3 %v264_v10  ;;  %v255_v17 = vld [vmem:[#allocation4 + $0x108] sm:$0xff]  ;;  %v248_v18 = vld [vmem:[#allocation4 + $0xd0] sm:$0xff]  ;;  %v839_v19 = vld [vmem:[#allocation4 + $0xe0] sm:$0xff]  ;;  %s895_s15 = scalar_lea.vmem %s952_s3, %s552_s10 }
  0x31   : > { %363 = vmatpush.msra.mxu2 %v260_v5  ;;  %280 = vmatpush.msra.mxu0 %v261_v11  ;;  %v252_v20 = vld [vmem:[#allocation4 + $0xf0] sm:$0xff]  ;;  %v245_v21 = vld [vmem:[#allocation4 + $0xb8] sm:$0xff]  ;;  %v842_v22 = vld [vmem:[#allocation4 + $0xc8] sm:$0xff] }
  0x32   : > { %322 = vmatpush.msra.mxu1 %v830_v9  ;;  %522 = vmatpush.msra.mxu3 %v261_v11  ;;  %v249_v23 = vld [vmem:[#allocation4 + $0xd8] sm:$0xff]  ;;  %v242_v24 = vld [vmem:[#allocation4 + $0xa0] sm:$0xff]  ;;  %v845_v25 = vld [vmem:[#allocation4 + $0xb0] sm:$0xff] }
  0x33   : > { %364 = vmatpush.msra.mxu2 %v257_v8  ;;  %281 = vmatpush.msra.mxu0 %v258_v14  ;;  %v246_v26 = vld [vmem:[#allocation4 + $0xc0] sm:$0xff]  ;;  %v239_v27 = vld [vmem:[#allocation4 + $0x88] sm:$0xff]  ;;  %v848_v28 = vld [vmem:[#allocation4 + $0x98] sm:$0xff] }
  0x34   : > { %323 = vmatpush.msra.mxu1 %v833_v13  ;;  %523 = vmatpush.msra.mxu3 %v258_v14  ;;  %v243_v29 = vld [vmem:[#allocation4 + $0xa8] sm:$0xff]  ;;  %v236_v30 = vld [vmem:[#allocation4 + $0x70] sm:$0xff]  ;;  %v851_v31 = vld [vmem:[#allocation4 + $0x80] sm:$0xff] }
  0x35   : > { %365 = vmatpush.msra.mxu2 %v254_v12  ;;  %282 = vmatpush.msra.mxu0 %v255_v17  ;;  %v240_v32 = vld [vmem:[#allocation4 + $0x90] sm:$0xff]  ;;  %v233_v33 = vld [vmem:[#allocation4 + $0x58] sm:$0xff]  ;;  %v854_v34 = vld [vmem:[#allocation4 + $0x68] sm:$0xff] }
  0x36   : > { %324 = vmatpush.msra.mxu1 %v836_v16  ;;  %524 = vmatpush.msra.mxu3 %v255_v17  ;;  %v237_v35 = vld [vmem:[#allocation4 + $0x78] sm:$0xff]  ;;  %v230_v36 = vld [vmem:[#allocation4 + $0x40] sm:$0xff]  ;;  %v857_v37 = vld [vmem:[#allocation4 + $0x50] sm:$0xff] }
  0x37   : > { %366 = vmatpush.msra.mxu2 %v251_v15  ;;  %283 = vmatpush.msra.mxu0 %v252_v20  ;;  %v234_v38 = vld [vmem:[#allocation4 + $0x60] sm:$0xff]  ;;  %v227_v39 = vld [vmem:[#allocation4 + $0x28] sm:$0xff]  ;;  %v229_v40 = vld [vmem:[#allocation4 + $0x38] sm:$0xff] }
  0x38   : > { %325 = vmatpush.msra.mxu1 %v839_v19  ;;  %525 = vmatpush.msra.mxu3 %v252_v20  ;;  %v231_v41 = vld [vmem:[#allocation4 + $0x48] sm:$0xff]  ;;  %v224_v42 = vld [vmem:[#allocation4 + $0x10] sm:$0xff]  ;;  %v226_v43 = vld [vmem:[#allocation4 + $0x20] sm:$0xff] }
  0x39   : > { %367 = vmatpush.msra.mxu2 %v248_v18  ;;  %284 = vmatpush.msra.mxu0 %v249_v23  ;;  %v214_v44 = vld [vmem:[%s812_s9] sm:$0xff]  ;;  %v228_v45 = vld [vmem:[#allocation4 + $0x30] sm:$0xff]  ;;  %v223_v46 = vld [vmem:[#allocation4 + $0x8] sm:$0xff] }
  0x3a   : > { %326 = vmatpush.msra.mxu1 %v842_v22  ;;  %526 = vmatpush.msra.mxu3 %v249_v23  ;;  %v225_v47 = vld [vmem:[#allocation4 + $0x18] sm:$0xff]  ;;  %v222_v48 = vld [vmem:[#allocation4] sm:$0xff]  ;;  %v220_v49 = vld [vmem:[%s812_s9 + $0x30] sm:$0xff] }
  0x3b   : > { %368 = vmatpush.msra.mxu2 %v245_v21  ;;  %285 = vmatpush.msra.mxu0 %v246_v26  ;;  %v215_v50 = vld [vmem:[%s812_s9 + $0x8] sm:$0xff]  ;;  %v221_v51 = vld [vmem:[%s812_s9 + $0x38] sm:$0xff]  ;;  %v216_v52 = vld [vmem:[%s812_s9 + $0x10] sm:$0xff] }
  0x3c   : > { %327 = vmatpush.msra.mxu1 %v845_v25  ;;  %527 = vmatpush.msra.mxu3 %v246_v26  ;;  %v217_v53 = vld [vmem:[%s812_s9 + $0x18] sm:$0xff]  ;;  %v218_v54 = vld [vmem:[%s812_s9 + $0x20] sm:$0xff]  ;;  %v219_v55 = vld [vmem:[%s812_s9 + $0x28] sm:$0xff] }
  0x3d   : > { %369 = vmatpush.msra.mxu2 %v242_v24  ;;  %286 = vmatpush.msra.mxu0 %v243_v29  ;;  %v270_v56 = vld [vmem:[%s951_s2] sm:$0x7] }
  0x3e   : > { %328 = vmatpush.msra.mxu1 %v848_v28  ;;  %528 = vmatpush.msra.mxu3 %v243_v29  ;;  %v887_v57 = vperm.slane %v270_v56, 1  ;;  %v272_v59 = vperm.slane %v270_v56, 0  ;;  %v889_v60 = vperm.slane %v270_v56, 2 }
  0x3f   : > { %370 = vmatpush.msra.mxu2 %v239_v27  ;;  %287 = vmatpush.msra.mxu0 %v240_v32 }
  0x40   : > { %329 = vmatpush.msra.mxu1 %v851_v31  ;;  %529 = vmatpush.msra.mxu3 %v240_v32 }
  0x41   : > { %371 = vmatpush.msra.mxu2 %v236_v30  ;;  %288 = vmatpush.msra.mxu0 %v237_v35 }
  0x42   : > { %330 = vmatpush.msra.mxu1 %v854_v34  ;;  %530 = vmatpush.msra.mxu3 %v237_v35 }
  0x43   : > { %372 = vmatpush.msra.mxu2 %v233_v33  ;;  %289 = vmatpush.msra.mxu0 %v234_v38 }
  0x44   : > { %331 = vmatpush.msra.mxu1 %v857_v37  ;;  %531 = vmatpush.msra.mxu3 %v234_v38 }
  0x45   : > { %373 = vmatpush.msra.mxu2 %v230_v36  ;;  %290 = vmatpush.msra.mxu0 %v231_v41 }
  0x46   : > { %332 = vmatpush.msra.mxu1 %v229_v40  ;;  %532 = vmatpush.msra.mxu3 %v231_v41 }
  0x47   : > { %374 = vmatpush.msra.mxu2 %v227_v39  ;;  %291 = vmatpush.msra.mxu0 %v228_v45 }
  0x48   : > { %333 = vmatpush.msra.mxu1 %v226_v43  ;;  %533 = vmatpush.msra.mxu3 %v228_v45 }
  0x49   : > { %375 = vmatpush.msra.mxu2 %v224_v42  ;;  %292 = vmatpush.msra.mxu0 %v225_v47 }
  0x4a   : > { %376 = vmatmul.f32.vlgmr.msra.gmra.mxu2 %v214_v44  ;;  %334 = vmatpush.msra.mxu1 %v223_v46 }
  0x4b   : > { %335 = vmatmul.f32.vlgmr.msra.gmra.mxu1 %v214_v44  ;;  %534 = vmatpush.msra.mxu3 %v225_v47 }
  0x4c   : > { %293 = vmatpush.msra.mxu0 %v222_v48 }
  0x4d   : > { %294 = vmatmul.f32.vlgmr.msra.gmra.mxu0 %v214_v44  ;;  %535 = vmatpush.msra.mxu3 %v222_v48 }
  0x4e   : > { %312 = vmatmul.f32.vlgmr.msra.gmra.mxu3 %v220_v49 }
  0x4f   : > { %536 = vmatpush.msrb.mxu3 %v822_v3 }
  0x51   : > { %537 = vmatpush.msrb.mxu3 %v825_v4 }
  0x52   : > { %379 = vmatmul.f32.gmra.mxu2 %v215_v50 }
  0x53   : > { %338 = vmatmul.f32.gmra.mxu1 %v215_v50  ;;  %538 = vmatpush.msrb.mxu3 %v827_v6 }
  0x55   : > { %539 = vmatpush.msrb.mxu3 %v830_v9  ;;  %297 = vmatmul.f32.gmra.mxu0 %v215_v50 }
  0x56   : > { %315 = vmatmul.f32.gmra.mxu3 %v221_v51 }
  0x57   : > { %540 = vmatpush.msrb.mxu3 %v833_v13 }
  0x59   : > { %541 = vmatpush.msrb.mxu3 %v836_v16 }
  0x5a   : > { %382 = vmatmul.f32.gmra.mxu2 %v216_v52 }
  0x5b   : > { %341 = vmatmul.f32.gmra.mxu1 %v216_v52  ;;  %542 = vmatpush.msrb.mxu3 %v839_v19 }
  0x5d   : > { %543 = vmatpush.msrb.mxu3 %v842_v22  ;;  %300 = vmatmul.f32.gmra.mxu0 %v216_v52 }
  0x5f   : > { %544 = vmatpush.msrb.mxu3 %v845_v25 }
  0x61   : > { %545 = vmatpush.msrb.mxu3 %v848_v28 }
  0x62   : > { %385 = vmatmul.f32.gmra.mxu2 %v217_v53 }
  0x63   : > { %344 = vmatmul.f32.gmra.mxu1 %v217_v53  ;;  %546 = vmatpush.msrb.mxu3 %v851_v31 }
  0x65   : > { %547 = vmatpush.msrb.mxu3 %v854_v34  ;;  %303 = vmatmul.f32.gmra.mxu0 %v217_v53 }
  0x67   : > { %548 = vmatpush.msrb.mxu3 %v857_v37 }
  0x69   : > { %549 = vmatpush.msrb.mxu3 %v229_v40 }
  0x6a   : > { %388 = vmatmul.f32.gmra.mxu2 %v218_v54 }
  0x6b   : > { %347 = vmatmul.f32.gmra.mxu1 %v218_v54  ;;  %550 = vmatpush.msrb.mxu3 %v226_v43 }
  0x6d   : > { %551 = vmatpush.msrb.mxu3 %v223_v46  ;;  %306 = vmatmul.f32.gmra.mxu0 %v218_v54 }
  0x6e   : > { %356 = vmatmul.f32.vlgmr.msrb.gmra.mxu3 %v221_v51 }
  0x72   : > { %391 = vmatmul.f32.gmra.mxu2 %v219_v55 }
  0x73   : > { %350 = vmatmul.f32.gmra.mxu1 %v219_v55 }
  0x75   : > { %309 = vmatmul.f32.gmra.mxu0 %v219_v55 }
  0x7a   : > { %394 = vmatmul.f32.gmra.mxu2 %v220_v49 }
  0x7b   : > { %353 = vmatmul.f32.gmra.mxu1 %v220_v49 }
  0x82   : > { %397 = vmatmul.f32.gmra.mxu2 %v221_v51 }
  0xc8   : > { %v336_v58 = vpop.f32.mrf.mxu1 }
  0xc9   : > { %v337_v61 = vadd.f32 %v336_v58, %v887_v57 }
  0xca   : > { %v295_v62 = vpop.f32.mrf.mxu0 }
  0xcb   : > { %402 = vst [vmem:[%s895_s15 + $0x8] sm:$0xff] %v337_v61  ;;  %v296_v0 = vadd.f32 %v295_v62, %v272_v59 }
  0xcd   : > { %v377_v63 = vpop.f32.mrf.mxu2  ;;  %401 = vst [vmem:[%s895_s15] sm:$0xff] %v296_v0 }
  0xce   : > { %v378_v1 = vadd.f32 %v377_v63, %v889_v60 }
  0xd0   : > { %403 = vst [vmem:[%s895_s15 + $0x10] sm:$0xff] %v378_v1  ;;  %v339_v2 = vpop.f32.mrf.mxu1 }
  0xd1   : > { %v340_v3 = vadd.f32 %v339_v2, %v887_v57  ;;  %v313_v5 = vpop.f32.mrf.mxu3 }
  0xd2   : > { %v298_v4 = vpop.f32.mrf.mxu0  ;;  %v314_v8 = vadd.f32 %v313_v5, %v272_v59 }
  0xd3   : > { %405 = vst [vmem:[%s895_s15 + $0x20] sm:$0xff] %v340_v3  ;;  %v299_v7 = vadd.f32 %v298_v4, %v272_v59 }
  0xd4   : > { %419 = vst [vmem:[%s895_s15 + $0x90] sm:$0xff] %v314_v8 }
  0xd5   : > { %v380_v6 = vpop.f32.mrf.mxu2  ;;  %404 = vst [vmem:[%s895_s15 + $0x18] sm:$0xff] %v299_v7 }
  0xd6   : > { %v381_v9 = vadd.f32 %v380_v6, %v889_v60 }
  0xd8   : > { %406 = vst [vmem:[%s895_s15 + $0x28] sm:$0xff] %v381_v9  ;;  %v342_v10 = vpop.f32.mrf.mxu1 }
  0xd9   : > { %v343_v11 = vadd.f32 %v342_v10, %v887_v57  ;;  %v316_v13 = vpop.f32.mrf.mxu3 }
  0xda   : > { %v301_v12 = vpop.f32.mrf.mxu0  ;;  %v317_v16 = vadd.f32 %v316_v13, %v272_v59 }
  0xdb   : > { %408 = vst [vmem:[%s895_s15 + $0x38] sm:$0xff] %v343_v11  ;;  %v302_v15 = vadd.f32 %v301_v12, %v272_v59 }
  0xdc   : > { %422 = vst [vmem:[%s895_s15 + $0xa8] sm:$0xff] %v317_v16 }
  0xdd   : > { %v383_v14 = vpop.f32.mrf.mxu2  ;;  %407 = vst [vmem:[%s895_s15 + $0x30] sm:$0xff] %v302_v15 }
  0xde   : > { %v384_v17 = vadd.f32 %v383_v14, %v889_v60 }
  0xe0   : > { %409 = vst [vmem:[%s895_s15 + $0x40] sm:$0xff] %v384_v17  ;;  %v345_v18 = vpop.f32.mrf.mxu1 }
  0xe1   : > { %v346_v19 = vadd.f32 %v345_v18, %v887_v57 }
  0xe2   : > { %v304_v20 = vpop.f32.mrf.mxu0 }
  0xe3   : > { %411 = vst [vmem:[%s895_s15 + $0x50] sm:$0xff] %v346_v19  ;;  %v305_v22 = vadd.f32 %v304_v20, %v272_v59 }
  0xe5   : > { %v386_v21 = vpop.f32.mrf.mxu2  ;;  %410 = vst [vmem:[%s895_s15 + $0x48] sm:$0xff] %v305_v22 }
  0xe6   : > { %v387_v23 = vadd.f32 %v386_v21, %v889_v60 }
  0xe8   : > { %412 = vst [vmem:[%s895_s15 + $0x58] sm:$0xff] %v387_v23  ;;  %v348_v24 = vpop.f32.mrf.mxu1 }
  0xe9   : > { %v349_v25 = vadd.f32 %v348_v24, %v887_v57 }
  0xea   : > { %v307_v26 = vpop.f32.mrf.mxu0 }
  0xeb   : > { %414 = vst [vmem:[%s895_s15 + $0x68] sm:$0xff] %v349_v25  ;;  %v308_v28 = vadd.f32 %v307_v26, %v272_v59 }
  0xed   : > { %v389_v27 = vpop.f32.mrf.mxu2  ;;  %413 = vst [vmem:[%s895_s15 + $0x60] sm:$0xff] %v308_v28 }
  0xee   : > { %v390_v29 = vadd.f32 %v389_v27, %v889_v60 }
  0xf0   : > { %415 = vst [vmem:[%s895_s15 + $0x70] sm:$0xff] %v390_v29  ;;  %v351_v30 = vpop.f32.mrf.mxu1 }
  0xf1   : > { %v352_v31 = vadd.f32 %v351_v30, %v887_v57  ;;  %v357_v32 = vpop.f32.mrf.mxu3 }
  0xf2   : > { %v358_v33 = vadd.f32 %v357_v32, %v887_v57  ;;  %v310_v34 = vpop.f32.mrf.mxu0 }
  0xf3   : > { %417 = vst [vmem:[%s895_s15 + $0x80] sm:$0xff] %v352_v31  ;;  %v311_v36 = vadd.f32 %v310_v34, %v272_v59 }
  0xf4   : > { %423 = vst [vmem:[%s895_s15 + $0xb0] sm:$0xff] %v358_v33 }
  0xf5   : > { %v392_v35 = vpop.f32.mrf.mxu2  ;;  %416 = vst [vmem:[%s895_s15 + $0x78] sm:$0xff] %v311_v36 }
  0xf6   : > { %v393_v37 = vadd.f32 %v392_v35, %v889_v60 }
  0xf8   : > { %418 = vst [vmem:[%s895_s15 + $0x88] sm:$0xff] %v393_v37  ;;  %v354_v38 = vpop.f32.mrf.mxu1 }
  0xf9   : > { %v355_v39 = vadd.f32 %v354_v38, %v887_v57 }
  0xfb   : > { %420 = vst [vmem:[%s895_s15 + $0x98] sm:$0xff] %v355_v39 }
  0xfd   : > { %v395_v40 = vpop.f32.mrf.mxu2 }
  0xfe   : > { %v396_v41 = vadd.f32 %v395_v40, %v889_v60 }
 0x100   : > { %421 = vst [vmem:[%s895_s15 + $0xa0] sm:$0xff] %v396_v41 }
 0x105   : > { %v398_v42 = vpop.f32.mrf.mxu2 }
 0x106   : > { %v399_v43 = vadd.f32 %v398_v42, %v889_v60 }
 0x108   : > { %424 = vst [vmem:[%s895_s15 + $0xb8] sm:$0xff] %v399_v43 }
 0x109 PF: > { %p14_p4 = scmp.ge.s32.totalorder %s778_s25, 4   ;;  %s957_s12 = smov %s697_s13 }
 0x10a   : > { %s958_s13 = smov %s701_s14  ;;  %s959_s14 = smov %s788_s30 }
 0x10b   : > { %s960_s15 = smov %s778_s25  ;;  %16 = sbr.rel (!%p14_p4) target bundleno = 4 (0x4), region = 76 }
 0x110   :  { %449 = vsyncpa [#allocation3], 1 }
 0x111   :  { %451 = vsyncpa [#allocation3 + $0x1], 1 }
 0x112   :  { %452 = vsyncpa [#allocation5], 1 }

// kernel: attention_forward.5
= control target key start
LH: loop header
LB: loop body
LE: loop exit
PB: predicated region body
PF: predicated region fallthrough
CT: control target
= control target key end

     0   :  { %8 = vsyncpa [#allocation3], 0  ;;  %s698_s0 = inlined_call_operand.vmem [shape: f32[128,128], index: 0, kind: input, shape index: {}]   ;;  %s699_s1 = inlined_call_operand.hbm [shape: f32[128,128], index: 1, kind: input, shape index: {}]   ;;  %s700_s2 = inlined_call_operand.vmem [shape: f32[1,128], index: 2, kind: input, shape index: {}]   ;;  %s701_s3 = inlined_call_operand.hbm [shape: f32[128,128], index: 3, kind: output, shape index: {}]  }
   0x1   :  { %9 = vsyncpa [#allocation4], 0 }
   0x2   :  { %11 = vsyncpa [#allocation4 + $0x1], 0  ;;  %s597_s12 = smov 0   ;;  %s599_s13 = smov 0  }
   0x3   :  { %s601_s14 = smov 0   ;;  %s603_s15 = smov 0  }
   0x4 LB: > { %s618_s16 = sadd.s32 4294967295, %s570_s15   ;;  %s356_s17 = sadd.s32 4294967294, %s570_s15   ;;  %s570_s15 = sphi %s603_s15, %s707_s15   ;;  %s566_s14 = sphi %s601_s14, %s706_s14   ;;  %s562_s13 = sphi %s599_s13, %s705_s13   ;;  %s558_s12 = sphi %s597_s12, %s704_s12  }
   0x5   : > { %s622_s18 = sadd.s32 1, %s570_s15   ;;  %s92_s19 = sadd.s32 1, %s566_s14 }
   0x6   : > { %s89_s20 = ssub.s32 %s570_s15, %s622_s18  ;;  %p102_p0 = scmp.ne.s32.totalorder %s566_s14, %s562_s13 }
   0x7   : > { %p90_p1 = scmp.eq.s32.totalorder %s89_s20, 0  ;;  %p103_p2 = scmp.eq.s32.totalorder %s618_s16, 1 }
   0x8   : > { %p108_p3 = scmp.ne.s32.totalorder %s562_s13, %s558_s12  ;;  %p109_p4 = scmp.eq.s32.totalorder %s356_s17, 1 }
   0x9   : > { %s633_s21 = scalar_select %p90_p1, %s566_s14, %s92_s19  }
   0xa   : > { %p635_p5 = por %p103_p2, %p102_p0  ;;  %p639_p6 = por %p109_p4, %p108_p3 }
   0xb   : > { %p357_p7 = scmp.ge.s32.totalorder %s570_s15, 1  ;;  %p116_p8 = scmp.lt.s32.totalorder %s570_s15, 3 }
   0xc   : > { %p433_p9 = scmp.eq.s32.totalorder %s618_s16, 0  ;;  %s127_s26 = sshll.u32 %s699_s1, 4  ;;  %s128_s26 = int_to_ptr.hbm [resolvable:$true] %s127_s26 }
   0xd   : > { %p117_p10 = pnand %p357_p7, %p116_p8  ;;  %s572_s27 = smov [#allocation2]  }
   0xe   : > { %s129_s28 = sshll.u32 %s572_s27, 4  ;;  %s573_s29 = smov 128   ;;  %s130_s28 = int_to_ptr.vmem [resolvable:$true] %s129_s28 }
   0xf   : > { %p425_p11 = pneg %p117_p10  ;;  %s574_s30 = smov 8  }
  0x10   : > { %157 = sbr.rel (%p117_p10) target bundleno = 201 (0xc9), region = 32 }
  0x11   : > { %p426_p12 = pnand %p433_p9, %p425_p11 }
  0x13   : > { %428 = dma.hbm_to_vmem [thread:$0]  (!%p426_p12), %s128_s26, 2048, %s130_s28, [#allocation3], %s573_s29, %s573_s29, %s574_s30  }
  0x15   : > { %549 = dma.done.wait (%p433_p9), [#allocation3], 2048  }
  0x16   : > { %551 = vsyncadd (%p433_p9), [#allocation3], 4294965248  ;;  %v212_v0 = vld [vmem:[#allocation2 + $0x78] sm:$0xff]  ;;  %v211_v1 = vld [vmem:[#allocation2 + $0x70] sm:$0xff]  ;;  %s363_s4 = sshll.u32 %s618_s16, 3  ;;  %s179_s9 = sand.u32 1, %s562_s13  }
  0x17   : > { %372 = vmatpush.msra.mxu2 %v212_v0  ;;  %373 = vmatpush.msra.mxu3 %v212_v0  ;;  %v210_v2 = vld [vmem:[#allocation2 + $0x68] sm:$0xff]  ;;  %v209_v3 = vld [vmem:[#allocation2 + $0x60] sm:$0xff]  ;;  %v208_v4 = vld [vmem:[#allocation2 + $0x58] sm:$0xff]  ;;  %p183_p13 = scmp.lt.s32.totalorder %s363_s4, 15  ;;  %s362_s10 = sshll.u32 %s179_s9, 6 }
  0x18   : > { %217 = vmatpush.msra.mxu0 %v212_v0  ;;  %371 = vmatpush.msra.mxu1 %v212_v0  ;;  %v207_v5 = vld [vmem:[#allocation2 + $0x50] sm:$0xff]  ;;  %v206_v6 = vld [vmem:[#allocation2 + $0x48] sm:$0xff]  ;;  %v205_v7 = vld [vmem:[#allocation2 + $0x40] sm:$0xff]  ;;  %s181_s19 = scalar_lea.vmem [#allocation5], %s362_s10  ;;  %s370_s20 = sshll.u32 %s618_s16, 6 }
  0x19   : > { %375 = vmatpush.msra.mxu2 %v211_v1  ;;  %376 = vmatpush.msra.mxu3 %v211_v1  ;;  %v204_v8 = vld [vmem:[#allocation2 + $0x38] sm:$0xff]  ;;  %v203_v9 = vld [vmem:[#allocation2 + $0x30] sm:$0xff]  ;;  %v202_v10 = vld [vmem:[#allocation2 + $0x28] sm:$0xff]  ;;  %s709_s4 = smov (!%p183_p13, %s363_s4), 15  ;;  %s278_s26 = scalar_lea.hbm %s701_s3, %s370_s20 }
  0x1a   : > { %218 = vmatpush.msra.mxu0 %v211_v1  ;;  %374 = vmatpush.msra.mxu1 %v211_v1  ;;  %v201_v11 = vld [vmem:[#allocation2 + $0x20] sm:$0xff]  ;;  %v200_v12 = vld [vmem:[#allocation2 + $0x18] sm:$0xff]  ;;  %s364_s5 = sshll.u32 %s709_s4, 3  ;;  %v199_v13 = vld [vmem:[#allocation2 + $0x10] sm:$0xff]  ;;  %s279_s27 = sshll.u32 %s181_s19, 4  ;;  %s280_s27 = int_to_ptr.vmem [resolvable:$true] %s279_s27 }
  0x1b   : > { %378 = vmatpush.msra.mxu2 %v210_v2  ;;  %379 = vmatpush.msra.mxu3 %v210_v2  ;;  %v198_v14 = vld [vmem:[#allocation2 + $0x8] sm:$0xff]  ;;  %s186_s8 = scalar_lea.vmem %s698_s0, %s364_s5  ;;  %v197_v15 = vld [vmem:[#allocation2] sm:$0xff]  ;;  %s281_s28 = sshll.u32 %s278_s26, 4  ;;  %s282_s28 = int_to_ptr.hbm [resolvable:$true] %s281_s28 }
  0x1c   : > { %219 = vmatpush.msra.mxu0 %v210_v2  ;;  %377 = vmatpush.msra.mxu1 %v210_v2  ;;  %v193_v16 = vld [vmem:[%s186_s8 + $0x20] sm:$0xff]  ;;  %v195_v17 = vld [vmem:[%s186_s8 + $0x30] sm:$0xff]  ;;  %v194_v20 = vld [vmem:[%s186_s8 + $0x28] sm:$0xff]  ;;  %s267_s16 = scalar_lea.sflag [#allocation4], %s179_s9  ;;  %s518_s29 = sshra.s32 %s282_s28, 4  ;;  %s519_s29 = int_to_ptr.hbm [resolvable:$true] %s518_s29 }
  0x1d   : > { %381 = vmatpush.msra.mxu2 %v209_v3  ;;  %382 = vmatpush.msra.mxu3 %v209_v3  ;;  %v189_v18 = vld [vmem:[%s186_s8] sm:$0xff]  ;;  %v191_v19 = vld [vmem:[%s186_s8 + $0x10] sm:$0xff]  ;;  %v196_v21 = vld [vmem:[%s186_s8 + $0x38] sm:$0xff]  ;;  %s520_s30 = scalar_lea.hbm %s519_s29, 64  ;;  %s524_s6 = scalar_lea.hbm %s701_s3, 128 }
  0x1e   : > { %220 = vmatpush.msra.mxu0 %v209_v3  ;;  %380 = vmatpush.msra.mxu1 %v209_v3  ;;  %v190_v22 = vld [vmem:[%s186_s8 + $0x8] sm:$0xff]  ;;  %v192_v23 = vld [vmem:[%s186_s8 + $0x18] sm:$0xff]  ;;  %v473_v24 = vld [vmem:[%s700_s2] ss:$0 sm:$0xff]  ;;  %p521_p0 = scmp.ne.s32.totalorder %s519_s29, %s520_s30  ;;  %p525_p3 = scmp.lt.s32.totalorder %s519_s29, %s701_s3 }
  0x1f   : > { %384 = vmatpush.msra.mxu2 %v208_v4  ;;  %385 = vmatpush.msra.mxu3 %v208_v4  ;;  %p526_p4 = scmp.lt.s32.totalorder %s524_s6, %s520_s30 }
  0x20   : > { %221 = vmatpush.msra.mxu0 %v208_v4  ;;  %383 = vmatpush.msra.mxu1 %v208_v4  ;;  %p522_p1 = pnand %p521_p0, %p635_p5 }
  0x21   : > { %387 = vmatpush.msra.mxu2 %v207_v5  ;;  %388 = vmatpush.msra.mxu3 %v207_v5  ;;  %p527_p7 = por %p526_p4, %p525_p3 }
  0x22   : > { %222 = vmatpush.msra.mxu0 %v207_v5  ;;  %386 = vmatpush.msra.mxu1 %v207_v5  ;;  %p523_p2 = pneg %p522_p1 }
  0x23   : > { %390 = vmatpush.msra.mxu2 %v206_v6  ;;  %391 = vmatpush.msra.mxu3 %v206_v6 }
  0x24   : > { %223 = vmatpush.msra.mxu0 %v206_v6  ;;  %389 = vmatpush.msra.mxu1 %v206_v6  ;;  %p528_p8 = pnand %p527_p7, %p523_p2 }
  0x25   : > { %393 = vmatpush.msra.mxu2 %v205_v7  ;;  %394 = vmatpush.msra.mxu3 %v205_v7 }
  0x26   : > { %224 = vmatpush.msra.mxu0 %v205_v7  ;;  %392 = vmatpush.msra.mxu1 %v205_v7 }
  0x27   : > { %396 = vmatpush.msra.mxu2 %v204_v8  ;;  %397 = vmatpush.msra.mxu3 %v204_v8 }
  0x28   : > { %225 = vmatpush.msra.mxu0 %v204_v8  ;;  %395 = vmatpush.msra.mxu1 %v204_v8 }
  0x29   : > { %399 = vmatpush.msra.mxu2 %v203_v9  ;;  %400 = vmatpush.msra.mxu3 %v203_v9 }
  0x2a   : > { %226 = vmatpush.msra.mxu0 %v203_v9  ;;  %398 = vmatpush.msra.mxu1 %v203_v9 }
  0x2b   : > { %402 = vmatpush.msra.mxu2 %v202_v10  ;;  %403 = vmatpush.msra.mxu3 %v202_v10 }
  0x2c   : > { %227 = vmatpush.msra.mxu0 %v202_v10  ;;  %401 = vmatpush.msra.mxu1 %v202_v10 }
  0x2d   : > { %405 = vmatpush.msra.mxu2 %v201_v11  ;;  %406 = vmatpush.msra.mxu3 %v201_v11 }
  0x2e   : > { %228 = vmatpush.msra.mxu0 %v201_v11  ;;  %404 = vmatpush.msra.mxu1 %v201_v11 }
  0x2f   : > { %408 = vmatpush.msra.mxu2 %v200_v12  ;;  %409 = vmatpush.msra.mxu3 %v200_v12 }
  0x30   : > { %229 = vmatpush.msra.mxu0 %v200_v12  ;;  %407 = vmatpush.msra.mxu1 %v200_v12 }
  0x31   : > { %411 = vmatpush.msra.mxu2 %v199_v13  ;;  %412 = vmatpush.msra.mxu3 %v199_v13 }
  0x32   : > { %230 = vmatpush.msra.mxu0 %v199_v13  ;;  %410 = vmatpush.msra.mxu1 %v199_v13 }
  0x33   : > { %414 = vmatpush.msra.mxu2 %v198_v14  ;;  %415 = vmatpush.msra.mxu3 %v198_v14 }
  0x34   : > { %231 = vmatpush.msra.mxu0 %v198_v14  ;;  %413 = vmatpush.msra.mxu1 %v198_v14 }
  0x35   : > { %417 = vmatpush.msra.mxu2 %v197_v15  ;;  %418 = vmatpush.msra.mxu3 %v197_v15 }
  0x36   : > { %245 = vmatmul.f32.vlgmr.msra.gmra.mxu2 %v193_v16  ;;  %251 = vmatmul.f32.vlgmr.msra.gmra.mxu3 %v195_v17 }
  0x37   : > { %232 = vmatpush.msra.mxu0 %v197_v15  ;;  %416 = vmatpush.msra.mxu1 %v197_v15 }
  0x38   : > { %233 = vmatmul.f32.vlgmr.msra.gmra.mxu0 %v189_v18  ;;  %239 = vmatmul.f32.vlgmr.msra.gmra.mxu1 %v191_v19 }
  0x3e   : > { %248 = vmatmul.f32.gmra.mxu2 %v194_v20  ;;  %254 = vmatmul.f32.gmra.mxu3 %v196_v21 }
  0x40   : > { %236 = vmatmul.f32.gmra.mxu0 %v190_v22  ;;  %242 = vmatmul.f32.gmra.mxu1 %v192_v23 }
  0xb5   : > { %v234_v25 = vpop.f32.mrf.mxu0  ;;  %v240_v26 = vpop.f32.mrf.mxu1 }
  0xb6   : > { %v235_v27 = vadd.f32 %v473_v24, %v234_v25  ;;  %v241_v28 = vadd.f32 %v473_v24, %v240_v26 }
  0xb8   : > { %258 = vst [vmem:[%s181_s19] sm:$0xff] %v235_v27 }
  0xb9   : > { %260 = vst [vmem:[%s181_s19 + $0x10] sm:$0xff] %v241_v28  ;;  %v246_v29 = vpop.f32.mrf.mxu2  ;;  %v252_v30 = vpop.f32.mrf.mxu3 }
  0xba   : > { %v247_v31 = vadd.f32 %v473_v24, %v246_v29  ;;  %v253_v32 = vadd.f32 %v473_v24, %v252_v30 }
  0xbc   : > { %262 = vst [vmem:[%s181_s19 + $0x20] sm:$0xff] %v247_v31 }
  0xbd   : > { %264 = vst [vmem:[%s181_s19 + $0x30] sm:$0xff] %v253_v32  ;;  %v237_v33 = vpop.f32.mrf.mxu0  ;;  %v243_v34 = vpop.f32.mrf.mxu1 }
  0xbe   : > { %v238_v35 = vadd.f32 %v473_v24, %v237_v33  ;;  %v244_v36 = vadd.f32 %v473_v24, %v243_v34 }
  0xc0   : > { %259 = vst [vmem:[%s181_s19 + $0x8] sm:$0xff] %v238_v35 }
  0xc1   : > { %261 = vst [vmem:[%s181_s19 + $0x18] sm:$0xff] %v244_v36  ;;  %v249_v37 = vpop.f32.mrf.mxu2  ;;  %v255_v38 = vpop.f32.mrf.mxu3 }
  0xc2   : > { %v250_v39 = vadd.f32 %v473_v24, %v249_v37  ;;  %v256_v40 = vadd.f32 %v473_v24, %v255_v38 }
  0xc4   : > { %263 = vst [vmem:[%s181_s19 + $0x28] sm:$0xff] %v250_v39 }
  0xc5   : > { %265 = vst [vmem:[%s181_s19 + $0x38] sm:$0xff] %v256_v40 }
  0xc6   : > { %531 = shalt.err (!%p528_p8)
}
  0xc7   : > { %s575_s9 = smov 128   ;;  %s576_s10 = smov 8  }
  0xc8   : > { %423 = dma.vmem_to_hbm [thread:$0]  (%p635_p5), %s280_s27, 1024, %s282_s28, %s267_s16, %s575_s9, %s575_s9, %s576_s10  }
  0xc9 PF: > { %p435_p9 = scmp.ge.s32.totalorder %s570_s15, 2  ;;  %s296_s11 = sand.u32 1, %s558_s12  }
  0xca   : > { %s297_s17 = scalar_lea.sflag [#allocation4], %s296_s11 }
  0xcb   : > { %p430_p10 = pnand %p435_p9, %p639_p6 }
  0xcd   : > { %p431_p11 = pneg %p430_p10 }
  0xcf   : > { %553 = dma.done.wait (%p431_p11), %s297_s17, 1024  }
  0xd0   : > { %555 = vsyncadd (%p431_p11), %s297_s17, 4294966272  ;;  %p14_p12 = scmp.ge.s32.totalorder %s622_s18, 4   ;;  %s704_s12 = smov %s562_s13 }
  0xd1   : > { %s705_s13 = smov %s566_s14  ;;  %s706_s14 = smov %s633_s21 }
  0xd2   : > { %s707_s15 = smov %s622_s18  ;;  %16 = sbr.rel (!%p14_p12) target bundleno = 4 (0x4), region = 72 }
  0xd7   :  { %303 = vsyncpa [#allocation3], 1 }
  0xd8   :  { %305 = vsyncpa [#allocation3 + $0x1], 1 }
  0xd9   :  { %306 = vsyncpa [#allocation4], 1 }
  0xda   :  { %308 = vsyncpa [#allocation4 + $0x1], 1 }

// kernel: attention_forward.4
= control target key start
LH: loop header
LB: loop body
LE: loop exit
PB: predicated region body
PF: predicated region fallthrough
CT: control target
= control target key end

     0   :  { %s4232_s6 = smov 0   ;;  %s6874_s0 = inlined_call_operand.vmem [shape: f32[2,64,384], index: 0, kind: input, shape index: {}]   ;;  %s6875_s1 = inlined_call_operand.vmem [shape: f32[2,64,128], index: 1, kind: output, shape index: {}]  }
   0x1 LB: > { %s3549_s7 = sadd.s32 4294967295, %s4213_s6   ;;  %p3553_p0 = scmp.ge.s32.totalorder %s4213_s6, 1  ;;  %s4213_s6 = sphi %s4232_s6, %s11_s6  }
   0x2   : > { %p87_p1 = scmp.lt.s32.totalorder %s4213_s6, 3 }
   0x4   : > { %p88_p2 = pnand %p3553_p0, %p87_p1 }
   0x5   : > { %p107_p3 = scmp.lt.s32.totalorder (!%p88_p2), %s3549_s7, 1  ;;  %s4215_s12 = smov (!%p88_p2), 112  }
   0x6   : > { %91 = sbr.rel (%p88_p2) target bundleno = 2465 (0x9a1), region = 24  ;;  %s4216_s13 = smov (!%p88_p2), 96  }
   0x7   : > { %s4217_s14 = smov (!%p88_p2), 80   ;;  %s4218_s19 = smov (!%p88_p2), 64  }
   0x8   : > { %s4219_s20 = smov (!%p88_p2), 48   ;;  %s4220_s21 = smov (!%p88_p2), 16  }
   0x9   : > { %s4221_s22 = smov (!%p88_p2), 32  }
   0xb   : > { %s6955_s7 = smov (!%p107_p3, %s3549_s7), 1  ;;  %vm141_vm0 = vcmask 130048   ;;  %vm231_vm1 = vcmask 523264  }
   0xc   : > { %s3768_s8 = smul.u32 192, %s6955_s7  ;;  %s3751_s15 = sshll.u32 %s6955_s7, 6 }
   0xd   : > { %s4643_s18 = scalar_lea.vmem %s6875_s1, %s3751_s15 }
   0xe   : > { %s4246_s11 = scalar_lea.vmem %s6874_s0, %s3768_s8 }
   0xf   : > { %v4249_v0 = vld [vmem:[%s4246_s11 + $0xb0] sm:$0xff]  ;;  %v4255_v2 = vld [vmem:[%s4246_s11] sm:$0xff]  ;;  %v4264_v3 = vld [vmem:[%s4246_s11 + $0x98] sm:$0xff] }
  0x10   : > { %v4252_v1 = vld [vmem:[%s4246_s11 + $0x30] sm:$0xff]  ;;  %3557 = vmatpush.xpose.msk.msra.mxu0 %vm141_vm0, %v4249_v0  ;;  %497 = vrot.lane.b32.xlu1 %v4255_v2, %s4215_s12  ;;  %v4267_v4 = vld [vmem:[%s4246_s11 + $0x18] sm:$0xff]  ;;  %v4274_v5 = vld [vmem:[%s4246_s11 + $0x80] sm:$0xff] }
  0x11   : > { %501 = vrot.lane.b32.xlu0 %v4252_v1, %s4215_s12  ;;  %499 = vrot.lane.b32.xlu2 %v4267_v4, %s4215_s12  ;;  %v4277_v6 = vld [vmem:[%s4246_s11 + $0x78] sm:$0xff]  ;;  %v4280_v7 = vld [vmem:[%s4246_s11 + $0x60] sm:$0xff] }
  0x12   : > { %v4283_v8 = vld [vmem:[%s4246_s11 + $0x48] sm:$0xff]  ;;  %v4299_v10 = vld [vmem:[%s4246_s11 + $0x50] sm:$0xff]  ;;  %v140_v13 = vld [vmem:[%s4246_s11 + $0xb8] sm:$0xff] }
  0x13   : > { %v4292_v9 = vld [vmem:[%s4246_s11 + $0x68] sm:$0xff]  ;;  %v4309_v14 = vld [vmem:[%s4246_s11 + $0x90] sm:$0xff]  ;;  %336 = vmatpush.msra.mxu1 %v140_v13  ;;  %v137_v15 = vld [vmem:[%s4246_s11 + $0xa0] sm:$0xff] }
  0x14   : > { %3558 = vmatpush.xpose.msk.msra.mxu0 %vm141_vm0, %v4264_v3  ;;  %v4302_v11 = vld [vmem:[%s4246_s11 + $0x8] sm:$0xff]  ;;  %v4319_v16 = vld [vmem:[%s4246_s11 + $0x38] sm:$0xff]  ;;  %v131_v18 = vld [vmem:[%s4246_s11 + $0x70] sm:$0xff]  ;;  %v4364_v26 = vpack.i.bf16 %v140_v13, %v137_v15 }
  0x15   : > { %v4305_v12 = vld [vmem:[%s4246_s11 + $0xa8] sm:$0xff]  ;;  %337 = vmatpush.msra.mxu1 %v137_v15  ;;  %v4328_v19 = vld [vmem:[%s4246_s11 + $0x20] sm:$0xff]  ;;  %v128_v20 = vld [vmem:[%s4246_s11 + $0x58] sm:$0xff] }
  0x16   : > { %v134_v17 = vld [vmem:[%s4246_s11 + $0x88] sm:$0xff]  ;;  %v125_v21 = vld [vmem:[%s4246_s11 + $0x40] sm:$0xff]  ;;  %v119_v23 = vld [vmem:[%s4246_s11 + $0x10] sm:$0xff] }
  0x17   : > { %338 = vmatpush.msra.mxu1 %v134_v17  ;;  %v122_v22 = vld [vmem:[%s4246_s11 + $0x28] sm:$0xff]  ;;  %v4354_v25 = vpack.i.bf16 %v134_v17, %v131_v18  ;;  %v4366_v27 = vpack.i.bf16 %v128_v20, %v125_v21 }
  0x18   : > { %3559 = vmatpush.xpose.msk.msra.mxu0 %vm141_vm0, %v4274_v5  ;;  %505 = vrot.lane.b32.xlu1 %v4280_v7, %s4215_s12  ;;  %v4352_v24 = vpack.i.bf16 %v122_v22, %v119_v23 }
  0x19   : > { %507 = vrot.lane.b32.xlu0 %v4277_v6, %s4215_s12  ;;  %503 = vrot.lane.b32.xlu2 %v4283_v8, %s4215_s12 }
  0x1a   : > { %339 = vmatpush.msra.mxu1 %v131_v18 }
  0x1c   : > { %3560 = vmatpush.xpose.msk.msra.mxu0 %vm141_vm0, %v4292_v9  ;;  %340 = vmatpush.msra.mxu1 %v128_v20 }
  0x1e   : > { %341 = vmatpush.msra.mxu1 %v125_v21 }
  0x20   : > { %3561 = vmatpush.xpose.msk.msra.mxu0 %vm141_vm0, %v4299_v10  ;;  %511 = vrot.lane.b32.xlu1 %v4305_v12, %s4215_s12 }
  0x21   : > { %513 = vrot.lane.b32.xlu0 %v4302_v11, %s4215_s12  ;;  %509 = vrot.lane.b32.xlu2 %v4309_v14, %s4215_s12 }
  0x22   : > { %342 = vmatpush.msra.mxu1 %v122_v22 }
  0x24   : > { %3562 = vmatpush.xpose.msk.msra.mxu0 %vm141_vm0, %v4319_v16  ;;  %343 = vmatpush.msra.mxu1 %v119_v23 }
  0x28   : > { %3563 = vmatpush.xpose.msk.msra.mxu0 %vm141_vm0, %v4328_v19  ;;  %517 = vrot.lane.b32.xlu1 %v4319_v16, %s4215_s12 }
  0x29   : > { %519 = vrot.lane.b32.xlu0 %v4299_v10, %s4215_s12  ;;  %515 = vrot.lane.b32.xlu2 %v4328_v19, %s4215_s12 }
  0x2c   : > { %3564 = vmatpush.xpose.msk.msra.mxu0 %vm141_vm0, %v4302_v11 }
  0x2f   : > { %3565 = vmatmul.msk.f32.vlgmr.msra.gmra.mxu0 %vm141_vm0, %v4255_v2 }
  0x30   : > { %523 = vrot.lane.b32.xlu1 %v4274_v5, %s4215_s12 }
  0x31   : > { %525 = vrot.lane.b32.xlu0 %v4264_v3, %s4215_s12  ;;  %521 = vrot.lane.b32.xlu2 %v4292_v9, %s4215_s12 }
  0x37   : > { %3566 = vmatmul.msk.f32.gmra.mxu0 %vm141_vm0, %v4267_v4 }
  0x38   : > { %3795 = vrot.lane.b32.xlu1 %v4354_v25, %s4215_s12 }
  0x39   : > { %3785 = vrot.lane.b32.xlu0 %v4352_v24, %s4215_s12  ;;  %527 = vrot.lane.b32.xlu2 %v4249_v0, %s4215_s12 }
  0x3f   : > { %3567 = vmatmul.msk.f32.gmra.mxu0 %vm141_vm0, %v4252_v1 }
  0x40   : > { %932 = vrot.lane.b32.xlu1 %v4255_v2, %s4216_s13 }
  0x41   : > { %3800 = vrot.lane.b32.xlu0 %v4364_v26, %s4215_s12  ;;  %3790 = vrot.lane.b32.xlu2 %v4366_v27, %s4215_s12 }
  0x47   : > { %3568 = vmatmul.msk.f32.gmra.mxu0 %vm141_vm0, %v4283_v8 }
  0x48   : > { %938 = vrot.lane.b32.xlu1 %v4283_v8, %s4216_s13 }
  0x49   : > { %936 = vrot.lane.b32.xlu0 %v4252_v1, %s4216_s13  ;;  %934 = vrot.lane.b32.xlu2 %v4267_v4, %s4216_s13 }
  0x4f   : > { %3569 = vmatmul.msk.f32.gmra.mxu0 %vm141_vm0, %v4280_v7 }
  0x50   : > { %944 = vrot.lane.b32.xlu1 %v4309_v14, %s4216_s13 }
  0x51   : > { %942 = vrot.lane.b32.xlu0 %v4277_v6, %s4216_s13  ;;  %940 = vrot.lane.b32.xlu2 %v4280_v7, %s4216_s13 }
  0x57   : > { %3570 = vmatmul.msk.f32.gmra.mxu0 %vm141_vm0, %v4277_v6 }
  0x58   : > { %950 = vrot.lane.b32.xlu1 %v4328_v19, %s4216_s13 }
  0x59   : > { %948 = vrot.lane.b32.xlu0 %v4302_v11, %s4216_s13  ;;  %946 = vrot.lane.b32.xlu2 %v4305_v12, %s4216_s13 }
  0x5f   : > { %3571 = vmatmul.msk.f32.gmra.mxu0 %vm141_vm0, %v4309_v14 }
  0x60   : > { %956 = vrot.lane.b32.xlu1 %v4292_v9, %s4216_s13 }
  0x61   : > { %954 = vrot.lane.b32.xlu0 %v4299_v10, %s4216_s13  ;;  %952 = vrot.lane.b32.xlu2 %v4319_v16, %s4216_s13 }
  0x67   : > { %3572 = vmatmul.msk.f32.gmra.mxu0 %vm141_vm0, %v4305_v12 }
  0x68   : > { %962 = vrot.lane.b32.xlu1 %v4249_v0, %s4216_s13 }
  0x69   : > { %960 = vrot.lane.b32.xlu0 %v4264_v3, %s4216_s13  ;;  %958 = vrot.lane.b32.xlu2 %v4274_v5, %s4216_s13 }
  0x6b   : > { %v4416_v28 = vpop.permute.xlu2 %499 }
  0x70   : > { %3810 = vrot.lane.b32.xlu1 %v4366_v27, %s4216_s13 }
  0x71   : > { %3805 = vrot.lane.b32.xlu0 %v4352_v24, %s4216_s13  ;;  %3815 = vrot.lane.b32.xlu2 %v4354_v25, %s4216_s13 }
  0x73   : > { %v4424_v29 = vpop.permute.xlu2 %503 }
  0x78   : > { %1361 = vrot.lane.b32.xlu1 %v4267_v4, %s4217_s14 }
  0x79   : > { %3820 = vrot.lane.b32.xlu0 %v4364_v26, %s4216_s13  ;;  %1359 = vrot.lane.b32.xlu2 %v4255_v2, %s4217_s14 }
  0x7b   : > { %v4432_v30 = vpop.permute.xlu2 %509 }
  0x80   : > { %1367 = vrot.lane.b32.xlu1 %v4280_v7, %s4217_s14 }
  0x81   : > { %1363 = vrot.lane.b32.xlu0 %v4252_v1, %s4217_s14  ;;  %1365 = vrot.lane.b32.xlu2 %v4283_v8, %s4217_s14 }
  0x82   : > { %v498_v32 = vpop.permute.xlu1 %497 }
  0x83   : > { %v4438_v31 = vpop.permute.xlu0 %501  ;;  %v516_v33 = vpop.permute.xlu2 %515 }
  0x88   : > { %1373 = vrot.lane.b32.xlu1 %v4305_v12, %s4217_s14 }
  0x89   : > { %1369 = vrot.lane.b32.xlu0 %v4277_v6, %s4217_s14  ;;  %1371 = vrot.lane.b32.xlu2 %v4309_v14, %s4217_s14 }
  0x8a   : > { %v4450_v35 = vpop.permute.xlu1 %505 }
  0x8b   : > { %v4446_v34 = vpop.permute.xlu0 %507  ;;  %v522_v36 = vpop.permute.xlu2 %521 }
  0x91   : > { %1377 = vrot.lane.b32.xlu2 %v4328_v19, %s4217_s14 }
  0x92   : > { %v4454_v38 = vpop.permute.xlu1 %511 }
  0x93   : > { %v514_v37 = vpop.permute.xlu0 %513  ;;  %v528_v39 = vpop.permute.xlu2 %527 }
  0x94   : > { %3581 = vmatpush.xpose.msk.msra.mxu2 %vm141_vm0, %v528_v39 }
  0x99   : > { %1383 = vrot.lane.b32.xlu2 %v4292_v9, %s4217_s14 }
  0x9a   : > { %v518_v41 = vpop.permute.xlu1 %517 }
  0x9b   : > { %v520_v40 = vpop.permute.xlu0 %519  ;;  %v3791_v47 = vpop.permute.xlu2 %3790 }
  0x9c   : > { %v3793_v60 = vunpack.i.h.bf16 %v3791_v47  ;;  %v3792_v63 = vunpack.i.l.bf16 %v3791_v47 }
  0xa2   : > { %v524_v43 = vpop.permute.xlu1 %523 }
  0xa3   : > { %v526_v42 = vpop.permute.xlu0 %525  ;;  %v4475_v57 = vpop.permute.xlu2 %934 }
  0xa4   : > { %3582 = vmatpush.xpose.msk.msra.mxu2 %vm141_vm0, %v526_v42 }
  0xa8   : > { %3583 = vmatpush.xpose.msk.msra.mxu2 %vm141_vm0, %v524_v43 }
  0xaa   : > { %v3796_v45 = vpop.permute.xlu1 %3795 }
  0xab   : > { %v3786_v44 = vpop.permute.xlu0 %3785  ;;  %v3798_v54 = vunpack.i.h.bf16 %v3796_v45  ;;  %v3797_v56 = vunpack.i.l.bf16 %v3796_v45  ;;  %v4491_v18 = vpop.permute.xlu2 %940 }
  0xac   : > { %3584 = vmatpush.xpose.msk.msra.mxu2 %vm141_vm0, %v522_v36  ;;  %v4462_v46 = vpop.f32.mrf.mxu0  ;;  %v3788_v9 = vunpack.i.h.bf16 %v3786_v44  ;;  %v3787_v13 = vunpack.i.l.bf16 %v3786_v44 }
  0xad   : > { %v232_v48 = vsel %vm231_vm1, %v4462_v46, -inf }
  0xb0   : > { %3585 = vmatpush.xpose.msk.msra.mxu2 %vm141_vm0, %v520_v40 }
  0xb2   : > { %v4467_v50 = vpop.permute.xlu1 %932 }
  0xb3   : > { %v3801_v49 = vpop.permute.xlu0 %3800  ;;  %233 = vmax.xlane.f32.xlu0 %v232_v48  ;;  %v4503_v36 = vpop.permute.xlu2 %946 }
  0xb4   : > { %3586 = vmatpush.xpose.msk.msra.mxu2 %vm141_vm0, %v518_v41  ;;  %v3803_v51 = vunpack.i.h.bf16 %v3801_v49  ;;  %v3802_v52 = vunpack.i.l.bf16 %v3801_v49  ;;  %v4470_v53 = vpop.f32.mrf.mxu0 }
  0xb5   : > { %v235_v55 = vsel %vm231_vm1, %v4470_v53, -inf }
  0xb6   : > { %738 = vmatpush.msra.mxu3 %v3803_v51 }
  0xb8   : > { %3587 = vmatpush.xpose.msk.msra.mxu2 %vm141_vm0, %v516_v33  ;;  %739 = vmatpush.msra.mxu3 %v3802_v52 }
  0xba   : > { %740 = vmatpush.msra.mxu3 %v3798_v54  ;;  %v4479_v59 = vpop.permute.xlu1 %938 }
  0xbb   : > { %v4477_v58 = vpop.permute.xlu0 %936  ;;  %236 = vmax.xlane.f32.xlu0 %v235_v55  ;;  %v953_v41 = vpop.permute.xlu2 %952 }
  0xbc   : > { %3588 = vmatpush.xpose.msk.msra.mxu2 %vm141_vm0, %v514_v37  ;;  %741 = vmatpush.msra.mxu3 %v3797_v56  ;;  %v4482_v61 = vpop.f32.mrf.mxu0 }
  0xbd   : > { %v238_v62 = vsel %vm231_vm1, %v4482_v61, -inf }
  0xbe   : > { %742 = vmatpush.msra.mxu3 %v3793_v60  ;;  %239 = vmax.xlane.f32.xlu1 %v238_v62 }
  0xbf   : > { %3589 = vmatmul.msk.f32.vlgmr.msra.gmra.mxu2 %vm141_vm0, %v498_v32 }
  0xc0   : > { %743 = vmatpush.msra.mxu3 %v3792_v63 }
  0xc2   : > { %744 = vmatpush.msra.mxu3 %v3788_v9  ;;  %v4489_v17 = vpop.permute.xlu1 %944 }
  0xc3   : > { %v4487_v15 = vpop.permute.xlu0 %942 }
  0xc4   : > { %745 = vmatpush.msra.mxu3 %v3787_v13  ;;  %v4493_v20 = vpop.f32.mrf.mxu0 }
  0xc5   : > { %v241_v21 = vsel %vm231_vm1, %v4493_v20, -inf }
  0xc6   : > { %242 = vmax.xlane.f32.xlu1 %v241_v21 }
  0xc7   : > { %3590 = vmatmul.msk.f32.gmra.mxu2 %vm141_vm0, %v4416_v28 }
  0xca   : > { %v951_v23 = vpop.permute.xlu1 %950 }
  0xcb   : > { %v949_v22 = vpop.permute.xlu0 %948 }
  0xcc   : > { %v4499_v32 = vpop.f32.mrf.mxu0 }
  0xcd   : > { %v244_v33 = vsel %vm231_vm1, %v4499_v32, -inf }
  0xce   : > { %245 = vmax.xlane.f32.xlu2 %v244_v33 }
  0xcf   : > { %3591 = vmatmul.msk.f32.gmra.mxu2 %vm141_vm0, %v4438_v31  ;;  %1375 = vrot.lane.b32.xlu0 %v4302_v11, %s4217_s14 }
  0xd2   : > { %v957_v39 = vpop.permute.xlu1 %956 }
  0xd3   : > { %v955_v37 = vpop.permute.xlu0 %954 }
  0xd4   : > { %v4509_v28 = vpop.f32.mrf.mxu0 }
  0xd5   : > { %v247_v40 = vsel %vm231_vm1, %v4509_v28, -inf }
  0xd6   : > { %248 = vmax.xlane.f32.xlu2 %v247_v40 }
  0xd7   : > { %3592 = vmatmul.msk.f32.gmra.mxu2 %vm141_vm0, %v4424_v29  ;;  %1381 = vrot.lane.b32.xlu0 %v4299_v10, %s4217_s14  ;;  %v959_v29 = vpop.permute.xlu2 %958 }
  0xda   : > { %v963_v42 = vpop.permute.xlu1 %962 }
  0xdb   : > { %v961_v31 = vpop.permute.xlu0 %960  ;;  %3605 = vmatpush.xpose.msk.msrb.mxu1 %vm141_vm0, %v963_v42 }
  0xdc   : > { %v4541_v52 = vpop.f32.mrf.mxu0 }
  0xdd   : > { %v250_v54 = vsel %vm231_vm1, %v4541_v52, -inf }
  0xdf   : > { %3593 = vmatmul.msk.f32.gmra.mxu2 %vm141_vm0, %v4450_v35  ;;  %1387 = vrot.lane.b32.xlu0 %v4264_v3, %s4217_s14  ;;  %v3816_v47 = vpop.permute.xlu2 %3815 }
  0xe0   : > { %1379 = vrot.lane.b32.xlu1 %v4319_v16, %s4217_s14  ;;  %3606 = vmatpush.xpose.msk.msrb.mxu1 %vm141_vm0, %v961_v31 }
  0xe2   : > { %v3811_v48 = vpop.permute.xlu1 %3810 }
  0xe3   : > { %v3806_v43 = vpop.permute.xlu0 %3805  ;;  %v3813_v49 = vunpack.i.h.bf16 %v3811_v48  ;;  %v3812_v51 = vunpack.i.l.bf16 %v3811_v48 }
  0xe4   : > { %3607 = vmatpush.xpose.msk.msrb.mxu1 %vm141_vm0, %v959_v29  ;;  %v4545_v55 = vpop.f32.mrf.mxu0 }
  0xe5   : > { %v253_v56 = vsel %vm231_vm1, %v4545_v55, -inf }
  0xe7   : > { %3594 = vmatmul.msk.f32.gmra.mxu2 %vm141_vm0, %v4446_v34  ;;  %v3818_v34 = vunpack.i.h.bf16 %v3816_v47  ;;  %v4549_v60 = vpop.permute.xlu2 %1359 }
  0xe8   : > { %1385 = vrot.lane.b32.xlu1 %v4274_v5, %s4217_s14  ;;  %3608 = vmatpush.xpose.msk.msrb.mxu1 %vm141_vm0, %v957_v39  ;;  %v3817_v5 = vunpack.i.l.bf16 %v3816_v47 }
  0xea   : > { %v4553_v62 = vpop.permute.xlu1 %1361 }
  0xeb   : > { %v3821_v35 = vpop.permute.xlu0 %3820 }
  0xec   : > { %v3823_v44 = vunpack.i.h.bf16 %v3821_v35  ;;  %v3822_v45 = vunpack.i.l.bf16 %v3821_v35  ;;  %3609 = vmatpush.xpose.msk.msrb.mxu1 %vm141_vm0, %v955_v37 }
  0xee   : > { %1165 = vmatpush.msrb.mxu3 %v3823_v44  ;;  %1389 = vrot.lane.b32.xlu2 %v4249_v0, %s4217_s14  ;;  %v3807_v0 = vunpack.i.l.bf16 %v3806_v43 }
  0xef   : > { %3595 = vmatmul.msk.f32.gmra.mxu2 %vm141_vm0, %v4432_v30  ;;  %v3808_v30 = vunpack.i.h.bf16 %v3806_v43  ;;  %v4555_v63 = vpop.permute.xlu2 %1365 }
  0xf0   : > { %1166 = vmatpush.msrb.mxu3 %v3822_v45  ;;  %3610 = vmatpush.xpose.msk.msrb.mxu1 %vm141_vm0, %v953_v41 }
  0xf2   : > { %1167 = vmatpush.msrb.mxu3 %v3818_v34  ;;  %v4559_v13 = vpop.permute.xlu1 %1367 }
  0xf4   : > { %1168 = vmatpush.msrb.mxu3 %v3817_v5  ;;  %3611 = vmatpush.xpose.msk.msrb.mxu1 %vm141_vm0, %v951_v23 }
  0xf6   : > { %1169 = vmatpush.msrb.mxu3 %v3813_v49 }
  0xf7   : > { %3596 = vmatmul.msk.f32.gmra.mxu2 %vm141_vm0, %v4454_v38  ;;  %v4551_v38 = vpop.permute.xlu0 %1363  ;;  %v4561_v21 = vpop.permute.xlu2 %1371 }
  0xf8   : > { %1170 = vmatpush.msrb.mxu3 %v3812_v51  ;;  %3612 = vmatpush.xpose.msk.msrb.mxu1 %vm141_vm0, %v949_v22 }
  0xfa   : > { %1171 = vmatpush.msrb.mxu3 %v3808_v30  ;;  %v4564_v37 = vpop.permute.xlu1 %1373 }
  0xfc   : > { %1172 = vmatpush.msrb.mxu3 %v3807_v0 }
  0xff   : > { %v4557_v9 = vpop.permute.xlu0 %1369  ;;  %v1378_v41 = vpop.permute.xlu2 %1377 }
 0x107   : > { %v1384_v45 = vpop.permute.xlu2 %1383 }
 0x109   : > { %251 = vmax.xlane.f32.xlu0 %v250_v54 }
 0x112   : > { %254 = vmax.xlane.f32.xlu1 %v253_v56 }
 0x126   : > { %v234_v22 = vpop.xlane.xlu0 %233 }
 0x127   : > { %v256_v23 = vsub.f32 %v4462_v46, %v234_v22 }
 0x129   : > { %v264_v33 = vmul.f32 1.442695, %v256_v23 }
 0x12b   : > { %3924 = vpow2.f32 %v264_v33 }
 0x12e   : > { %v237_v39 = vpop.xlane.xlu0 %236 }
 0x12f   : > { %v257_v40 = vsub.f32 %v4470_v53, %v237_v39 }
 0x131   : > { %v3925_v31 = vpop.eup %3924  ;;  %v266_v42 = vmul.f32 1.442695, %v257_v40  ;;  %v240_v29 = vpop.xlane.xlu1 %239 }
 0x132   : > { %3573 = vmatmul.msk.f32.vlgmr.msra.gmra.mxu1 %vm231_vm1, %v3925_v31  ;;  %v280_v43 = vsel %vm231_vm1, %v3925_v31, 0.0  ;;  %v258_v35 = vsub.f32 %v4482_v61, %v240_v29 }
 0x133   : > { %3926 = vpow2.f32 %v266_v42  ;;  %281 = vadd.xlane.f32.xlu2 %v280_v43 }
 0x134   : > { %v268_v46 = vmul.f32 1.442695, %v258_v35 }
 0x136   : > { %3928 = vpow2.f32 %v268_v46 }
 0x139   : > { %v4570_v44 = vpop.eup %3926  ;;  %v243_v53 = vpop.xlane.xlu1 %242 }
 0x13a   : > { %3574 = vmatmul.msk.f32.gmra.mxu1 %vm231_vm1, %v4570_v44  ;;  %v259_v47 = vsub.f32 %v4493_v20, %v243_v53 }
 0x13c   : > { %v270_v34 = vmul.f32 1.442695, %v259_v47  ;;  %v4575_v48 = vpop.eup %3928 }
 0x13e   : > { %3930 = vpow2.f32 %v270_v34 }
 0x141   : > { %v246_v61 = vpop.xlane.xlu2 %245  ;;  %v1376_v30 = vpop.permute.xlu0 %1375 }
 0x142   : > { %3575 = vmatmul.msk.f32.gmra.mxu1 %vm231_vm1, %v4575_v48  ;;  %v4579_v5 = vpop.f32.mrf.mxu2  ;;  %v260_v49 = vsub.f32 %v4499_v32, %v246_v61 }
 0x143   : > { %v602_v51 = vsel %vm231_vm1, %v4579_v5, -inf }
 0x144   : > { %603 = vmax.xlane.f32.xlu1 %v602_v51  ;;  %v272_v0 = vmul.f32 1.442695, %v260_v49  ;;  %v4584_v54 = vpop.eup %3930 }
 0x146   : > { %3932 = vpow2.f32 %v272_v0 }
 0x149   : > { %v249_v20 = vpop.xlane.xlu2 %248  ;;  %v1382_v22 = vpop.permute.xlu0 %1381 }
 0x14a   : > { %3576 = vmatmul.msk.f32.gmra.mxu1 %vm231_vm1, %v4584_v54  ;;  %v261_v56 = vsub.f32 %v4509_v28, %v249_v20 }
 0x14c   : > { %v274_v23 = vmul.f32 1.442695, %v261_v56  ;;  %v4589_v33 = vpop.eup %3932 }
 0x14e   : > { %3934 = vpow2.f32 %v274_v23 }
 0x151   : > { %v1390_v39 = vpop.permute.xlu2 %1389  ;;  %v1388_v40 = vpop.permute.xlu0 %1387 }
 0x152   : > { %v1380_v32 = vpop.permute.xlu1 %1379  ;;  %3577 = vmatmul.msk.f32.gmra.mxu1 %vm231_vm1, %v4589_v33  ;;  %3629 = vmatpush.xpose.msk.msrb.mxu0 %vm141_vm0, %v1390_v39 }
 0x154   : > { %v4595_v31 = vpop.eup %3934 }
 0x156   : > { %3630 = vmatpush.xpose.msk.msrb.mxu0 %vm141_vm0, %v1388_v40 }
 0x15a   : > { %v1386_v42 = vpop.permute.xlu1 %1385  ;;  %3578 = vmatmul.msk.f32.gmra.mxu1 %vm231_vm1, %v4595_v31 }
 0x15b   : > { %3631 = vmatpush.xpose.msk.msrb.mxu0 %vm141_vm0, %v1386_v42 }
 0x15f   : > { %3632 = vmatpush.xpose.msk.msrb.mxu0 %vm141_vm0, %v1384_v45 }
 0x163   : > { %3633 = vmatpush.xpose.msk.msrb.mxu0 %vm141_vm0, %v1382_v22 }
 0x167   : > { %3634 = vmatpush.xpose.msk.msrb.mxu0 %vm141_vm0, %v1380_v32 }
 0x16b   : > { %3635 = vmatpush.xpose.msk.msrb.mxu0 %vm141_vm0, %v1378_v41 }
 0x16f   : > { %3636 = vmatpush.xpose.msk.msrb.mxu0 %vm141_vm0, %v1376_v30 }
 0x172   : > { %3637 = vmatmul.msk.f32.vlgmr.msrb.gmra.mxu0 %vm141_vm0, %v4549_v60 }
 0x17a   : > { %3638 = vmatmul.msk.f32.gmra.mxu0 %vm141_vm0, %v4553_v62 }
 0x17c   : > { %v252_v28 = vpop.xlane.xlu0 %251 }
 0x17d   : > { %v262_v29 = vsub.f32 %v4541_v52, %v252_v28 }
 0x17f   : > { %v276_v43 = vmul.f32 1.442695, %v262_v29  ;;  %v289_v29 = vsel %vm231_vm1, %v4584_v54, 0.0 }
 0x181   : > { %3936 = vpow2.f32 %v276_v43 }
 0x182   : > { %3639 = vmatmul.msk.f32.gmra.mxu0 %vm141_vm0, %v4551_v38 }
 0x185   : > { %v255_v35 = vpop.xlane.xlu1 %254 }
 0x186   : > { %v263_v46 = vsub.f32 %v4545_v55, %v255_v35 }
 0x187   : > { %v4613_v41 = vpop.eup %3936 }
 0x188   : > { %v278_v45 = vmul.f32 1.442695, %v263_v46  ;;  %3579 = vmatmul.msk.f32.gmra.mxu1 %vm231_vm1, %v4613_v41 }
 0x18a   : > { %3938 = vpow2.f32 %v278_v45  ;;  %3640 = vmatmul.msk.f32.gmra.mxu0 %vm141_vm0, %v4555_v63 }
 0x190   : > { %v4619_v60 = vpop.eup %3938 }
 0x191   : > { %3580 = vmatmul.msk.f32.gmra.mxu1 %vm231_vm1, %v4619_v60 }
 0x192   : > { %3641 = vmatmul.msk.f32.gmra.mxu0 %vm141_vm0, %v4559_v13 }
 0x199   : > { %3613 = vmatmul.msk.f32.vlgmr.msrb.gmra.mxu1 %vm141_vm0, %v4467_v50 }
 0x19a   : > { %3642 = vmatmul.msk.f32.gmra.mxu0 %vm141_vm0, %v4557_v9 }
 0x1a1   : > { %3614 = vmatmul.msk.f32.gmra.mxu1 %vm141_vm0, %v4475_v57 }
 0x1a2   : > { %3643 = vmatmul.msk.f32.gmra.mxu0 %vm141_vm0, %v4561_v21 }
 0x1a6   : > { %v282_v52 = vpop.xlane.xlu2 %281 }
 0x1a7   : > { %3940 = vrcp.f32 %v282_v52  ;;  %v380_v62 = vand.u32 2147483648, %v282_v52  ;;  %v378_v57 = vand.u32 2147483647, %v282_v52  ;;  %vm374_vm3 = vweird.f32 %v282_v52 }
 0x1a9   : > { %3615 = vmatmul.msk.f32.gmra.mxu1 %vm141_vm0, %v4477_v58  ;;  %v381_v13 = vor.u32 1.1754944e-38, %v380_v62  ;;  %vm379_vm5 = vcmp.eq.f32.partialorder %v378_v57, 8.507059e+37 }
 0x1aa   : > { %3644 = vmatmul.msk.f32.gmra.mxu0 %vm141_vm0, %v4564_v37 }
 0x1ad   : > { %v3941_v55 = vpop.eup %3940 }
 0x1ae   : > { %v370_v50 = vmul.f32 %v3941_v55, %v282_v52  ;;  %vm375_vm2 = vweird.f32 %v3941_v55 }
 0x1af   : > { %vm376_vm4 = vmor %vm374_vm3, %vm375_vm2  ;;  %v345_v58 = vpop.f32.mrf.mxu1 }
 0x1b0   : > { %v371_v38 = vsub.f32 1.0, %v370_v50 }
 0x1b1   : > { %3616 = vmatmul.msk.f32.gmra.mxu1 %vm141_vm0, %v4479_v59 }
 0x1b2   : > { %v372_v63 = vmul.f32 %v3941_v55, %v371_v38 }
 0x1b4   : > { %v373_v9 = vadd.f32 %v3941_v55, %v372_v63  ;;  %v298_v63 = vsel %vm231_vm1, %v4613_v41, 0.0 }
 0x1b6   : > { %v377_v21 = vsel %vm376_vm4, %v3941_v55, %v373_v9 }
 0x1b7   : > { %v382_v37 = vsel %vm379_vm5, %v381_v13, %v377_v21  ;;  %v604_v53 = vpop.xlane.xlu1 %603  ;;  %v301_v13 = vsel %vm231_vm1, %v4619_v60, 0.0  ;;  %v4740_v41 = vpop.f32.mrf.mxu1 }
 0x1b8   : > { %v383_v59 = vmul.f32 %v382_v37, %v345_v58  ;;  %v626_v47 = vsub.f32 %v4579_v5, %v604_v53  ;;  %v4660_v5 = vpop.f32.mrf.mxu2 }
 0x1b9   : > { %3617 = vmatmul.msk.f32.gmra.mxu1 %vm141_vm0, %v4491_v18  ;;  %v605_v20 = vsel %vm231_vm1, %v4660_v5, -inf }
 0x1ba   : > { %489 = vst.msk [vmem:[%s4643_s18] sm:$0xff] %vm141_vm0, %v383_v59  ;;  %v634_v34 = vmul.f32 1.442695, %v626_v47 }
 0x1bc   : > { %3942 = vpow2.f32 %v634_v34 }
 0x1c0   : > { %v4662_v18 = vpop.f32.mrf.mxu2 }
 0x1c1   : > { %3618 = vmatmul.msk.f32.gmra.mxu1 %vm141_vm0, %v4487_v15  ;;  %v608_v39 = vsel %vm231_vm1, %v4662_v18, -inf }
 0x1c2   : > { %v4652_v61 = vpop.eup %3942 }
 0x1c3   : > { %3597 = vmatmul.msk.f32.vlgmr.msra.gmra.mxu3 %vm231_vm1, %v4652_v61 }
 0x1c8   : > { %v4670_v30 = vpop.f32.mrf.mxu2 }
 0x1c9   : > { %3619 = vmatmul.msk.f32.gmra.mxu1 %vm141_vm0, %v4489_v17  ;;  %v611_v22 = vsel %vm231_vm1, %v4670_v30, -inf }
 0x1d0   : > { %v4684_v23 = vpop.f32.mrf.mxu2 }
 0x1d1   : > { %3620 = vmatmul.msk.f32.gmra.mxu1 %vm141_vm0, %v4503_v36  ;;  %v286_v36 = vsel %vm231_vm1, %v4575_v48, 0.0  ;;  %v283_v48 = vsel %vm231_vm1, %v4570_v44, 0.0  ;;  %v295_v44 = vsel %vm231_vm1, %v4595_v31, 0.0  ;;  %v614_v45 = vsel %vm231_vm1, %v4684_v23, -inf }
 0x1d2   : > { %v292_v31 = vsel %vm231_vm1, %v4589_v33, 0.0 }
 0x1d8   : > { %v4694_v42 = vpop.f32.mrf.mxu2 }
 0x1d9   : > { %v617_v50 = vsel %vm231_vm1, %v4694_v42, -inf }
 0x1e0   : > { %v4704_v35 = vpop.f32.mrf.mxu2 }
 0x1e1   : > { %v620_v54 = vsel %vm231_vm1, %v4704_v35, -inf }
 0x1e8   : > { %v4728_v33 = vpop.f32.mrf.mxu2 }
 0x1e9   : > { %v623_v9 = vsel %vm231_vm1, %v4728_v33, -inf }
 0x1ef   : > { %v4664_v49 = vpop.f32.mrf.mxu0 }
 0x1f0   : > { %v1464_v15 = vsel %vm231_vm1, %v4664_v49, -inf }
 0x1f1   : > { %1465 = vmax.xlane.f32.xlu1 %v1464_v15 }
 0x1f7   : > { %v4668_v51 = vpop.f32.mrf.mxu0 }
 0x1f8   : > { %v1467_v17 = vsel %vm231_vm1, %v4668_v51, -inf }
 0x1f9   : > { %1468 = vmax.xlane.f32.xlu0 %v1467_v17  ;;  %287 = vadd.xlane.f32.xlu1 %v286_v36 }
 0x1ff   : > { %v4676_v0 = vpop.f32.mrf.mxu0 }
 0x200   : > { %v1470_v56 = vsel %vm231_vm1, %v4676_v0, -inf }
 0x201   : > { %606 = vmax.xlane.f32.xlu0 %v605_v20  ;;  %1471 = vmax.xlane.f32.xlu2 %v1470_v56 }
 0x202   : > { %612 = vmax.xlane.f32.xlu1 %v611_v22 }
 0x207   : > { %v4686_v32 = vpop.f32.mrf.mxu0 }
 0x208   : > { %v1473_v40 = vsel %vm231_vm1, %v4686_v32, -inf }
 0x209   : > { %284 = vadd.xlane.f32.xlu0 %v283_v48  ;;  %609 = vmax.xlane.f32.xlu2 %v608_v39 }
 0x20a   : > { %1474 = vmax.xlane.f32.xlu1 %v1473_v40 }
 0x20f   : > { %v4696_v28 = vpop.f32.mrf.mxu0 }
 0x210   : > { %v1476_v43 = vsel %vm231_vm1, %v4696_v28, -inf }
 0x211   : > { %290 = vadd.xlane.f32.xlu2 %v289_v29  ;;  %1477 = vmax.xlane.f32.xlu0 %v1476_v43 }
 0x212   : > { %296 = vadd.xlane.f32.xlu1 %v295_v44 }
 0x217   : > { %v4706_v46 = vpop.f32.mrf.mxu0 }
 0x218   : > { %v1479_v52 = vsel %vm231_vm1, %v4706_v46, -inf }
 0x219   : > { %615 = vmax.xlane.f32.xlu0 %v614_v45  ;;  %1480 = vmax.xlane.f32.xlu2 %v1479_v52 }
 0x21a   : > { %621 = vmax.xlane.f32.xlu1 %v620_v54 }
 0x21f   : > { %v4714_v55 = vpop.f32.mrf.mxu0 }
 0x220   : > { %v1482_v38 = vsel %vm231_vm1, %v4714_v55, -inf }
 0x221   : > { %293 = vadd.xlane.f32.xlu0 %v292_v31  ;;  %618 = vmax.xlane.f32.xlu2 %v617_v50 }
 0x222   : > { %1483 = vmax.xlane.f32.xlu1 %v1482_v38 }
 0x227   : > { %v4722_v62 = vpop.f32.mrf.mxu0 }
 0x228   : > { %v1485_v57 = vsel %vm231_vm1, %v4722_v62, -inf }
 0x229   : > { %299 = vadd.xlane.f32.xlu2 %v298_v63  ;;  %1486 = vmax.xlane.f32.xlu0 %v1485_v57 }
 0x231   : > { %624 = vmax.xlane.f32.xlu0 %v623_v9 }
 0x239   : > { %302 = vadd.xlane.f32.xlu0 %v301_v13 }
 0x23b   : > { %3835 = vrot.lane.b32.xlu1 %v4354_v25, %s4217_s14  ;;  %v351_v25 = vpop.f32.mrf.mxu1 }
 0x241   : > { %3830 = vrot.lane.b32.xlu2 %v4366_v27, %s4217_s14 }
 0x243   : > { %1786 = vrot.lane.b32.xlu1 %v4255_v2, %s4218_s19  ;;  %v4758_v2 = vpop.f32.mrf.mxu1 }
 0x249   : > { %1788 = vrot.lane.b32.xlu2 %v4267_v4, %s4218_s19 }
 0x24b   : > { %1792 = vrot.lane.b32.xlu1 %v4283_v8, %s4218_s19 }
 0x24d   : > { %3825 = vrot.lane.b32.xlu0 %v4352_v24, %s4217_s14 }
 0x251   : > { %1794 = vrot.lane.b32.xlu2 %v4280_v7, %s4218_s19  ;;  %v4766_v7 = vpop.f32.mrf.mxu1 }
 0x253   : > { %1798 = vrot.lane.b32.xlu1 %v4309_v14, %s4218_s19 }
 0x255   : > { %3840 = vrot.lane.b32.xlu0 %v4364_v26, %s4217_s14 }
 0x259   : > { %1800 = vrot.lane.b32.xlu2 %v4305_v12, %s4218_s19  ;;  %v4770_v12 = vpop.f32.mrf.mxu1 }
 0x25b   : > { %1804 = vrot.lane.b32.xlu1 %v4328_v19, %s4218_s19 }
 0x25d   : > { %1790 = vrot.lane.b32.xlu0 %v4252_v1, %s4218_s19 }
 0x261   : > { %1806 = vrot.lane.b32.xlu2 %v4319_v16, %s4218_s19  ;;  %v4779_v59 = vpop.f32.mrf.mxu1 }
 0x264   : > { %v1466_v4 = vpop.xlane.xlu1 %1465 }
 0x265   : > { %1796 = vrot.lane.b32.xlu0 %v4277_v6, %s4218_s19 }
 0x269   : > { %v4792_v43 = vpop.f32.mrf.mxu1 }
 0x26c   : > { %v1469_v8 = vpop.xlane.xlu0 %1468  ;;  %v288_v14 = vpop.xlane.xlu1 %287 }
 0x26d   : > { %3944 = vrcp.f32 %v288_v14  ;;  %1802 = vrot.lane.b32.xlu0 %v4302_v11, %s4218_s19  ;;  %v1489_v1 = vsub.f32 %v4668_v51, %v1469_v8  ;;  %v1488_v11 = vsub.f32 %v4664_v49, %v1466_v4  ;;  %v410_v53 = vand.u32 2147483648, %v288_v14 }
 0x26e   : > { %v408_v47 = vand.u32 2147483647, %v288_v14  ;;  %vm404_vm7 = vweird.f32 %v288_v14 }
 0x26f   : > { %v1498_v21 = vmul.f32 1.442695, %v1489_v1 }
 0x270   : > { %vm409_vm9 = vcmp.eq.f32.partialorder %v408_v47, 8.507059e+37 }
 0x273   : > { %v3945_v19 = vpop.eup %3944 }
 0x274   : > { %v400_v24 = vmul.f32 %v3945_v19, %v288_v14  ;;  %v607_v26 = vpop.xlane.xlu0 %606  ;;  %v4773_v16 = vpop.xlane.xlu2 %1471  ;;  %vm405_vm6 = vweird.f32 %v3945_v19 }
 0x275   : > { %v627_v27 = vsub.f32 %v4660_v5, %v607_v26  ;;  %v613_v6 = vpop.xlane.xlu1 %612  ;;  %1808 = vrot.lane.b32.xlu0 %v4299_v10, %s4218_s19  ;;  %vm406_vm8 = vmor %vm404_vm7, %vm405_vm6  ;;  %v1496_v5 = vmul.f32 1.442695, %v1488_v11  ;;  %v411_v10 = vor.u32 1.1754944e-38, %v410_v53  ;;  %v650_v53 = vsel %vm231_vm1, %v4652_v61, 0.0 }
 0x276   : > { %v401_v60 = vsub.f32 1.0, %v400_v24  ;;  %v629_v40 = vsub.f32 %v4670_v30, %v613_v6 }
 0x277   : > { %v636_v58 = vmul.f32 1.442695, %v627_v27  ;;  %v4816_v27 = vpop.f32.mrf.mxu1 }
 0x278   : > { %v402_v37 = vmul.f32 %v3945_v19, %v401_v60  ;;  %v640_v30 = vmul.f32 1.442695, %v629_v40 }
 0x279   : > { %3946 = vpow2.f32 %v636_v58 }
 0x27a   : > { %v403_v34 = vadd.f32 %v3945_v19, %v402_v37  ;;  %3948 = vpow2.f32 %v1498_v21 }
 0x27c   : > { %v407_v15 = vsel %vm406_vm8, %v3945_v19, %v403_v34  ;;  %v285_v51 = vpop.xlane.xlu0 %284  ;;  %v610_v17 = vpop.xlane.xlu2 %609 }
 0x27d   : > { %3950 = vrcp.f32 %v285_v51  ;;  %v4781_v49 = vpop.xlane.xlu1 %1474  ;;  %1814 = vrot.lane.b32.xlu0 %v4264_v3, %s4218_s19  ;;  %v628_v36 = vsub.f32 %v4662_v18, %v610_v17  ;;  %v412_v20 = vsel %vm409_vm9, %v411_v10, %v407_v15  ;;  %v395_v63 = vand.u32 2147483648, %v285_v51 }
 0x27e   : > { %v413_v22 = vmul.f32 %v412_v20, %v351_v25  ;;  %3952 = vpow2.f32 %v1496_v5  ;;  %v393_v57 = vand.u32 2147483647, %v285_v51  ;;  %vm389_vm11 = vweird.f32 %v285_v51 }
 0x27f   : > { %v3947_v56 = vpop.eup %3946  ;;  %v638_v48 = vmul.f32 1.442695, %v628_v36  ;;  %v396_v14 = vor.u32 1.1754944e-38, %v395_v63  ;;  %v1490_v20 = vsub.f32 %v4676_v0, %v4773_v16  ;;  %v4847_v0 = vpop.f32.mrf.mxu1 }
 0x280   : > { %3598 = vmatmul.msk.f32.gmra.mxu3 %vm231_vm1, %v3947_v56  ;;  %v4787_v39 = vpop.eup %3948  ;;  %491 = vst.msk [vmem:[%s4643_s18 + $0x10] sm:$0xff] %vm141_vm0, %v413_v22  ;;  %v653_v26 = vsel %vm231_vm1, %v3947_v56, 0.0  ;;  %vm394_vm13 = vcmp.eq.f32.partialorder %v393_v57, 8.507059e+37 }
 0x281   : > { %3954 = vpow2.f32 %v638_v48  ;;  %v1515_v45 = vsel %vm231_vm1, %v4787_v39, 0.0 }
 0x283   : > { %v3951_v29 = vpop.eup %3950 }
 0x284   : > { %v385_v3 = vmul.f32 %v3951_v29, %v285_v51  ;;  %v4794_v44 = vpop.xlane.xlu2 %290  ;;  %v4796_v18 = vpop.xlane.xlu0 %1477  ;;  %vm390_vm10 = vweird.f32 %v3951_v29 }
 0x285   : > { %3956 = vrcp.f32 %v4794_v44  ;;  %1516 = vadd.xlane.f32.xlu1 %v1515_v45  ;;  %v4801_v52 = vpop.xlane.xlu1 %296  ;;  %v4803_v54 = vpop.eup %3952  ;;  %vm391_vm12 = vmor %vm389_vm11, %vm390_vm10  ;;  %v423_v15 = vand.u32 2147483647, %v4794_v44  ;;  %v425_v10 = vand.u32 2147483648, %v4794_v44  ;;  %vm419_vm2 = vweird.f32 %v4794_v44 }
 0x286   : > { %v386_v31 = vsub.f32 1.0, %v385_v3  ;;  %3958 = vrcp.f32 %v4801_v52  ;;  %v1512_v9 = vsel %vm231_vm1, %v4803_v54, 0.0  ;;  %v455_v51 = vand.u32 2147483648, %v4801_v52 }
 0x287   : > { %v4806_v50 = vpop.eup %3954  ;;  %3960 = vpow2.f32 %v640_v30  ;;  %vm449_vm4 = vweird.f32 %v4801_v52  ;;  %v426_v22 = vor.u32 1.1754944e-38, %v425_v10  ;;  %vm424_vm6 = vcmp.eq.f32.partialorder %v423_v15, 8.507059e+37  ;;  %v4180_v10 = vld [vmem:[%s4246_s11 + $0x68] sm:$0xff] }
 0x288   : > { %v387_v38 = vmul.f32 %v3951_v29, %v386_v31  ;;  %3599 = vmatmul.msk.f32.gmra.mxu3 %vm231_vm1, %v4806_v50  ;;  %v456_v3 = vor.u32 1.1754944e-38, %v455_v51 }
 0x28a   : > { %v388_v13 = vadd.f32 %v3951_v29, %v387_v38  ;;  %1513 = vadd.xlane.f32.xlu2 %v1512_v9  ;;  %v1500_v38 = vmul.f32 1.442695, %v1490_v20  ;;  %v4181_v20 = vld [vmem:[%s4246_s11 + $0x80] sm:$0xff] }
 0x28b   : > { %v3957_v25 = vpop.eup %3956 }
 0x28c   : > { %v3959_v4 = vpop.eup %3958  ;;  %v392_v8 = vsel %vm391_vm12, %v3951_v29, %v388_v13  ;;  %v415_v19 = vmul.f32 %v3957_v25, %v4794_v44  ;;  %v616_v1 = vpop.xlane.xlu0 %615  ;;  %vm420_vm14 = vweird.f32 %v3957_v25 }
 0x28d   : > { %v4813_v24 = vpop.xlane.xlu2 %1480  ;;  %v445_v6 = vmul.f32 %v3959_v4, %v4801_v52  ;;  %v630_v60 = vsub.f32 %v4684_v23, %v616_v1  ;;  %654 = vadd.xlane.f32.xlu1 %v653_v26  ;;  %v397_v58 = vsel %vm394_vm13, %v396_v14, %v392_v8  ;;  %v4823_v34 = vpop.eup %3960  ;;  %vm450_vm15 = vweird.f32 %v3959_v4  ;;  %vm4834_vm3 = vmor %vm419_vm2, %vm420_vm14 }
 0x28e   : > { %v416_v21 = vsub.f32 1.0, %v415_v19  ;;  %v398_v47 = vmul.f32 %v397_v58, %v4740_v41  ;;  %v453_v41 = vand.u32 2147483647, %v4801_v52  ;;  %vm451_vm5 = vmor %vm449_vm4, %vm450_vm15  ;;  %v622_v16 = vpop.xlane.xlu1 %621  ;;  %v4862_v26 = vpop.f32.mrf.mxu1  ;;  %v1493_v58 = vsub.f32 %v4706_v46, %v4813_v24 }
 0x28f   : > { %v446_v11 = vsub.f32 1.0, %v445_v6  ;;  %v642_v37 = vmul.f32 1.442695, %v630_v60 }
 0x290   : > { %v417_v5 = vmul.f32 %v3957_v25, %v416_v21  ;;  %3600 = vmatmul.msk.f32.gmra.mxu3 %vm231_vm1, %v4823_v34  ;;  %490 = vst.msk [vmem:[%s4643_s18 + $0x8] sm:$0xff] %vm141_vm0, %v398_v47  ;;  %vm454_vm7 = vcmp.eq.f32.partialorder %v453_v41, 8.507059e+37  ;;  %v1506_v24 = vmul.f32 1.442695, %v1493_v58 }
 0x291   : > { %v447_v23 = vmul.f32 %v3959_v4, %v446_v11  ;;  %3962 = vpow2.f32 %v642_v37 }
 0x292   : > { %v418_v61 = vadd.f32 %v3957_v25, %v417_v5  ;;  %651 = vadd.xlane.f32.xlu2 %v650_v53 }
 0x293   : > { %v448_v36 = vadd.f32 %v3959_v4, %v447_v23 }
 0x294   : > { %v422_v56 = vsel %vm4834_vm3, %v3957_v25, %v418_v61  ;;  %v294_v48 = vpop.xlane.xlu0 %293 }
 0x295   : > { %v619_v40 = vpop.xlane.xlu2 %618  ;;  %v452_v29 = vsel %vm451_vm5, %v3959_v4, %v448_v36  ;;  %3964 = vrcp.f32 %v294_v48  ;;  %v427_v45 = vsel %vm424_vm6, %v426_v22, %v422_v56  ;;  %v440_v14 = vand.u32 2147483648, %v294_v48 }
 0x296   : > { %v631_v44 = vsub.f32 %v4694_v42, %v619_v40  ;;  %v428_v30 = vmul.f32 %v427_v45, %v4758_v2  ;;  %v457_v31 = vsel %vm454_vm7, %v456_v3, %v452_v29  ;;  %v632_v42 = vsub.f32 %v4704_v35, %v622_v16 }
 0x297   : > { %v4845_v52 = vpop.eup %3962  ;;  %v458_v57 = vmul.f32 %v457_v31, %v4770_v12  ;;  %v438_v12 = vand.u32 2147483647, %v294_v48  ;;  %vm434_vm9 = vweird.f32 %v294_v48  ;;  %v441_v21 = vor.u32 1.1754944e-38, %v440_v14 }
 0x298   : > { %v644_v63 = vmul.f32 1.442695, %v631_v44  ;;  %3601 = vmatmul.msk.f32.gmra.mxu3 %vm231_vm1, %v4845_v52  ;;  %492 = vst.msk [vmem:[%s4643_s18 + $0x18] sm:$0xff] %vm141_vm0, %v428_v30  ;;  %v646_v4 = vmul.f32 1.442695, %v632_v42  ;;  %v656_v40 = vsel %vm231_vm1, %v4806_v50, 0.0 }
 0x299   : > { %494 = vst.msk [vmem:[%s4643_s18 + $0x28] sm:$0xff] %vm141_vm0, %v458_v57  ;;  %vm439_vm11 = vcmp.eq.f32.partialorder %v438_v12, 8.507059e+37 }
 0x29a   : > { %3966 = vpow2.f32 %v644_v63 }
 0x29b   : > { %v3965_v9 = vpop.eup %3964  ;;  %3968 = vpow2.f32 %v1500_v38 }
 0x29c   : > { %v430_v13 = vmul.f32 %v3965_v9, %v294_v48  ;;  %v4858_v2 = vpop.xlane.xlu0 %1486  ;;  %vm435_vm8 = vweird.f32 %v3965_v9 }
 0x29d   : > { %v300_v25 = vpop.xlane.xlu2 %299  ;;  %vm436_vm10 = vmor %vm434_vm9, %vm435_vm8 }
 0x29e   : > { %3970 = vrcp.f32 %v300_v25  ;;  %v431_v8 = vsub.f32 1.0, %v430_v13  ;;  %v470_v17 = vand.u32 2147483648, %v300_v25  ;;  %vm464_vm13 = vweird.f32 %v300_v25 }
 0x29f   : > { %3972 = vpow2.f32 %v646_v4  ;;  %v1492_v4 = vsub.f32 %v4696_v28, %v4796_v18  ;;  %v1040_v28 = vsel %vm231_vm1, %v4847_v0, -inf }
 0x2a0   : > { %v4860_v19 = vpop.eup %3966  ;;  %v432_v1 = vmul.f32 %v3965_v9, %v431_v8  ;;  %v471_v22 = vor.u32 1.1754944e-38, %v470_v17 }
 0x2a1   : > { %3602 = vmatmul.msk.f32.gmra.mxu3 %vm231_vm1, %v4860_v19  ;;  %v4866_v35 = vpop.eup %3968  ;;  %v665_v8 = vsel %vm231_vm1, %v4860_v19, 0.0 }
 0x2a2   : > { %v433_v6 = vadd.f32 %v3965_v9, %v432_v1  ;;  %v1518_v23 = vsel %vm231_vm1, %v4866_v35, 0.0 }
 0x2a4   : > { %v3971_v60 = vpop.eup %3970  ;;  %v437_v11 = vsel %vm436_vm10, %v3965_v9, %v433_v6  ;;  %v625_v53 = vpop.xlane.xlu0 %624  ;;  %v1491_v6 = vsub.f32 %v4686_v32, %v4781_v49  ;;  %v1495_v49 = vsub.f32 %v4722_v62, %v4858_v2 }
 0x2a5   : > { %v460_v37 = vmul.f32 %v3971_v60, %v300_v25  ;;  %v633_v47 = vsub.f32 %v4728_v33, %v625_v53  ;;  %v442_v5 = vsel %vm439_vm11, %v441_v21, %v437_v11  ;;  %v4876_v46 = vpop.eup %3972  ;;  %vm465_vm12 = vweird.f32 %v3971_v60  ;;  %v3831_v53 = vpop.permute.xlu2 %3830 }
 0x2a6   : > { %1810 = vrot.lane.b32.xlu1 %v4180_v10, %s4218_s19  ;;  %v443_v51 = vmul.f32 %v442_v5, %v4766_v7  ;;  %v468_v33 = vand.u32 2147483647, %v300_v25  ;;  %v4884_v7 = vpop.f32.mrf.mxu1  ;;  %vm466_vm14 = vmor %vm464_vm13, %vm465_vm12  ;;  %v1504_v21 = vmul.f32 1.442695, %v1492_v4  ;;  %v1502_v58 = vmul.f32 1.442695, %v1491_v6 }
 0x2a7   : > { %v461_v15 = vsub.f32 1.0, %v460_v37  ;;  %v648_v61 = vmul.f32 1.442695, %v633_v47  ;;  %1519 = vadd.xlane.f32.xlu0 %v1518_v23  ;;  %v3833_v10 = vunpack.i.h.bf16 %v3831_v53 }
 0x2a8   : > { %493 = vst.msk [vmem:[%s4643_s18 + $0x20] sm:$0xff] %vm141_vm0, %v443_v51  ;;  %vm469_vm15 = vcmp.eq.f32.partialorder %v468_v33, 8.507059e+37 }
 0x2a9   : > { %v462_v41 = vmul.f32 %v3971_v60, %v461_v15  ;;  %3974 = vpow2.f32 %v648_v61  ;;  %3603 = vmatmul.msk.f32.gmra.mxu3 %vm231_vm1, %v4876_v46  ;;  %v3832_v61 = vunpack.i.l.bf16 %v3831_v53 }
 0x2aa   : > { %1812 = vrot.lane.b32.xlu2 %v4181_v20, %s4218_s19  ;;  %3976 = vpow2.f32 %v1506_v24 }
 0x2ab   : > { %v463_v36 = vadd.f32 %v3971_v60, %v462_v41  ;;  %v1510_v41 = vmul.f32 1.442695, %v1495_v49 }
 0x2ac   : > { %v303_v48 = vpop.xlane.xlu0 %302 }
 0x2ad   : > { %v467_v56 = vsel %vm466_vm14, %v3971_v60, %v463_v36  ;;  %3978 = vrcp.f32 %v303_v48  ;;  %v485_v63 = vand.u32 2147483648, %v303_v48  ;;  %vm479_vm3 = vweird.f32 %v303_v48  ;;  %v1484_v60 = vpop.xlane.xlu1 %1483 }
 0x2ae   : > { %v472_v29 = vsel %vm469_vm15, %v471_v22, %v467_v56  ;;  %v4897_v31 = vpop.f32.mrf.mxu1  ;;  %3980 = vpow2.f32 %v1504_v21  ;;  %v1494_v24 = vsub.f32 %v4714_v55, %v1484_v60  ;;  %v662_v56 = vsel %vm231_vm1, %v4845_v52, 0.0 }
 0x2af   : > { %v4888_v3 = vpop.eup %3974  ;;  %657 = vadd.xlane.f32.xlu0 %v656_v40  ;;  %v473_v44 = vmul.f32 %v472_v29, %v4779_v59  ;;  %v483_v59 = vand.u32 2147483647, %v303_v48  ;;  %v486_v9 = vor.u32 1.1754944e-38, %v485_v63  ;;  %3982 = vpow2.f32 %v1502_v58 }
 0x2b0   : > { %v4895_v45 = vpop.eup %3976  ;;  %v1049_v5 = vsel %vm231_vm1, %v4897_v31, -inf  ;;  %v1508_v36 = vmul.f32 1.442695, %v1494_v24  ;;  %3984 = vpow2.f32 %v1510_v41  ;;  %v659_v55 = vsel %vm231_vm1, %v4823_v34, 0.0 }
 0x2b1   : > { %3604 = vmatmul.msk.f32.gmra.mxu3 %vm231_vm1, %v4888_v3  ;;  %495 = vst.msk [vmem:[%s4643_s18 + $0x30] sm:$0xff] %vm141_vm0, %v473_v44  ;;  %v1527_v50 = vsel %vm231_vm1, %v4895_v45, 0.0  ;;  %vm484_vm5 = vcmp.eq.f32.partialorder %v483_v59, 8.507059e+37  ;;  %v671_v29 = vsel %vm231_vm1, %v4888_v3, 0.0  ;;  %v1043_v34 = vsel %vm231_vm1, %v4862_v26, -inf }
 0x2b2   : > { %3986 = vpow2.f32 %v1508_v36 }
 0x2b3   : > { %v3979_v16 = vpop.eup %3978 }
 0x2b4   : > { %v475_v30 = vmul.f32 %v3979_v16, %v303_v48  ;;  %vm480_vm2 = vweird.f32 %v3979_v16  ;;  %v3981_v47 = vpop.eup %3980 }
 0x2b5   : > { %vm481_vm4 = vmor %vm479_vm3, %vm480_vm2  ;;  %v3836_v37 = vpop.permute.xlu1 %3835  ;;  %v3983_v23 = vpop.eup %3982  ;;  %v1524_v51 = vsel %vm231_vm1, %v3981_v47, 0.0 }
 0x2b6   : > { %v476_v38 = vsub.f32 1.0, %v475_v30  ;;  %v4906_v1 = vpop.f32.mrf.mxu1  ;;  %v3838_v32 = vunpack.i.h.bf16 %v3836_v37  ;;  %v3837_v15 = vunpack.i.l.bf16 %v3836_v37  ;;  %v1521_v17 = vsel %vm231_vm1, %v3983_v23, 0.0  ;;  %v3985_v22 = vpop.eup %3984 }
 0x2b7   : > { %1528 = vadd.xlane.f32.xlu0 %v1527_v50  ;;  %v1533_v40 = vsel %vm231_vm1, %v3985_v22, 0.0 }
 0x2b8   : > { %v477_v57 = vmul.f32 %v3979_v16, %v476_v38  ;;  %v3987_v48 = vpop.eup %3986 }
 0x2b9   : > { %v1530_v52 = vsel %vm231_vm1, %v3987_v48, 0.0 }
 0x2ba   : > { %v478_v42 = vadd.f32 %v3979_v16, %v477_v57 }
 0x2bc   : > { %v482_v13 = vsel %vm481_vm4, %v3979_v16, %v478_v42  ;;  %v4960_v16 = vld [vmem:[%s4246_s11 + $0xb0] sm:$0xff] }
 0x2bd   : > { %v487_v25 = vsel %vm484_vm5, %v486_v9, %v482_v13  ;;  %v4957_v44 = vpop.permute.xlu1 %1786 }
 0x2be   : > { %v488_v14 = vmul.f32 %v487_v25, %v4792_v43  ;;  %v4914_v11 = vpop.f32.mrf.mxu1 }
 0x2bf   : > { %666 = vadd.xlane.f32.xlu0 %v665_v8  ;;  %v3826_v12 = vpop.permute.xlu0 %3825  ;;  %v1055_v3 = vsel %vm231_vm1, %v4914_v11, -inf  ;;  %v1052_v8 = vsel %vm231_vm1, %v4906_v1, -inf }
 0x2c0   : > { %496 = vst.msk [vmem:[%s4643_s18 + $0x38] sm:$0xff] %vm141_vm0, %v488_v14  ;;  %v3828_v62 = vunpack.i.h.bf16 %v3826_v12  ;;  %v3827_v33 = vunpack.i.l.bf16 %v3826_v12 }
 0x2c6   : > { %v4923_v2 = vpop.f32.mrf.mxu1 }
 0x2c7   : > { %1041 = vmax.xlane.f32.xlu0 %v1040_v28  ;;  %v3841_v18 = vpop.permute.xlu0 %3840  ;;  %v1058_v20 = vsel %vm231_vm1, %v4923_v2, -inf }
 0x2c8   : > { %v3843_v19 = vunpack.i.h.bf16 %v3841_v18  ;;  %v3842_v43 = vunpack.i.l.bf16 %v3841_v18 }
 0x2ca   : > { %1592 = vmatpush.msrb.mxu2 %v3843_v19 }
 0x2cc   : > { %1593 = vmatpush.msrb.mxu2 %v3842_v43 }
 0x2ce   : > { %1594 = vmatpush.msrb.mxu2 %v3838_v32 }
 0x2cf   : > { %1050 = vmax.xlane.f32.xlu0 %v1049_v5  ;;  %v4967_v38 = vpop.permute.xlu0 %1790 }
 0x2d0   : > { %1525 = vadd.xlane.f32.xlu1 %v1524_v51  ;;  %1595 = vmatpush.msrb.mxu2 %v3837_v15 }
 0x2d2   : > { %1596 = vmatpush.msrb.mxu2 %v3833_v10 }
 0x2d3   : > { %1522 = vadd.xlane.f32.xlu2 %v1521_v17 }
 0x2d4   : > { %1597 = vmatpush.msrb.mxu2 %v3832_v61 }
 0x2d6   : > { %1598 = vmatpush.msrb.mxu2 %v3828_v62 }
 0x2d7   : > { %1059 = vmax.xlane.f32.xlu0 %v1058_v20  ;;  %v4974_v63 = vpop.permute.xlu0 %1796 }
 0x2d8   : > { %663 = vadd.xlane.f32.xlu1 %v662_v56  ;;  %1599 = vmatpush.msrb.mxu2 %v3827_v33 }
 0x2d9   : > { %3645 = vmatmul.msk.f32.vlgmr.msrb.gmra.mxu2 %vm231_vm1, %v4803_v54  ;;  %v668_v54 = vsel %vm231_vm1, %v4876_v46, 0.0  ;;  %v4953_v46 = vpop.permute.xlu2 %1788 }
 0x2db   : > { %660 = vadd.xlane.f32.xlu2 %v659_v55 }
 0x2df   : > { %v4980_v42 = vpop.permute.xlu0 %1802 }
 0x2e0   : > { %1534 = vadd.xlane.f32.xlu1 %v1533_v40 }
 0x2e1   : > { %3646 = vmatmul.msk.f32.gmra.mxu2 %vm231_vm1, %v4787_v39  ;;  %v1037_v39 = vsel %vm231_vm1, %v4816_v27, -inf  ;;  %v4965_v30 = vpop.permute.xlu2 %1794 }
 0x2e3   : > { %1531 = vadd.xlane.f32.xlu2 %v1530_v52 }
 0x2e7   : > { %v4984_v25 = vpop.permute.xlu0 %1808 }
 0x2e8   : > { %672 = vadd.xlane.f32.xlu1 %v671_v29 }
 0x2e9   : > { %3647 = vmatmul.msk.f32.gmra.mxu2 %vm231_vm1, %v4866_v35  ;;  %v1046_v35 = vsel %vm231_vm1, %v4884_v7, -inf  ;;  %v4972_v50 = vpop.permute.xlu2 %1800 }
 0x2eb   : > { %669 = vadd.xlane.f32.xlu2 %v668_v54 }
 0x2ef   : > { %v4992_v12 = vpop.permute.xlu0 %1814 }
 0x2f0   : > { %1044 = vmax.xlane.f32.xlu1 %v1043_v34 }
 0x2f1   : > { %3648 = vmatmul.msk.f32.gmra.mxu2 %vm231_vm1, %v3983_v23  ;;  %v4978_v59 = vpop.permute.xlu2 %1806 }
 0x2f3   : > { %1038 = vmax.xlane.f32.xlu2 %v1037_v39 }
 0x2f9   : > { %3649 = vmatmul.msk.f32.gmra.mxu2 %vm231_vm1, %v3981_v47 }
 0x2fb   : > { %1047 = vmax.xlane.f32.xlu2 %v1046_v35 }
 0x2fd   : > { %v1514_v13 = vpop.xlane.xlu2 %1513 }
 0x2fe   : > { %3988 = vrcp.f32 %v1514_v13  ;;  %v1636_v36 = vand.u32 2147483648, %v1514_v13  ;;  %vm1630_vm7 = vweird.f32 %v1514_v13  ;;  %v1634_v56 = vand.u32 2147483647, %v1514_v13 }
 0x300   : > { %v1637_v52 = vor.u32 1.1754944e-38, %v1636_v36  ;;  %vm1635_vm9 = vcmp.eq.f32.partialorder %v1634_v56, 8.507059e+37 }
 0x301   : > { %3650 = vmatmul.msk.f32.gmra.mxu2 %vm231_vm1, %v4895_v45  ;;  %v4970_v45 = vpop.permute.xlu1 %1792 }
 0x303   : > { %1056 = vmax.xlane.f32.xlu2 %v1055_v3 }
 0x304   : > { %v3989_v28 = vpop.eup %3988 }
 0x305   : > { %v4990_v14 = vpop.xlane.xlu2 %651  ;;  %v1626_v43 = vmul.f32 %v3989_v28, %v1514_v13  ;;  %vm1631_vm6 = vweird.f32 %v3989_v28 }
 0x306   : > { %3990 = vrcp.f32 %v4990_v14  ;;  %vm1632_vm8 = vmor %vm1630_vm7, %vm1631_vm6  ;;  %vm776_vm12 = vweird.f32 %v4990_v14 }
 0x307   : > { %v1627_v32 = vsub.f32 1.0, %v1626_v43  ;;  %v780_v43 = vand.u32 2147483647, %v4990_v14 }
 0x309   : > { %1816 = vrot.lane.b32.xlu1 %v4960_v16, %s4218_s19  ;;  %3651 = vmatmul.msk.f32.gmra.mxu2 %vm231_vm1, %v3987_v48  ;;  %v4976_v57 = vpop.permute.xlu1 %1798  ;;  %v1628_v10 = vmul.f32 %v3989_v28, %v1627_v32  ;;  %vm781_vm2 = vcmp.eq.f32.partialorder %v780_v43, 8.507059e+37 }
 0x30b   : > { %v1629_v17 = vadd.f32 %v3989_v28, %v1628_v10 }
 0x30c   : > { %v5010_v53 = vpop.eup %3990 }
 0x30d   : > { %v4996_v60 = vpop.permute.xlu2 %1812  ;;  %v772_v5 = vmul.f32 %v5010_v53, %v4990_v14  ;;  %v1633_v40 = vsel %vm1632_vm8, %v3989_v28, %v1629_v17  ;;  %vm777_vm10 = vweird.f32 %v5010_v53 }
 0x30e   : > { %v1638_v3 = vsel %vm1635_vm9, %v1637_v52, %v1633_v40  ;;  %vm778_vm14 = vmor %vm776_vm12, %vm777_vm10 }
 0x30f   : > { %v773_v51 = vsub.f32 1.0, %v772_v5 }
 0x311   : > { %3652 = vmatmul.msk.f32.gmra.mxu2 %vm231_vm1, %v3985_v22  ;;  %v4982_v9 = vpop.permute.xlu1 %1804  ;;  %v774_v55 = vmul.f32 %v5010_v53, %v773_v51 }
 0x313   : > { %v775_v54 = vadd.f32 %v5010_v53, %v774_v55 }
 0x315   : > { %v779_v17 = vsel %vm778_vm14, %v5010_v53, %v775_v54 }
 0x319   : > { %v4986_v4 = vpop.xlane.xlu1 %1516 }
 0x31a   : > { %v5000_v58 = vpop.xlane.xlu0 %1519  ;;  %3992 = vrcp.f32 %v4986_v4  ;;  %vm1645_vm13 = vweird.f32 %v4986_v4  ;;  %v1651_v10 = vand.u32 2147483648, %v4986_v4 }
 0x31b   : > { %vm1660_vm8 = vweird.f32 %v5000_v58 }
 0x320   : > { %v5012_v47 = vpop.eup %3992 }
 0x321   : > { %v4994_v6 = vpop.xlane.xlu1 %654  ;;  %v1641_v15 = vmul.f32 %v5012_v47, %v4986_v4  ;;  %vm1646_vm11 = vweird.f32 %v5012_v47 }
 0x322   : > { %v5008_v37 = vpop.xlane.xlu0 %657  ;;  %3994 = vrcp.f32 %v4994_v6  ;;  %vm5066_vm15 = vmor %vm1645_vm13, %vm1646_vm11  ;;  %vm791_vm5 = vweird.f32 %v4994_v6  ;;  %v795_v52 = vand.u32 2147483647, %v4994_v6 }
 0x323   : > { %3996 = vrcp.f32 %v5000_v58  ;;  %v1642_v41 = vsub.f32 1.0, %v1641_v15  ;;  %vm806_vm13 = vweird.f32 %v5008_v37 }
 0x324   : > { %3998 = vrcp.f32 %v5008_v37  ;;  %vm796_vm10 = vcmp.eq.f32.partialorder %v795_v52, 8.507059e+37 }
 0x325   : > { %v1643_v22 = vmul.f32 %v5012_v47, %v1642_v41 }
 0x327   : > { %v1644_v13 = vadd.f32 %v5012_v47, %v1643_v22  ;;  %v747_v22 = vpop.f32.mrf.mxu3 }
 0x328   : > { %v5024_v61 = vpop.eup %3994 }
 0x329   : > { %v4998_v21 = vpop.permute.xlu1 %1810  ;;  %v5028_v62 = vpop.eup %3996  ;;  %v787_v20 = vmul.f32 %v5024_v61, %v4994_v6  ;;  %v1648_v56 = vsel %vm5066_vm15, %v5012_v47, %v1644_v13  ;;  %vm792_vm3 = vweird.f32 %v5024_v61 }
 0x32a   : > { %v5026_v24 = vpop.xlane.xlu0 %1528  ;;  %v1656_v48 = vmul.f32 %v5028_v62, %v5000_v58  ;;  %v5041_v34 = vpop.eup %3998  ;;  %vm1661_vm6 = vweird.f32 %v5028_v62  ;;  %vm5081_vm7 = vmor %vm791_vm5, %vm792_vm3 }
 0x32b   : > { %v788_v29 = vsub.f32 1.0, %v787_v20  ;;  %v802_v41 = vmul.f32 %v5041_v34, %v5008_v37  ;;  %vm1662_vm9 = vmor %vm1660_vm8, %vm1661_vm6  ;;  %vm807_vm12 = vweird.f32 %v5041_v34 }
 0x32c   : > { %v1657_v32 = vsub.f32 1.0, %v1656_v48  ;;  %v1652_v48 = vor.u32 1.1754944e-38, %v1651_v10  ;;  %v1666_v10 = vand.u32 2147483648, %v5000_v58  ;;  %vm808_vm14 = vmor %vm806_vm13, %vm807_vm12 }
 0x32d   : > { %v789_v51 = vmul.f32 %v5024_v61, %v788_v29  ;;  %v803_v53 = vsub.f32 1.0, %v802_v41  ;;  %v797_v29 = vand.u32 2147483648, %v4994_v6 }
 0x32e   : > { %v1658_v55 = vmul.f32 %v5028_v62, %v1657_v32  ;;  %v1664_v32 = vand.u32 2147483647, %v5000_v58 }
 0x32f   : > { %v804_v41 = vmul.f32 %v5041_v34, %v803_v53 }
 0x330   : > { %v1659_v13 = vadd.f32 %v5028_v62, %v1658_v55  ;;  %vm1665_vm11 = vcmp.eq.f32.partialorder %v1664_v32, 8.507059e+37 }
 0x331   : > { %v805_v58 = vadd.f32 %v5041_v34, %v804_v41 }
 0x332   : > { %v5050_v5 = vpop.xlane.xlu0 %666 }
 0x333   : > { %1053 = vmax.xlane.f32.xlu1 %v1052_v8  ;;  %v782_v8 = vand.u32 2147483648, %v4990_v14  ;;  %v1649_v14 = vand.u32 2147483647, %v4986_v4  ;;  %v790_v4 = vadd.f32 %v5024_v61, %v789_v51 }
 0x335   : > { %v783_v20 = vor.u32 1.1754944e-38, %v782_v8  ;;  %vm1650_vm4 = vcmp.eq.f32.partialorder %v1649_v14, 8.507059e+37  ;;  %v794_v6 = vsel %vm5081_vm7, %v5024_v61, %v790_v4  ;;  %v798_v14 = vor.u32 1.1754944e-38, %v797_v29 }
 0x336   : > { %v1653_v47 = vsel %vm1650_vm4, %v1652_v48, %v1648_v56  ;;  %v1663_v61 = vsel %vm1662_vm9, %v5028_v62, %v1659_v13  ;;  %v1667_v56 = vor.u32 1.1754944e-38, %v1666_v10  ;;  %v810_v62 = vand.u32 2147483647, %v5008_v37 }
 0x337   : > { %v784_v40 = vsel %vm781_vm2, %v783_v20, %v779_v17  ;;  %v750_v20 = vpop.f32.mrf.mxu3  ;;  %vm923_vm2 = vcmask 261248  }
 0x338   : > { %v1668_v48 = vsel %vm1665_vm11, %v1667_v56, %v1663_v61  ;;  %vm811_vm15 = vcmp.eq.f32.partialorder %v810_v62, 8.507059e+37 }
 0x33a   : > { %v1042_v17 = vpop.xlane.xlu0 %1041 }
 0x33b   : > { %v1062_v55 = vsub.f32 %v4847_v0, %v1042_v17  ;;  %v809_v0 = vsel %vm808_vm14, %v5041_v34, %v805_v58 }
 0x33d   : > { %v1071_v52 = vmul.f32 1.442695, %v1062_v55 }
 0x343   : > { %v5006_v19 = vpop.xlane.xlu1 %1525 }
 0x344   : > { %vm1690_vm7 = vweird.f32 %v5006_v19 }
 0x346   : > { %v5003_v18 = vpop.xlane.xlu2 %1522 }
 0x347   : > { %vm1675_vm4 = vweird.f32 %v5003_v18 }
 0x34b   : > { %v5022_v23 = vpop.xlane.xlu1 %663 }
 0x34e   : > { %v5015_v49 = vpop.xlane.xlu2 %660 }
 0x34f   : > { %vm821_vm11 = vweird.f32 %v5015_v49 }
 0x353   : > { %v5043_v39 = vpop.xlane.xlu1 %1534 }
 0x356   : > { %v5031_v33 = vpop.xlane.xlu2 %1531 }
 0x35c   : > { %v1601_v35 = vpop.f32.mrf.mxu2 }
 0x35d   : > { %v1639_v28 = vmul.f32 %v1638_v3, %v1601_v35  ;;  %v785_v3 = vmul.f32 %v784_v40, %v747_v22  ;;  %v812_v40 = vand.u32 2147483648, %v5008_v37 }
 0x35e   : > { %v5052_v15 = vpop.xlane.xlu2 %669 }
 0x35f   : > { %1753 = vrot.lane.b32.xlu2 %v1639_v28, %s4219_s20  ;;  %v5085_v28 = vpop.xlane.xlu1 %672 }
 0x364   : > { %v1604_v54 = vpop.f32.mrf.mxu2 }
 0x365   : > { %v1654_v35 = vmul.f32 %v1653_v47, %v1604_v54  ;;  %v813_v54 = vor.u32 1.1754944e-38, %v812_v40 }
 0x366   : > { %v1039_v43 = vpop.xlane.xlu2 %1038 }
 0x367   : > { %v1061_v51 = vsub.f32 %v4816_v27, %v1039_v43  ;;  %899 = vrot.lane.b32.xlu2 %v785_v3, %s4220_s21  ;;  %1755 = vrot.lane.b32.xlu0 %v1654_v35, %s4219_s20  ;;  %v799_v27 = vsel %vm796_vm10, %v798_v14, %v794_v6  ;;  %v1045_v29 = vpop.xlane.xlu1 %1044  ;;  %v814_v35 = vsel %vm811_vm15, %v813_v54, %v809_v0  ;;  %v753_v3 = vpop.f32.mrf.mxu3  ;;  %vm836_vm15 = vweird.f32 %v5022_v23 }
 0x368   : > { %v800_v4 = vmul.f32 %v799_v27, %v750_v20  ;;  %v1063_v37 = vsub.f32 %v4862_v26, %v1045_v29  ;;  %v815_v13 = vmul.f32 %v814_v35, %v753_v3 }
 0x369   : > { %v1069_v36 = vmul.f32 1.442695, %v1061_v51  ;;  %v1051_v51 = vpop.xlane.xlu0 %1050 }
 0x36a   : > { %v1073_v8 = vmul.f32 1.442695, %v1063_v37  ;;  %v1065_v41 = vsub.f32 %v4897_v31, %v1051_v51 }
 0x36b   : > { %4000 = vpow2.f32 %v1069_v36 }
 0x36c   : > { %v1607_v22 = vpop.f32.mrf.mxu2  ;;  %4002 = vpow2.f32 %v1071_v52 }
 0x36d   : > { %v1669_v53 = vmul.f32 %v1668_v48, %v1607_v22  ;;  %4004 = vpow2.f32 %v1073_v8 }
 0x36e   : > { %v1048_v43 = vpop.xlane.xlu2 %1047 }
 0x36f   : > { %901 = vrot.lane.b32.xlu0 %v800_v4, %s4220_s21  ;;  %1757 = vrot.lane.b32.xlu1 %v1669_v53, %s4219_s20  ;;  %v1064_v34 = vsub.f32 %v4884_v7, %v1048_v43  ;;  %v1077_v7 = vmul.f32 1.442695, %v1065_v41 }
 0x371   : > { %v5109_v47 = vpop.eup %4000  ;;  %v1075_v6 = vmul.f32 1.442695, %v1064_v34  ;;  %v1060_v17 = vpop.xlane.xlu0 %1059  ;;  %v1679_v34 = vand.u32 2147483647, %v5003_v18 }
 0x372   : > { %3621 = vmatmul.msk.f32.vlgmr.msrb.gmra.mxu3 %vm231_vm1, %v5109_v47  ;;  %v5115_v32 = vpop.eup %4002 }
 0x373   : > { %v5123_v26 = vpop.eup %4004  ;;  %4006 = vpow2.f32 %v1075_v6  ;;  %vm1680_vm8 = vcmp.eq.f32.partialorder %v1679_v34, 8.507059e+37 }
 0x374   : > { %4008 = vpow2.f32 %v1077_v7  ;;  %v1610_v29 = vpop.f32.mrf.mxu2 }
 0x377   : > { %903 = vrot.lane.b32.xlu1 %v815_v13, %s4220_s21  ;;  %v1681_v13 = vand.u32 2147483648, %v5003_v18 }
 0x379   : > { %v5132_v14 = vpop.eup %4006  ;;  %v1682_v7 = vor.u32 1.1754944e-38, %v1681_v13 }
 0x37a   : > { %3622 = vmatmul.msk.f32.gmra.mxu3 %vm231_vm1, %v5115_v32  ;;  %v5140_v31 = vpop.eup %4008 }
 0x37b   : > { %v1817_v10 = vpop.permute.xlu1 %1816 }
 0x37c   : > { %3653 = vmatpush.xpose.msk.msra.mxu1 %vm141_vm0, %v1817_v10 }
 0x380   : > { %3654 = vmatpush.xpose.msk.msra.mxu1 %vm141_vm0, %v4992_v12  ;;  %v1057_v12 = vpop.xlane.xlu2 %1056 }
 0x382   : > { %3623 = vmatmul.msk.f32.gmra.mxu3 %vm231_vm1, %v5123_v26 }
 0x384   : > { %3655 = vmatpush.xpose.msk.msra.mxu1 %vm141_vm0, %v4996_v60 }
 0x388   : > { %3656 = vmatpush.xpose.msk.msra.mxu1 %vm141_vm0, %v4998_v21  ;;  %v1067_v21 = vsub.f32 %v4914_v11, %v1057_v12 }
 0x38a   : > { %3624 = vmatmul.msk.f32.gmra.mxu3 %vm231_vm1, %v5132_v14 }
 0x38c   : > { %3657 = vmatpush.xpose.msk.msra.mxu1 %vm141_vm0, %v4984_v25 }
 0x390   : > { %3658 = vmatpush.xpose.msk.msra.mxu1 %vm141_vm0, %v4978_v59 }
 0x392   : > { %3625 = vmatmul.msk.f32.gmra.mxu3 %vm231_vm1, %v5140_v31 }
 0x394   : > { %3659 = vmatpush.xpose.msk.msra.mxu1 %vm141_vm0, %v4982_v9  ;;  %v1081_v9 = vmul.f32 1.442695, %v1067_v21 }
 0x398   : > { %3660 = vmatpush.xpose.msk.msra.mxu1 %vm141_vm0, %v4980_v42 }
 0x39b   : > { %3661 = vmatmul.msk.f32.vlgmr.msra.gmra.mxu1 %vm141_vm0, %v4957_v44 }
 0x3a3   : > { %3662 = vmatmul.msk.f32.gmra.mxu1 %vm141_vm0, %v4953_v46  ;;  %v1068_v46 = vsub.f32 %v4923_v2, %v1060_v17  ;;  %v827_v17 = vand.u32 2147483648, %v5015_v49 }
 0x3a6   : > { %v1054_v25 = vpop.xlane.xlu1 %1053 }
 0x3a7   : > { %v1066_v59 = vsub.f32 %v4906_v1, %v1054_v25  ;;  %v1083_v1 = vmul.f32 1.442695, %v1068_v46  ;;  %v1694_v25 = vand.u32 2147483647, %v5006_v19 }
 0x3a9   : > { %v1079_v60 = vmul.f32 1.442695, %v1066_v59  ;;  %v1696_v59 = vand.u32 2147483648, %v5006_v19  ;;  %vm1695_vm14 = vcmp.eq.f32.partialorder %v1694_v25, 8.507059e+37  ;;  %v857_v25 = vand.u32 2147483648, %v5050_v5 }
 0x3ab   : > { %4010 = vpow2.f32 %v1079_v60  ;;  %3663 = vmatmul.msk.f32.gmra.mxu1 %vm141_vm0, %v4967_v38 }
 0x3ac   : > { %4012 = vpow2.f32 %v1081_v9 }
 0x3ad   : > { %4014 = vpow2.f32 %v1083_v1  ;;  %v825_v1 = vand.u32 2147483647, %v5015_v49 }
 0x3ae   : > { %4016 = vrcp.f32 %v5003_v18 }
 0x3af   : > { %4018 = vrcp.f32 %v5006_v19 }
 0x3b0   : > { %4020 = vrcp.f32 %v5015_v49 }
 0x3b1   : > { %v5156_v42 = vpop.eup %4010  ;;  %4022 = vrcp.f32 %v5022_v23 }
 0x3b2   : > { %3626 = vmatmul.msk.f32.gmra.mxu3 %vm231_vm1, %v5156_v42  ;;  %v5163_v11 = vpop.eup %4012  ;;  %4024 = vrcp.f32 %v5026_v24 }
 0x3b3   : > { %3664 = vmatmul.msk.f32.gmra.mxu1 %vm141_vm0, %v4970_v45  ;;  %v5171_v2 = vpop.eup %4014  ;;  %4026 = vrcp.f32 %v5050_v5 }
 0x3b4   : > { %4028 = vrcp.f32 %v5031_v33 }
 0x3b5   : > { %4030 = vrcp.f32 %v5043_v39 }
 0x3b6   : > { %4032 = vrcp.f32 %v5052_v15 }
 0x3b7   : > { %4034 = vrcp.f32 %v5085_v28 }
 0x3b9   : > { %v5165_v44 = vpop.permute.xlu2 %1753 }
 0x3ba   : > { %3627 = vmatmul.msk.f32.gmra.mxu3 %vm231_vm1, %v5163_v11 }
 0x3bb   : > { %3665 = vmatmul.msk.f32.gmra.mxu1 %vm141_vm0, %v4965_v30 }
 0x3c1   : > { %v900_v38 = vpop.permute.xlu2 %899 }
 0x3c2   : > { %3628 = vmatmul.msk.f32.gmra.mxu3 %vm231_vm1, %v5171_v2  ;;  %924 = vst.msk [vmem:[%s4643_s18] sm:$0xff] %vm923_vm2, %v900_v38  ;;  %v756_v38 = vpop.f32.mrf.mxu3 }
 0x3c3   : > { %3666 = vmatmul.msk.f32.gmra.mxu1 %vm141_vm0, %v4974_v63 }
 0x3cb   : > { %3667 = vmatmul.msk.f32.gmra.mxu1 %vm141_vm0, %v4976_v57  ;;  %v4017_v57 = vpop.eup %4016 }
 0x3cc   : > { %v1671_v20 = vmul.f32 %v4017_v57, %v5003_v18  ;;  %v5199_v27 = vpop.eup %4018  ;;  %vm1676_vm3 = vweird.f32 %v4017_v57 }
 0x3cd   : > { %v5202_v56 = vpop.eup %4020  ;;  %v1686_v55 = vmul.f32 %v5199_v27, %v5006_v19  ;;  %vm1677_vm5 = vmor %vm1675_vm4, %vm1676_vm3  ;;  %vm1691_vm6 = vweird.f32 %v5199_v27  ;;  %vm826_vm3 = vcmp.eq.f32.partialorder %v825_v1, 8.507059e+37 }
 0x3ce   : > { %v1672_v58 = vsub.f32 1.0, %v1671_v20  ;;  %v817_v40 = vmul.f32 %v5202_v56, %v5015_v49  ;;  %v5212_v4 = vpop.eup %4022  ;;  %vm822_vm9 = vweird.f32 %v5202_v56  ;;  %vm5241_vm10 = vmor %vm1690_vm7, %vm1691_vm6  ;;  %vm1705_vm7 = vweird.f32 %v5026_v24 }
 0x3cf   : > { %v1687_v62 = vsub.f32 1.0, %v1686_v55  ;;  %v832_v52 = vmul.f32 %v5212_v4, %v5022_v23  ;;  %v5220_v3 = vpop.eup %4024  ;;  %vm5251_vm12 = vmor %vm821_vm11, %vm822_vm9  ;;  %vm837_vm13 = vweird.f32 %v5212_v4  ;;  %v842_v55 = vand.u32 2147483648, %v5022_v23 }
 0x3d0   : > { %v1673_v53 = vmul.f32 %v4017_v57, %v1672_v58  ;;  %v818_v0 = vsub.f32 1.0, %v817_v40  ;;  %v1701_v6 = vmul.f32 %v5220_v3, %v5026_v24  ;;  %v5239_v60 = vpop.eup %4026  ;;  %vm838_vm4 = vmor %vm836_vm15, %vm837_vm13  ;;  %vm1706_vm6 = vweird.f32 %v5220_v3 }
 0x3d1   : > { %v1688_v35 = vmul.f32 %v5199_v27, %v1687_v62  ;;  %v833_v43 = vsub.f32 1.0, %v832_v52  ;;  %v847_v49 = vmul.f32 %v5239_v60, %v5050_v5  ;;  %vm851_vm11 = vweird.f32 %v5050_v5 }
 0x3d2   : > { %v1674_v54 = vadd.f32 %v4017_v57, %v1673_v53  ;;  %v819_v10 = vmul.f32 %v5202_v56, %v818_v0  ;;  %v840_v53 = vand.u32 2147483647, %v5022_v23  ;;  %v759_v23 = vpop.f32.mrf.mxu3 }
 0x3d3   : > { %3668 = vmatmul.msk.f32.gmra.mxu1 %vm141_vm0, %v4972_v50  ;;  %v1689_v41 = vadd.f32 %v5199_v27, %v1688_v35  ;;  %v834_v18 = vmul.f32 %v5212_v4, %v833_v43  ;;  %v848_v0 = vsub.f32 1.0, %v847_v49  ;;  %v1709_v43 = vand.u32 2147483647, %v5026_v24 }
 0x3d4   : > { %v1678_v51 = vsel %vm1677_vm5, %v4017_v57, %v1674_v54  ;;  %v820_v12 = vadd.f32 %v5202_v56, %v819_v10  ;;  %v1702_v57 = vsub.f32 1.0, %v1701_v6  ;;  %vm841_vm5 = vcmp.eq.f32.partialorder %v840_v53, 8.507059e+37 }
 0x3d5   : > { %v1683_v21 = vsel %vm1680_vm8, %v1682_v7, %v1678_v51  ;;  %v1693_v19 = vsel %vm5241_vm10, %v5199_v27, %v1689_v41  ;;  %v835_v27 = vadd.f32 %v5212_v4, %v834_v18  ;;  %vm1707_vm8 = vmor %vm1705_vm7, %vm1706_vm6  ;;  %vm1710_vm9 = vcmp.eq.f32.partialorder %v1709_v43, 8.507059e+37 }
 0x3d6   : > { %v1684_v46 = vmul.f32 %v1683_v21, %v1610_v29  ;;  %v824_v20 = vsel %vm5251_vm12, %v5202_v56, %v820_v12  ;;  %v1703_v62 = vmul.f32 %v5220_v3, %v1702_v57  ;;  %v843_v29 = vor.u32 1.1754944e-38, %v842_v55 }
 0x3d7   : > { %v839_v56 = vsel %vm838_vm4, %v5212_v4, %v835_v27  ;;  %v849_v4 = vmul.f32 %v5239_v60, %v848_v0  ;;  %vm852_vm10 = vweird.f32 %v5239_v60  ;;  %v858_v18 = vor.u32 1.1754944e-38, %v857_v25 }
 0x3d8   : > { %v1704_v35 = vadd.f32 %v5220_v3, %v1703_v62  ;;  %v844_v13 = vsel %vm841_vm5, %v843_v29, %v839_v56  ;;  %vm853_vm12 = vmor %vm851_vm11, %vm852_vm10  ;;  %v1726_v0 = vand.u32 2147483648, %v5031_v33  ;;  %vm1735_vm5 = vweird.f32 %v5043_v39 }
 0x3d9   : > { %v5183_v45 = vpop.permute.xlu0 %1755  ;;  %v845_v34 = vmul.f32 %v844_v13, %v759_v23  ;;  %v850_v41 = vadd.f32 %v5239_v60, %v849_v4  ;;  %v1724_v13 = vand.u32 2147483647, %v5031_v33  ;;  %v872_v25 = vand.u32 2147483648, %v5052_v15  ;;  %v5400_v23 = vld [vmem:[%s4246_s11 + $0x68] sm:$0xff] }
 0x3da   : > { %v1708_v10 = vsel %vm1707_vm8, %v5220_v3, %v1704_v35  ;;  %v762_v21 = vpop.f32.mrf.mxu3  ;;  %vm866_vm11 = vweird.f32 %v5052_v15 }
 0x3db   : > { %v854_v3 = vsel %vm853_vm12, %v5239_v60, %v850_v41  ;;  %vm881_vm12 = vweird.f32 %v5085_v28 }
 0x3e1   : > { %v902_v30 = vpop.permute.xlu0 %901  ;;  %v5185_v36 = vpop.permute.xlu1 %1757 }
 0x3e2   : > { %925 = vst.msk [vmem:[%s4643_s18 + $0x8] sm:$0xff] %vm923_vm2, %v902_v30  ;;  %v1613_v30 = vpop.f32.mrf.mxu2 }
 0x3e9   : > { %v904_v61 = vpop.permute.xlu1 %903 }
 0x3ea   : > { %926 = vst.msk [vmem:[%s4643_s18 + $0x10] sm:$0xff] %vm923_vm2, %v904_v61  ;;  %v1697_v61 = vor.u32 1.1754944e-38, %v1696_v59  ;;  %v1616_v6 = vpop.f32.mrf.mxu2 }
 0x3ec   : > { %v1698_v58 = vsel %vm1695_vm14, %v1697_v61, %v1693_v19 }
 0x3ed   : > { %v1699_v40 = vmul.f32 %v1698_v58, %v1613_v30 }
 0x3f2   : > { %v1619_v55 = vpop.f32.mrf.mxu2 }
 0x3fa   : > { %v1622_v41 = vpop.f32.mrf.mxu2 }
 0x418   : > { %v5193_v63 = vpop.f32.mrf.mxu1 }
 0x419   : > { %v1891_v50 = vsel %vm231_vm1, %v5193_v63, -inf }
 0x41a   : > { %1892 = vmax.xlane.f32.xlu2 %v1891_v50 }
 0x420   : > { %v5206_v22 = vpop.f32.mrf.mxu1 }
 0x421   : > { %v1894_v48 = vsel %vm231_vm1, %v5206_v22, -inf }
 0x422   : > { %1895 = vmax.xlane.f32.xlu0 %v1894_v48  ;;  %v828_v48 = vor.u32 1.1754944e-38, %v827_v17 }
 0x424   : > { %v829_v52 = vsel %vm826_vm3, %v828_v48, %v824_v20  ;;  %vm1720_vm3 = vweird.f32 %v5031_v33 }
 0x425   : > { %v830_v54 = vmul.f32 %v829_v52, %v756_v38  ;;  %v1739_v52 = vand.u32 2147483647, %v5043_v39 }
 0x427   : > { %vm1740_vm7 = vcmp.eq.f32.partialorder %v1739_v52, 8.507059e+37 }
 0x428   : > { %v5218_v37 = vpop.f32.mrf.mxu1 }
 0x429   : > { %v1897_v8 = vsel %vm231_vm1, %v5218_v37, -inf }
 0x42a   : > { %1898 = vmax.xlane.f32.xlu1 %v1897_v8  ;;  %v1711_v8 = vand.u32 2147483648, %v5026_v24  ;;  %v855_v24 = vand.u32 2147483647, %v5050_v5 }
 0x42c   : > { %v1712_v51 = vor.u32 1.1754944e-38, %v1711_v8  ;;  %vm856_vm13 = vcmp.eq.f32.partialorder %v855_v24, 8.507059e+37 }
 0x42d   : > { %v859_v12 = vsel %vm856_vm13, %v858_v18, %v854_v3 }
 0x42e   : > { %v1713_v7 = vsel %vm1710_vm9, %v1712_v51, %v1708_v10  ;;  %v860_v9 = vmul.f32 %v859_v12, %v762_v21  ;;  %v765_v51 = vpop.f32.mrf.mxu3  ;;  %vm1725_vm9 = vcmp.eq.f32.partialorder %v1724_v13, 8.507059e+37  ;;  %v870_v12 = vand.u32 2147483647, %v5052_v15 }
 0x42f   : > { %v1714_v59 = vmul.f32 %v1713_v7, %v1616_v6 }
 0x430   : > { %v5286_v17 = vpop.f32.mrf.mxu1 }
 0x431   : > { %v1900_v5 = vsel %vm231_vm1, %v5286_v17, -inf }
 0x432   : > { %1759 = vrot.lane.b32.xlu2 %v1684_v46, %s4219_s20  ;;  %v4029_v46 = vpop.eup %4028 }
 0x433   : > { %v4031_v60 = vpop.eup %4030  ;;  %v1716_v1 = vmul.f32 %v4029_v46, %v5031_v33  ;;  %vm1721_vm14 = vweird.f32 %v4029_v46  ;;  %v1727_v33 = vor.u32 1.1754944e-38, %v1726_v0 }
 0x434   : > { %v1731_v38 = vmul.f32 %v4031_v60, %v5043_v39  ;;  %v5300_v61 = vpop.eup %4032  ;;  %vm1736_vm15 = vweird.f32 %v4031_v60  ;;  %vm5317_vm4 = vmor %vm1720_vm3, %vm1721_vm14 }
 0x435   : > { %v5302_v57 = vpop.eup %4034  ;;  %v1717_v50 = vsub.f32 1.0, %v1716_v1  ;;  %v862_v27 = vmul.f32 %v5300_v61, %v5052_v15  ;;  %vm5326_vm6 = vmor %vm1735_vm5, %vm1736_vm15  ;;  %vm867_vm8 = vweird.f32 %v5300_v61  ;;  %vm871_vm15 = vcmp.eq.f32.partialorder %v870_v12, 8.507059e+37 }
 0x436   : > { %1761 = vrot.lane.b32.xlu0 %v1699_v40, %s4219_s20  ;;  %v1732_v20 = vsub.f32 1.0, %v1731_v38  ;;  %v877_v49 = vmul.f32 %v5302_v57, %v5085_v28  ;;  %vm882_vm10 = vweird.f32 %v5302_v57  ;;  %vm868_vm13 = vmor %vm866_vm11, %vm867_vm8 }
 0x437   : > { %v1718_v58 = vmul.f32 %v4029_v46, %v1717_v50  ;;  %v863_v40 = vsub.f32 1.0, %v862_v27  ;;  %vm883_vm14 = vmor %vm881_vm12, %vm882_vm10 }
 0x438   : > { %v5294_v19 = vpop.f32.mrf.mxu1  ;;  %v1733_v48 = vmul.f32 %v4031_v60, %v1732_v20  ;;  %v878_v53 = vsub.f32 1.0, %v877_v49  ;;  %v5357_v49 = vld [vmem:[%s4246_s11 + $0x80] sm:$0xff] }
 0x439   : > { %v1903_v30 = vsel %vm231_vm1, %v5294_v19, -inf  ;;  %v1719_v62 = vadd.f32 %v4029_v46, %v1718_v58  ;;  %v864_v35 = vmul.f32 %v5300_v61, %v863_v40 }
 0x43a   : > { %905 = vrot.lane.b32.xlu2 %v830_v54, %s4220_s21  ;;  %v1734_v29 = vadd.f32 %v4031_v60, %v1733_v48  ;;  %v1741_v54 = vand.u32 2147483648, %v5043_v39  ;;  %v879_v8 = vmul.f32 %v5302_v57, %v878_v53  ;;  %v887_v39 = vand.u32 2147483648, %v5085_v28  ;;  %v5366_v48 = vld [vmem:[%s4246_s11 + $0x20] sm:$0xff] }
 0x43b   : > { %v1723_v4 = vsel %vm5317_vm4, %v4029_v46, %v1719_v62  ;;  %v865_v7 = vadd.f32 %v5300_v61, %v864_v35  ;;  %v1091_v35 = vsel %vm231_vm1, %v5123_v26, 0.0 }
 0x43c   : > { %v1738_v10 = vsel %vm5326_vm6, %v4031_v60, %v1734_v29  ;;  %v1742_v6 = vor.u32 1.1754944e-38, %v1741_v54  ;;  %v880_v24 = vadd.f32 %v5302_v57, %v879_v8  ;;  %v1085_v60 = vsel %vm231_vm1, %v5109_v47, 0.0  ;;  %v5391_v8 = vld [vmem:[%s4246_s11 + $0x98] sm:$0xff] }
 0x43d   : > { %v869_v46 = vsel %vm868_vm13, %v5300_v61, %v865_v7  ;;  %v888_v15 = vor.u32 1.1754944e-38, %v887_v39  ;;  %v1094_v47 = vsel %vm231_vm1, %v5132_v14, 0.0  ;;  %v1088_v29 = vsel %vm231_vm1, %v5115_v32, 0.0  ;;  %v5425_v7 = vld [vmem:[%s4246_s11 + $0x50] sm:$0xff] }
 0x43e   : > { %907 = vrot.lane.b32.xlu0 %v845_v34, %s4220_s21  ;;  %v1743_v18 = vsel %vm1740_vm7, %v1742_v6, %v1738_v10  ;;  %v884_v1 = vsel %vm883_vm14, %v5302_v57, %v880_v24  ;;  %v1103_v32 = vsel %vm231_vm1, %v5163_v11, 0.0  ;;  %v1097_v10 = vsel %vm231_vm1, %v5140_v31, 0.0  ;;  %v5446_v24 = vld [vmem:[%s4246_s11 + $0x18] sm:$0xff] }
 0x43f   : > { %v1744_v21 = vmul.f32 %v1743_v18, %v1622_v41 }
 0x440   : > { %v5309_v56 = vpop.f32.mrf.mxu1 }
 0x441   : > { %v1906_v43 = vsel %vm231_vm1, %v5309_v56, -inf }
 0x443   : > { %1763 = vrot.lane.b32.xlu1 %v1714_v59, %s4219_s20  ;;  %v1728_v59 = vsel %vm1725_vm9, %v1727_v33, %v1723_v4  ;;  %v5411_v33 = vld [vmem:[%s4246_s11] sm:$0xff] }
 0x444   : > { %v1729_v3 = vmul.f32 %v1728_v59, %v1619_v55 }
 0x448   : > { %v5361_v55 = vpop.f32.mrf.mxu1 }
 0x449   : > { %v1909_v53 = vsel %vm231_vm1, %v5361_v55, -inf }
 0x44b   : > { %909 = vrot.lane.b32.xlu1 %v860_v9, %s4220_s21  ;;  %v885_v9 = vand.u32 2147483647, %v5085_v28 }
 0x44d   : > { %vm886_vm3 = vcmp.eq.f32.partialorder %v885_v9, 8.507059e+37  ;;  %v5459_v9 = vld [vmem:[%s4246_s11 + $0x30] sm:$0xff] }
 0x44e   : > { %v889_v28 = vsel %vm886_vm3, %v888_v15, %v884_v1 }
 0x450   : > { %v5372_v40 = vpop.f32.mrf.mxu1 }
 0x451   : > { %v1912_v52 = vsel %vm231_vm1, %v5372_v40, -inf }
 0x463   : > { %1901 = vmax.xlane.f32.xlu2 %v1900_v5  ;;  %v873_v5 = vor.u32 1.1754944e-38, %v872_v25  ;;  %v5432_v25 = vld [vmem:[%s4246_s11 + $0x38] sm:$0xff] }
 0x465   : > { %v874_v38 = vsel %vm871_vm15, %v873_v5, %v869_v46 }
 0x466   : > { %v875_v50 = vmul.f32 %v874_v38, %v765_v51  ;;  %v1100_v51 = vsel %vm231_vm1, %v5156_v42, 0.0 }
 0x468   : > { %1904 = vmax.xlane.f32.xlu0 %v1903_v30  ;;  %v768_v30 = vpop.f32.mrf.mxu3 }
 0x469   : > { %v890_v61 = vmul.f32 %v889_v28, %v768_v30 }
 0x475   : > { %1907 = vmax.xlane.f32.xlu1 %v1906_v43 }
 0x47b   : > { %1765 = vrot.lane.b32.xlu2 %v1729_v3, %s4219_s20 }
 0x47c   : > { %1767 = vrot.lane.b32.xlu0 %v1744_v21, %s4219_s20 }
 0x47d   : > { %1086 = vadd.xlane.f32.xlu1 %v1085_v60 }
 0x483   : > { %911 = vrot.lane.b32.xlu2 %v875_v50, %s4220_s21 }
 0x484   : > { %913 = vrot.lane.b32.xlu0 %v890_v61, %s4220_s21 }
 0x485   : > { %1095 = vadd.xlane.f32.xlu1 %v1094_v47 }
 0x48d   : > { %v1893_v57 = vpop.xlane.xlu2 %1892 }
 0x48e   : > { %v1915_v39 = vsub.f32 %v5193_v63, %v1893_v57  ;;  %v5439_v63 = vld [vmem:[%s4246_s11 + $0x8] sm:$0xff] }
 0x490   : > { %v1923_v41 = vmul.f32 1.442695, %v1915_v39 }
 0x492   : > { %4036 = vpow2.f32 %v1923_v41 }
 0x495   : > { %v5352_v20 = vpop.permute.xlu2 %1759  ;;  %v5363_v58 = vpop.xlane.xlu0 %1895 }
 0x496   : > { %v1916_v21 = vsub.f32 %v5206_v22, %v5363_v58 }
 0x498   : > { %v5429_v31 = vpop.eup %4036  ;;  %v1925_v60 = vmul.f32 1.442695, %v1916_v21 }
 0x499   : > { %v1939_v42 = vsel %vm231_vm1, %v5429_v31, 0.0 }
 0x49a   : > { %4038 = vpow2.f32 %v1925_v60 }
 0x49d   : > { %v906_v27 = vpop.permute.xlu2 %905  ;;  %v5376_v62 = vpop.xlane.xlu1 %1898 }
 0x49e   : > { %927 = vst.msk [vmem:[%s4643_s18 + $0x18] sm:$0xff] %vm923_vm2, %v906_v27  ;;  %2239 = vrot.lane.b32.xlu1 %v5357_v49, %s4219_s20  ;;  %v1917_v61 = vsub.f32 %v5218_v37, %v5376_v62 }
 0x4a0   : > { %v5473_v28 = vpop.eup %4038  ;;  %v1927_v27 = vmul.f32 1.442695, %v1917_v61 }
 0x4a6   : > { %2231 = vrot.lane.b32.xlu1 %v5366_v48, %s4219_s20 }
 0x4a8   : > { %v5370_v14 = vpop.permute.xlu0 %1761 }
 0x4ac   : > { %1910 = vmax.xlane.f32.xlu2 %v1909_v53 }
 0x4ae   : > { %1913 = vmax.xlane.f32.xlu0 %v1912_v52 }
 0x4b0   : > { %v908_v0 = vpop.permute.xlu0 %907 }
 0x4b1   : > { %928 = vst.msk [vmem:[%s4643_s18 + $0x20] sm:$0xff] %vm923_vm2, %v908_v0 }
 0x4b4   : > { %1089 = vadd.xlane.f32.xlu2 %v1088_v29 }
 0x4b5   : > { %v5384_v54 = vpop.permute.xlu1 %1763 }
 0x4b6   : > { %1092 = vadd.xlane.f32.xlu0 %v1091_v35 }
 0x4bd   : > { %v910_v13 = vpop.permute.xlu1 %909 }
 0x4be   : > { %929 = vst.msk [vmem:[%s4643_s18 + $0x28] sm:$0xff] %vm923_vm2, %v910_v13 }
 0x4ca   : > { %2241 = vrot.lane.b32.xlu0 %v5391_v8, %s4219_s20 }
 0x4cc   : > { %2243 = vrot.lane.b32.xlu2 %v4960_v16, %s4219_s20 }
 0x4d0   : > { %1104 = vadd.xlane.f32.xlu1 %v1103_v32  ;;  %v5499_v32 = vpop.f32.mrf.mxu3 }
 0x4d2   : > { %2237 = vrot.lane.b32.xlu0 %v5400_v23, %s4219_s20 }
 0x4d6   : > { %v5404_v26 = vpop.xlane.xlu2 %1901 }
 0x4d7   : > { %v1918_v37 = vsub.f32 %v5286_v17, %v5404_v26 }
 0x4d9   : > { %v1929_v0 = vmul.f32 1.442695, %v1918_v37 }
 0x4db   : > { %v1905_v4 = vpop.xlane.xlu0 %1904 }
 0x4dc   : > { %v1919_v1 = vsub.f32 %v5294_v19, %v1905_v4  ;;  %v1942_v19 = vsel %vm231_vm1, %v5473_v28, 0.0 }
 0x4de   : > { %v5406_v43 = vpop.permute.xlu2 %1765  ;;  %v1931_v22 = vmul.f32 1.442695, %v1919_v1 }
 0x4e0   : > { %4040 = vpow2.f32 %v1931_v22 }
 0x4e6   : > { %v912_v34 = vpop.permute.xlu2 %911  ;;  %v5482_v57 = vpop.eup %4040 }
 0x4e7   : > { %930 = vst.msk [vmem:[%s4643_s18 + $0x30] sm:$0xff] %vm923_vm2, %v912_v34  ;;  %v1951_v58 = vsel %vm231_vm1, %v5482_v57, 0.0  ;;  %v5503_v34 = vpop.f32.mrf.mxu3 }
 0x4e8   : > { %v5450_v3 = vpop.xlane.xlu1 %1907 }
 0x4e9   : > { %2213 = vrot.lane.b32.xlu1 %v5411_v33, %s4219_s20 }
 0x4ee   : > { %v5415_v11 = vpop.permute.xlu0 %1767 }
 0x4ef   : > { %v1180_v21 = vpop.f32.mrf.mxu3 }
 0x4f0   : > { %v5463_v46 = vpop.xlane.xlu1 %1086 }
 0x4f1   : > { %vm1203_vm3 = vweird.f32 %v5463_v46 }
 0x4f5   : > { %1098 = vadd.xlane.f32.xlu2 %v1097_v10 }
 0x4f6   : > { %v914_v6 = vpop.permute.xlu0 %913 }
 0x4f7   : > { %931 = vst.msk [vmem:[%s4643_s18 + $0x38] sm:$0xff] %vm923_vm2, %v914_v6  ;;  %v5506_v6 = vld [vmem:[%s4246_s11 + $0x48] sm:$0xff] }
 0x4f8   : > { %v5471_v38 = vpop.xlane.xlu1 %1095 }
 0x4fc   : > { %1101 = vadd.xlane.f32.xlu0 %v1100_v51 }
 0x50d   : > { %2235 = vrot.lane.b32.xlu2 %v5425_v7, %s4219_s20 }
 0x510   : > { %2233 = vrot.lane.b32.xlu0 %v5432_v25, %s4219_s20 }
 0x513   : > { %1940 = vadd.xlane.f32.xlu1 %v1939_v42 }
 0x518   : > { %2229 = vrot.lane.b32.xlu0 %v5439_v63, %s4219_s20 }
 0x51f   : > { %v5443_v59 = vpop.xlane.xlu2 %1910 }
 0x520   : > { %2215 = vrot.lane.b32.xlu0 %v5446_v24, %s4219_s20 }
 0x521   : > { %v1914_v12 = vpop.xlane.xlu0 %1913 }
 0x522   : > { %v1922_v30 = vsub.f32 %v5372_v40, %v1914_v12 }
 0x524   : > { %v1937_v47 = vmul.f32 1.442695, %v1922_v30 }
 0x526   : > { %4042 = vpow2.f32 %v1937_v47  ;;  %v5527_v47 = vld [vmem:[%s4246_s11 + $0x60] sm:$0xff] }
 0x527   : > { %v5452_v18 = vpop.xlane.xlu2 %1089  ;;  %4044 = vpow2.f32 %v1927_v27 }
 0x528   : > { %2670 = vrot.lane.b32.xlu0 %v4960_v16, %s4221_s22  ;;  %v1106_v16 = vsel %vm231_vm1, %v5171_v2, 0.0  ;;  %v2240_v2 = vpop.permute.xlu1 %2239  ;;  %4046 = vpow2.f32 %v1929_v0  ;;  %vm1218_vm12 = vweird.f32 %v5452_v18 }
 0x529   : > { %v1093_v15 = vpop.xlane.xlu0 %1092 }
 0x52a   : > { %4048 = vrcp.f32 %v1093_v15  ;;  %v1239_v41 = vand.u32 2147483648, %v1093_v15  ;;  %vm1233_vm4 = vweird.f32 %v1093_v15  ;;  %v1237_v42 = vand.u32 2147483647, %v1093_v15 }
 0x52c   : > { %2217 = vrot.lane.b32.xlu1 %v5459_v9, %s4219_s20  ;;  %v5487_v53 = vpop.eup %4042  ;;  %vm1238_vm6 = vcmp.eq.f32.partialorder %v1237_v42, 8.507059e+37 }
 0x52d   : > { %v1960_v62 = vsel %vm231_vm1, %v5487_v53, 0.0  ;;  %v5493_v52 = vpop.eup %4044 }
 0x52e   : > { %v1945_v29 = vsel %vm231_vm1, %v5493_v52, 0.0  ;;  %v5497_v35 = vpop.eup %4046 }
 0x52f   : > { %v2244_v5 = vpop.permute.xlu2 %2243  ;;  %v1948_v17 = vsel %vm231_vm1, %v5497_v35, 0.0 }
 0x530   : > { %3677 = vmatpush.xpose.msk.msra.mxu0 %vm141_vm0, %v2244_v5  ;;  %v4049_v13 = vpop.eup %4048  ;;  %v1240_v5 = vor.u32 1.1754944e-38, %v1239_v41  ;;  %v2232_v61 = vpop.permute.xlu1 %2231 }
 0x531   : > { %v1229_v26 = vmul.f32 %v4049_v13, %v1093_v15  ;;  %vm1234_vm2 = vweird.f32 %v4049_v13 }
 0x532   : > { %vm1235_vm5 = vmor %vm1233_vm4, %vm1234_vm2 }
 0x533   : > { %v1230_v4 = vsub.f32 1.0, %v1229_v26 }
 0x534   : > { %2668 = vrot.lane.b32.xlu1 %v5391_v8, %s4221_s22 }
 0x535   : > { %v1231_v10 = vmul.f32 %v4049_v13, %v1230_v4 }
 0x536   : > { %1107 = vadd.xlane.f32.xlu2 %v1106_v16 }
 0x537   : > { %v1232_v39 = vadd.f32 %v4049_v13, %v1231_v10 }
 0x539   : > { %v1236_v12 = vsel %vm1235_vm5, %v4049_v13, %v1232_v39  ;;  %v5539_v13 = vld [vmem:[%s4246_s11 + $0xa8] sm:$0xff] }
 0x53a   : > { %v1241_v16 = vsel %vm1238_vm6, %v1240_v5, %v1236_v12  ;;  %v1921_v5 = vsub.f32 %v5361_v55, %v5443_v59 }
 0x53b   : > { %v1242_v22 = vmul.f32 %v1241_v16, %v1180_v21 }
 0x53c   : > { %v2242_v50 = vpop.permute.xlu0 %2241  ;;  %v1935_v16 = vmul.f32 1.442695, %v1921_v5 }
 0x53d   : > { %3678 = vmatpush.xpose.msk.msra.mxu0 %vm141_vm0, %v2242_v50  ;;  %v5522_v50 = vpop.f32.mrf.mxu3 }
 0x53e   : > { %1943 = vadd.xlane.f32.xlu2 %v1942_v19 }
 0x541   : > { %3679 = vmatpush.xpose.msk.msra.mxu0 %vm141_vm0, %v2240_v2 }
 0x543   : > { %v5534_v0 = vpop.xlane.xlu1 %1104 }
 0x544   : > { %v2238_v40 = vpop.permute.xlu0 %2237 }
 0x545   : > { %3680 = vmatpush.xpose.msk.msra.mxu0 %vm141_vm0, %v2238_v40  ;;  %v5531_v40 = vpop.f32.mrf.mxu3 }
 0x546   : > { %1952 = vadd.xlane.f32.xlu2 %v1951_v58 }
 0x54d   : > { %v1189_v41 = vpop.f32.mrf.mxu3 }
 0x54e   : > { %1961 = vadd.xlane.f32.xlu2 %v1960_v62 }
 0x552   : > { %1946 = vadd.xlane.f32.xlu0 %v1945_v29  ;;  %v1920_v29 = vsub.f32 %v5309_v56, %v5450_v3 }
 0x554   : > { %v1933_v10 = vmul.f32 1.442695, %v1920_v29 }
 0x55b   : > { %v2214_v12 = vpop.permute.xlu1 %2213 }
 0x55e   : > { %1949 = vadd.xlane.f32.xlu1 %v1948_v17 }
 0x566   : > { %2219 = vrot.lane.b32.xlu0 %v5506_v6, %s4219_s20  ;;  %2662 = vrot.lane.b32.xlu2 %v5425_v7, %s4221_s22 }
 0x568   : > { %v5512_v51 = vpop.xlane.xlu2 %1098 }
 0x569   : > { %vm1263_vm6 = vweird.f32 %v5512_v51 }
 0x56e   : > { %2664 = vrot.lane.b32.xlu0 %v5400_v23, %s4221_s22  ;;  %2656 = vrot.lane.b32.xlu2 %v5439_v63, %s4221_s22 }
 0x56f   : > { %v1102_v60 = vpop.xlane.xlu0 %1101 }
 0x570   : > { %4050 = vrcp.f32 %v1102_v60  ;;  %v2236_v1 = vpop.permute.xlu2 %2235  ;;  %v1284_v37 = vand.u32 2147483648, %v1102_v60  ;;  %vm1278_vm8 = vweird.f32 %v1102_v60  ;;  %v1282_v62 = vand.u32 2147483647, %v1102_v60 }
 0x571   : > { %3681 = vmatpush.xpose.msk.msra.mxu0 %vm141_vm0, %v2236_v1  ;;  %4052 = vpow2.f32 %v1933_v10 }
 0x572   : > { %v1285_v26 = vor.u32 1.1754944e-38, %v1284_v37  ;;  %vm1283_vm10 = vcmp.eq.f32.partialorder %v1282_v62, 8.507059e+37  ;;  %4054 = vpow2.f32 %v1935_v16  ;;  %v5586_v62 = vld [vmem:[%s4246_s11 + $0x78] sm:$0xff] }
 0x573   : > { %4056 = vrcp.f32 %v5452_v18 }
 0x574   : > { %4058 = vrcp.f32 %v5463_v46 }
 0x575   : > { %4060 = vrcp.f32 %v5512_v51 }
 0x576   : > { %v4051_v15 = vpop.eup %4050  ;;  %1330 = vrot.lane.b32.xlu2 %v1242_v22, %s4221_s22  ;;  %4062 = vrcp.f32 %v5471_v38 }
 0x577   : > { %v1274_v30 = vmul.f32 %v4051_v15, %v1102_v60  ;;  %2666 = vrot.lane.b32.xlu1 %v5357_v49, %s4221_s22  ;;  %vm1279_vm7 = vweird.f32 %v4051_v15  ;;  %v5547_v3 = vpop.eup %4052 }
 0x578   : > { %vm1280_vm9 = vmor %vm1278_vm8, %vm1279_vm7  ;;  %v1954_v60 = vsel %vm231_vm1, %v5547_v3, 0.0  ;;  %v5563_v55 = vpop.eup %4054 }
 0x579   : > { %v1275_v19 = vsub.f32 1.0, %v1274_v30  ;;  %v1957_v59 = vsel %vm231_vm1, %v5563_v55, 0.0 }
 0x57b   : > { %v1276_v2 = vmul.f32 %v4051_v15, %v1275_v19 }
 0x57d   : > { %v1277_v58 = vadd.f32 %v4051_v15, %v1276_v2  ;;  %v5576_v2 = vld [vmem:[%s4246_s11 + $0x90] sm:$0xff] }
 0x57e   : > { %2640 = vrot.lane.b32.xlu2 %v5411_v33, %s4221_s22 }
 0x57f   : > { %2221 = vrot.lane.b32.xlu1 %v5527_v47, %s4219_s20  ;;  %v1281_v17 = vsel %vm1280_vm9, %v4051_v15, %v1277_v58  ;;  %v4057_v15 = vpop.eup %4056  ;;  %vm1350_vm9 = vcmask 392448  }
 0x580   : > { %v1286_v4 = vsel %vm1283_vm10, %v1285_v26, %v1281_v17  ;;  %v1214_v19 = vmul.f32 %v4057_v15, %v5452_v18  ;;  %v4059_v29 = vpop.eup %4058  ;;  %vm1219_vm11 = vweird.f32 %v4057_v15  ;;  %v1224_v26 = vand.u32 2147483648, %v5452_v18 }
 0x581   : > { %v1287_v42 = vmul.f32 %v1286_v4, %v1189_v41  ;;  %v1199_v10 = vmul.f32 %v4059_v29, %v5463_v46  ;;  %vm1220_vm13 = vmor %vm1218_vm12, %vm1219_vm11  ;;  %v5600_v41 = vld [vmem:[%s4246_s11 + $0x28] sm:$0xff]  ;;  %vm1204_vm15 = vweird.f32 %v4059_v29  ;;  %vm1777_vm10 = vcmask 523648  }
 0x582   : > { %v2234_v27 = vpop.permute.xlu0 %2233  ;;  %vm1205_vm2 = vmor %vm1203_vm3, %vm1204_vm15  ;;  %vm1248_vm12 = vweird.f32 %v5471_v38 }
 0x583   : > { %3682 = vmatpush.xpose.msk.msra.mxu0 %vm141_vm0, %v2234_v27  ;;  %v1215_v27 = vsub.f32 1.0, %v1214_v19  ;;  %v1200_v5 = vsub.f32 1.0, %v1199_v10 }
 0x585   : > { %v1216_v37 = vmul.f32 %v4057_v15, %v1215_v27  ;;  %v1201_v16 = vmul.f32 %v4059_v29, %v1200_v5  ;;  %v1209_v27 = vand.u32 2147483648, %v5463_v46 }
 0x586   : > { %2227 = vrot.lane.b32.xlu2 %v5539_v13, %s4219_s20  ;;  %v5549_v21 = vpop.xlane.xlu1 %1940 }
 0x587   : > { %3683 = vmatpush.xpose.msk.msra.mxu0 %vm141_vm0, %v2232_v61  ;;  %v4196_v61 = vld [vmem:[%s4246_s11 + $0xb0] sm:$0xff]  ;;  %v1217_v17 = vadd.f32 %v4057_v15, %v1216_v37  ;;  %v1210_v10 = vor.u32 1.1754944e-38, %v1209_v27 }
 0x58a   : > { %v2230_v39 = vpop.permute.xlu0 %2229 }
 0x58b   : > { %3684 = vmatpush.xpose.msk.msra.mxu0 %vm141_vm0, %v2230_v39  ;;  %v1222_v39 = vand.u32 2147483647, %v5452_v18 }
 0x58d   : > { %vm1223_vm14 = vcmp.eq.f32.partialorder %v1222_v39, 8.507059e+37 }
 0x58e   : > { %1336 = vrot.lane.b32.xlu2 %v1287_v42, %s4221_s22  ;;  %3685 = vmatmul.msk.f32.vlgmr.msra.gmra.mxu0 %vm141_vm0, %v2214_v12  ;;  %v5603_v42 = vld [vmem:[%s4246_s11 + $0x10] sm:$0xff] }
 0x58f   : > { %v3844_v12 = vpack.i.bf16 %v5600_v41, %v5603_v42 }
 0x592   : > { %v2216_v56 = vpop.permute.xlu0 %2215 }
 0x596   : > { %3686 = vmatmul.msk.f32.gmra.mxu0 %vm141_vm0, %v2216_v56  ;;  %3083 = vrot.lane.b32.xlu2 %v5439_v63, %s4220_s21  ;;  %v1225_v56 = vor.u32 1.1754944e-38, %v1224_v26 }
 0x598   : > { %1955 = vadd.xlane.f32.xlu0 %v1954_v60  ;;  %v4061_v60 = vpop.eup %4060 }
 0x599   : > { %vm1264_vm5 = vweird.f32 %v4061_v60 }
 0x59a   : > { %v2671_v1 = vpop.permute.xlu0 %2670  ;;  %vm1265_vm7 = vmor %vm1263_vm6, %vm1264_vm5  ;;  %vm1293_vm6 = vweird.f32 %v5534_v0 }
 0x59b   : > { %3701 = vmatpush.xpose.msk.msrb.mxu1 %vm141_vm0, %v2671_v1 }
 0x59e   : > { %v2218_v22 = vpop.permute.xlu1 %2217  ;;  %2646 = vrot.lane.b32.xlu2 %v5506_v6, %s4221_s22 }
 0x59f   : > { %3687 = vmatmul.msk.f32.gmra.mxu0 %vm141_vm0, %v2218_v22 }
 0x5a6   : > { %v2669_v63 = vpop.permute.xlu1 %2668  ;;  %3071 = vrot.lane.b32.xlu2 %v5459_v9, %s4220_s21 }
 0x5a7   : > { %3702 = vmatpush.xpose.msk.msrb.mxu1 %vm141_vm0, %v2669_v63  ;;  %v1259_v63 = vmul.f32 %v4061_v60, %v5512_v51 }
 0x5a9   : > { %1958 = vadd.xlane.f32.xlu1 %v1957_v59  ;;  %v5570_v30 = vpop.xlane.xlu2 %1107  ;;  %v4201_v59 = vld [vmem:[%s4246_s11 + $0x88] sm:$0xff]  ;;  %v1260_v37 = vsub.f32 1.0, %v1259_v63 }
 0x5aa   : > { %4064 = vrcp.f32 %v5570_v30  ;;  %vm1308_vm3 = vweird.f32 %v5570_v30 }
 0x5ab   : > { %v1261_v39 = vmul.f32 %v4061_v60, %v1260_v37  ;;  %4066 = vrcp.f32 %v5534_v0 }
 0x5ac   : > { %3097 = vrot.lane.b32.xlu0 %v4196_v61, %s4220_s21  ;;  %v1202_v61 = vadd.f32 %v4059_v29, %v1201_v16  ;;  %4068 = vrcp.f32 %v5549_v21 }
 0x5ae   : > { %2652 = vrot.lane.b32.xlu2 %v5576_v2, %s4221_s22  ;;  %v1206_v26 = vsel %vm1205_vm2, %v4059_v29, %v1202_v61 }
 0x5b1   : > { %v5581_v58 = vpop.xlane.xlu2 %1943 }
 0x5b4   : > { %3095 = vrot.lane.b32.xlu0 %v5391_v8, %s4220_s21  ;;  %v1221_v8 = vsel %vm1220_vm13, %v4057_v15, %v1217_v17  ;;  %v4202_v15 = vld [vmem:[%s4246_s11 + $0x70] sm:$0xff] }
 0x5b5   : > { %v1226_v18 = vsel %vm1223_vm14, %v1225_v56, %v1221_v8  ;;  %v5617_v19 = vpack.i.bf16 %v4202_v15, %v4201_v59  ;;  %v1262_v56 = vadd.f32 %v4061_v60, %v1261_v39 }
 0x5b6   : > { %3077 = vrot.lane.b32.xlu2 %v5586_v62, %s4220_s21  ;;  %v1227_v22 = vmul.f32 %v1226_v18, %v5503_v34  ;;  %v1207_v34 = vand.u32 2147483647, %v5463_v46  ;;  %v1269_v18 = vand.u32 2147483648, %v5512_v51 }
 0x5b8   : > { %vm1208_vm4 = vcmp.eq.f32.partialorder %v1207_v34, 8.507059e+37  ;;  %v1254_v34 = vand.u32 2147483648, %v5471_v38 }
 0x5b9   : > { %v5591_v4 = vpop.xlane.xlu2 %1952  ;;  %v1211_v8 = vsel %vm1208_vm4, %v1210_v10, %v1206_v26  ;;  %v1252_v10 = vand.u32 2147483647, %v5471_v38 }
 0x5ba   : > { %v1212_v5 = vmul.f32 %v1211_v8, %v5499_v32  ;;  %v1270_v32 = vor.u32 1.1754944e-38, %v1269_v18  ;;  %v1255_v39 = vor.u32 1.1754944e-38, %v1254_v34  ;;  %v1299_v34 = vand.u32 2147483648, %v5534_v0 }
 0x5bb   : > { %vm1253_vm14 = vcmp.eq.f32.partialorder %v1252_v10, 8.507059e+37 }
 0x5bc   : > { %2658 = vrot.lane.b32.xlu0 %v5366_v48, %s4221_s22  ;;  %v1300_v10 = vor.u32 1.1754944e-38, %v1299_v34 }
 0x5be   : > { %3845 = vrot.lane.b32.xlu2 %v3844_v12, %s4218_s19  ;;  %v4063_v12 = vpop.eup %4062 }
 0x5bf   : > { %v1244_v29 = vmul.f32 %v4063_v12, %v5471_v38  ;;  %v4065_v61 = vpop.eup %4064  ;;  %vm1249_vm11 = vweird.f32 %v4063_v12 }
 0x5c0   : > { %vm1250_vm13 = vmor %vm1248_vm12, %vm1249_vm11  ;;  %v4067_v38 = vpop.eup %4066  ;;  %vm1309_vm15 = vweird.f32 %v4065_v61  ;;  %vm2204_vm12 = vcmask 654848  }
 0x5c1   : > { %v5608_v1 = vpop.xlane.xlu2 %1961  ;;  %v1245_v63 = vsub.f32 1.0, %v1244_v29  ;;  %vm1310_vm2 = vmor %vm1308_vm3, %vm1309_vm15  ;;  %vm1294_vm5 = vweird.f32 %v4067_v38  ;;  %vm2117_vm15 = vweird.f32 %v5591_v4 }
 0x5c2   : > { %2660 = vrot.lane.b32.xlu1 %v5432_v25, %s4221_s22 }
 0x5c3   : > { %v1246_v27 = vmul.f32 %v4063_v12, %v1245_v63  ;;  %v1312_v63 = vand.u32 2147483647, %v5570_v30 }
 0x5c4   : > { %1328 = vrot.lane.b32.xlu0 %v1227_v22, %s4221_s22  ;;  %v1267_v22 = vand.u32 2147483647, %v5512_v51 }
 0x5c5   : > { %v5631_v46 = vpop.xlane.xlu0 %1946  ;;  %v1247_v37 = vadd.f32 %v4063_v12, %v1246_v27  ;;  %vm1313_vm4 = vcmp.eq.f32.partialorder %v1312_v63, 8.507059e+37 }
 0x5c6   : > { %3860 = vrot.lane.b32.xlu2 %v5617_v19, %s4218_s19  ;;  %vm1268_vm8 = vcmp.eq.f32.partialorder %v1267_v22, 8.507059e+37  ;;  %v1314_v22 = vand.u32 2147483648, %v5570_v30  ;;  %vm2087_vm3 = vweird.f32 %v5631_v46 }
 0x5c9   : > { %v5625_v17 = vpop.permute.xlu2 %2662 }
 0x5ca   : > { %2223 = vrot.lane.b32.xlu1 %v5586_v62, %s4219_s20 }
 0x5cc   : > { %3091 = vrot.lane.b32.xlu0 %v5400_v23, %s4220_s21  ;;  %v1266_v23 = vsel %vm1265_vm7, %v4061_v60, %v1262_v56  ;;  %v1304_v60 = vmul.f32 %v4065_v61, %v5570_v30  ;;  %vm1295_vm7 = vmor %vm1293_vm6, %vm1294_vm5 }
 0x5cd   : > { %v1271_v59 = vsel %vm1268_vm8, %v1270_v32, %v1266_v23 }
 0x5ce   : > { %v1305_v26 = vsub.f32 1.0, %v1304_v60 }
 0x5d0   : > { %v1306_v8 = vmul.f32 %v4065_v61, %v1305_v26  ;;  %v1297_v26 = vand.u32 2147483647, %v5534_v0 }
 0x5d1   : > { %v5635_v16 = vpop.permute.xlu2 %2656 }
 0x5d2   : > { %1326 = vrot.lane.b32.xlu1 %v1212_v5, %s4221_s22  ;;  %v1192_v5 = vpop.f32.mrf.mxu3  ;;  %v1307_v18 = vadd.f32 %v4065_v61, %v1306_v8  ;;  %vm1298_vm8 = vcmp.eq.f32.partialorder %v1297_v26, 8.507059e+37  ;;  %v4205_v8 = vld [vmem:[%s4246_s11 + $0xb8] sm:$0xff] }
 0x5d4   : > { %3089 = vrot.lane.b32.xlu0 %v5425_v7, %s4220_s21  ;;  %v1272_v7 = vmul.f32 %v1271_v59, %v5531_v40 }
 0x5d8   : > { %v2220_v15 = vpop.permute.xlu0 %2219 }
 0x5d9   : > { %v1331_v51 = vpop.permute.xlu2 %1330  ;;  %3688 = vmatmul.msk.f32.gmra.mxu0 %vm141_vm0, %v2220_v15  ;;  %v1315_v15 = vor.u32 1.1754944e-38, %v1314_v22 }
 0x5da   : > { %1353 = vst.msk [vmem:[%s4643_s18 + $0x10] sm:$0xff] %vm1350_vm9, %v1331_v51  ;;  %3093 = vrot.lane.b32.xlu1 %v5357_v49, %s4220_s21  ;;  %v5659_v49 = vpop.xlane.xlu1 %1949 }
 0x5db   : > { %1780 = vst.msk [vmem:[%s4643_s18 + $0x10] sm:$0xff] %vm1777_vm10, %v5185_v36  ;;  %v1251_v36 = vsel %vm1250_vm13, %v4063_v12, %v1247_v37  ;;  %v1289_v12 = vmul.f32 %v4067_v38, %v5534_v0  ;;  %vm2072_vm13 = vweird.f32 %v5581_v58 }
 0x5dc   : > { %1334 = vrot.lane.b32.xlu0 %v1272_v7, %s4221_s22  ;;  %v1256_v56 = vsel %vm1253_vm14, %v1255_v39, %v1251_v36  ;;  %v1195_v7 = vpop.f32.mrf.mxu3 }
 0x5dd   : > { %v1257_v29 = vmul.f32 %v1256_v56, %v5522_v50  ;;  %v1311_v50 = vsel %vm1310_vm2, %v4065_v61, %v1307_v18  ;;  %v1290_v51 = vsub.f32 1.0, %v1289_v12  ;;  %v4206_v56 = vld [vmem:[%s4246_s11 + $0xa0] sm:$0xff]  ;;  %v5759_v12 = vpack.i.bf16 %v5603_v42, %v5600_v41 }
 0x5de   : > { %v1316_v27 = vsel %vm1313_vm4, %v1315_v15, %v1311_v50 }
 0x5df   : > { %v1291_v37 = vmul.f32 %v4067_v38, %v1290_v51 }
 0x5e0   : > { %v2665_v59 = vpop.permute.xlu0 %2664 }
 0x5e1   : > { %v5661_v40 = vpop.permute.xlu2 %2640  ;;  %v1292_v61 = vadd.f32 %v4067_v38, %v1291_v37 }
 0x5e2   : > { %2225 = vrot.lane.b32.xlu1 %v5576_v2, %s4219_s20 }
 0x5e4   : > { %2642 = vrot.lane.b32.xlu0 %v5446_v24, %s4221_s22 }
 0x5e9   : > { %v2667_v23 = vpop.permute.xlu1 %2666  ;;  %v5669_v32 = vpop.permute.xlu2 %2227 }
 0x5ea   : > { %1332 = vrot.lane.b32.xlu1 %v1257_v29, %s4221_s22  ;;  %3703 = vmatpush.xpose.msk.msrb.mxu1 %vm141_vm0, %v2667_v23 }
 0x5ec   : > { %2644 = vrot.lane.b32.xlu0 %v5459_v9, %s4221_s22  ;;  %v1317_v9 = vmul.f32 %v1316_v27, %v1195_v7 }
 0x5ee   : > { %3704 = vmatpush.xpose.msk.msrb.mxu1 %vm141_vm0, %v2665_v59 }
 0x5f1   : > { %v2222_v30 = vpop.permute.xlu1 %2221  ;;  %v1337_v60 = vpop.permute.xlu2 %1336 }
 0x5f2   : > { %1356 = vst.msk [vmem:[%s4643_s18 + $0x28] sm:$0xff] %vm1350_vm9, %v1337_v60  ;;  %3087 = vrot.lane.b32.xlu1 %v5432_v25, %s4220_s21  ;;  %3689 = vmatmul.msk.f32.gmra.mxu0 %vm141_vm0, %v2222_v30  ;;  %v1296_v25 = vsel %vm1295_vm7, %v4067_v38, %v1292_v61 }
 0x5f3   : > { %3705 = vmatpush.xpose.msk.msrb.mxu1 %vm141_vm0, %v5625_v17  ;;  %1783 = vst.msk [vmem:[%s4643_s18 + $0x28] sm:$0xff] %vm1777_vm10, %v5384_v54  ;;  %v1301_v54 = vsel %vm1298_vm8, %v1300_v10, %v1296_v25 }
 0x5f4   : > { %1340 = vrot.lane.b32.xlu0 %v1317_v9, %s4221_s22  ;;  %v1302_v17 = vmul.f32 %v1301_v54, %v1192_v5  ;;  %v5729_v5 = vpack.i.bf16 %v4206_v56, %v4205_v8 }
 0x5fa   : > { %3085 = vrot.lane.b32.xlu1 %v5366_v48, %s4220_s21 }
 0x5fc   : > { %3069 = vrot.lane.b32.xlu0 %v5446_v24, %s4220_s21 }
 0x602   : > { %1338 = vrot.lane.b32.xlu1 %v1302_v17, %s4221_s22 }
 0x604   : > { %2650 = vrot.lane.b32.xlu0 %v5586_v62, %s4221_s22  ;;  %v4204_v62 = vld [vmem:[%s4246_s11 + $0x40] sm:$0xff] }
 0x60a   : > { %3067 = vrot.lane.b32.xlu1 %v5411_v33, %s4220_s21  ;;  %v4203_v33 = vld [vmem:[%s4246_s11 + $0x58] sm:$0xff] }
 0x60b   : > { %v5702_v0 = vpop.f32.mrf.mxu0  ;;  %v5712_v24 = vpop.xlane.xlu0 %1955  ;;  %v3849_v36 = vpack.i.bf16 %v4203_v33, %v4204_v62  ;;  %v5745_v22 = vpack.i.bf16 %v4204_v62, %v4203_v33 }
 0x60c   : > { %v2318_v48 = vsel %vm231_vm1, %v5702_v0, -inf  ;;  %3075 = vrot.lane.b32.xlu0 %v5527_v47, %s4220_s21 }
 0x60d   : > { %2319 = vmax.xlane.f32.xlu2 %v2318_v48 }
 0x612   : > { %2648 = vrot.lane.b32.xlu1 %v5527_v47, %s4221_s22 }
 0x614   : > { %3079 = vrot.lane.b32.xlu0 %v5576_v2, %s4220_s21 }
 0x61a   : > { %3073 = vrot.lane.b32.xlu1 %v5506_v6, %s4220_s21 }
 0x61c   : > { %3850 = vrot.lane.b32.xlu0 %v3849_v36, %s4218_s19  ;;  %v5725_v6 = vpop.xlane.xlu1 %1958 }
 0x61e   : > { %v3098_v39 = vpop.permute.xlu0 %3097 }
 0x61f   : > { %3725 = vmatpush.xpose.msk.msrb.mxu0 %vm141_vm0, %v3098_v39 }
 0x622   : > { %2654 = vrot.lane.b32.xlu1 %v5539_v13, %s4221_s22 }
 0x626   : > { %v3096_v47 = vpop.permute.xlu0 %3095 }
 0x627   : > { %3726 = vmatpush.xpose.msk.msrb.mxu0 %vm141_vm0, %v3096_v47 }
 0x62a   : > { %3081 = vrot.lane.b32.xlu1 %v5539_v13, %s4220_s21 }
 0x62e   : > { %v2659_v2 = vpop.permute.xlu0 %2658 }
 0x632   : > { %3855 = vrot.lane.b32.xlu1 %v5729_v5, %s4218_s19 }
 0x634   : > { %v2661_v38 = vpop.permute.xlu1 %2660 }
 0x635   : > { %3706 = vmatpush.xpose.msk.msrb.mxu1 %vm141_vm0, %v2661_v38 }
 0x636   : > { %v1329_v18 = vpop.permute.xlu0 %1328 }
 0x637   : > { %1352 = vst.msk [vmem:[%s4643_s18 + $0x8] sm:$0xff] %vm1350_vm9, %v1329_v18 }
 0x638   : > { %1779 = vst.msk [vmem:[%s4643_s18 + $0x8] sm:$0xff] %vm1777_vm10, %v5183_v45  ;;  %v5753_v45 = vpop.f32.mrf.mxu0 }
 0x639   : > { %3707 = vmatpush.xpose.msk.msrb.mxu1 %vm141_vm0, %v2659_v2 }
 0x63a   : > { %3865 = vrot.lane.b32.xlu1 %v5729_v5, %s4219_s20 }
 0x63c   : > { %v2224_v13 = vpop.permute.xlu1 %2223 }
 0x63d   : > { %3690 = vmatmul.msk.f32.gmra.mxu0 %vm141_vm0, %v2224_v13  ;;  %3708 = vmatpush.xpose.msk.msrb.mxu1 %vm141_vm0, %v5635_v16 }
 0x63e   : > { %v3092_v29 = vpop.permute.xlu0 %3091 }
 0x640   : > { %3709 = vmatmul.msk.f32.vlgmr.msrb.gmra.mxu1 %vm141_vm0, %v5661_v40  ;;  %v5768_v63 = vpop.f32.mrf.mxu0 }
 0x641   : > { %3752 = vmatpush.xpose.msk.msra.mxu1 %vm141_vm0, %v3098_v39  ;;  %v2324_v37 = vsel %vm231_vm1, %v5768_v63, -inf }
 0x642   : > { %3875 = vrot.lane.b32.xlu1 %v5745_v22, %s4219_s20 }
 0x644   : > { %v1327_v23 = vpop.permute.xlu1 %1326 }
 0x645   : > { %3753 = vmatpush.xpose.msk.msra.mxu1 %vm141_vm0, %v3096_v47  ;;  %1351 = vst.msk [vmem:[%s4643_s18] sm:$0xff] %vm1350_vm9, %v1327_v23 }
 0x646   : > { %v3090_v16 = vpop.permute.xlu0 %3089  ;;  %1778 = vst.msk [vmem:[%s4643_s18] sm:$0xff] %vm1777_vm10, %v5165_v44 }
 0x64a   : > { %3880 = vrot.lane.b32.xlu1 %v5759_v12, %s4219_s20 }
 0x64c   : > { %v3094_v40 = vpop.permute.xlu1 %3093 }
 0x64d   : > { %3727 = vmatpush.xpose.msk.msrb.mxu0 %vm141_vm0, %v3094_v40  ;;  %3754 = vmatpush.xpose.msk.msra.mxu1 %vm141_vm0, %v3094_v40 }
 0x64e   : > { %v1335_v59 = vpop.permute.xlu0 %1334 }
 0x64f   : > { %1355 = vst.msk [vmem:[%s4643_s18 + $0x20] sm:$0xff] %vm1350_vm9, %v1335_v59 }
 0x650   : > { %1782 = vst.msk [vmem:[%s4643_s18 + $0x20] sm:$0xff] %vm1777_vm10, %v5370_v14  ;;  %v3084_v14 = vpop.permute.xlu2 %3083 }
 0x651   : > { %3728 = vmatpush.xpose.msk.msrb.mxu0 %vm141_vm0, %v3092_v29  ;;  %3755 = vmatpush.xpose.msk.msra.mxu1 %vm141_vm0, %v3092_v29 }
 0x654   : > { %v2226_v44 = vpop.permute.xlu1 %2225 }
 0x655   : > { %3691 = vmatmul.msk.f32.gmra.mxu0 %vm141_vm0, %v2226_v44  ;;  %3756 = vmatpush.xpose.msk.msra.mxu1 %vm141_vm0, %v3090_v16 }
 0x656   : > { %v5779_v41 = vpop.f32.mrf.mxu0  ;;  %v2643_v42 = vpop.permute.xlu0 %2642  ;;  %3729 = vmatpush.xpose.msk.msrb.mxu0 %vm141_vm0, %v3090_v16 }
 0x657   : > { %v2327_v50 = vsel %vm231_vm1, %v5779_v41, -inf  ;;  %3710 = vmatmul.msk.f32.gmra.mxu1 %vm141_vm0, %v2643_v42 }
 0x658   : > { %2328 = vmax.xlane.f32.xlu2 %v2327_v50  ;;  %v2647_v7 = vpop.permute.xlu2 %2646 }
 0x65c   : > { %v1333_v15 = vpop.permute.xlu1 %1332 }
 0x65d   : > { %1354 = vst.msk [vmem:[%s4643_s18 + $0x18] sm:$0xff] %vm1350_vm9, %v1333_v15  ;;  %3692 = vmatmul.msk.f32.gmra.mxu0 %vm141_vm0, %v5669_v32 }
 0x65e   : > { %v2645_v51 = vpop.permute.xlu0 %2644  ;;  %1781 = vst.msk [vmem:[%s4643_s18 + $0x18] sm:$0xff] %vm1777_vm10, %v5352_v20 }
 0x65f   : > { %3711 = vmatmul.msk.f32.gmra.mxu1 %vm141_vm0, %v2645_v51 }
 0x660   : > { %v3072_v61 = vpop.permute.xlu2 %3071 }
 0x664   : > { %v3088_v27 = vpop.permute.xlu1 %3087 }
 0x665   : > { %3730 = vmatpush.xpose.msk.msrb.mxu0 %vm141_vm0, %v3088_v27  ;;  %3757 = vmatpush.xpose.msk.msra.mxu1 %vm141_vm0, %v3088_v27  ;;  %v4069_v27 = vpop.eup %4068 }
 0x666   : > { %v1341_v30 = vpop.permute.xlu0 %1340 }
 0x667   : > { %1358 = vst.msk [vmem:[%s4643_s18 + $0x38] sm:$0xff] %vm1350_vm9, %v1341_v30  ;;  %3712 = vmatmul.msk.f32.gmra.mxu1 %vm141_vm0, %v2647_v7  ;;  %v2053_v30 = vmul.f32 %v4069_v27, %v5549_v21 }
 0x668   : > { %1785 = vst.msk [vmem:[%s4643_s18 + $0x38] sm:$0xff] %vm1777_vm10, %v5415_v11  ;;  %v2653_v25 = vpop.permute.xlu2 %2652 }
 0x66c   : > { %v3086_v32 = vpop.permute.xlu1 %3085 }
 0x66d   : > { %3731 = vmatpush.xpose.msk.msrb.mxu0 %vm141_vm0, %v3086_v32  ;;  %3758 = vmatpush.xpose.msk.msra.mxu1 %vm141_vm0, %v3086_v32 }
 0x66e   : > { %v3070_v34 = vpop.permute.xlu0 %3069 }
 0x66f   : > { %v5803_v20 = vpop.f32.mrf.mxu0 }
 0x670   : > { %v2330_v60 = vsel %vm231_vm1, %v5803_v20, -inf  ;;  %v3078_v17 = vpop.permute.xlu2 %3077 }
 0x671   : > { %2331 = vmax.xlane.f32.xlu2 %v2330_v60  ;;  %3732 = vmatpush.xpose.msk.msrb.mxu0 %vm141_vm0, %v3084_v14 }
 0x672   : > { %3759 = vmatpush.xpose.msk.msra.mxu1 %vm141_vm0, %v3084_v14 }
 0x674   : > { %v1339_v9 = vpop.permute.xlu1 %1338  ;;  %2325 = vmax.xlane.f32.xlu1 %v2324_v37 }
 0x675   : > { %1357 = vst.msk [vmem:[%s4643_s18 + $0x30] sm:$0xff] %vm1350_vm9, %v1339_v9  ;;  %v2054_v9 = vsub.f32 1.0, %v2053_v30  ;;  %vm2057_vm9 = vweird.f32 %v5549_v21 }
 0x676   : > { %1784 = vst.msk [vmem:[%s4643_s18 + $0x30] sm:$0xff] %vm1777_vm10, %v5406_v43  ;;  %v2651_v10 = vpop.permute.xlu0 %2650 }
 0x678   : > { %v3846_v33 = vpop.permute.xlu2 %3845 }
 0x679   : > { %v3848_v16 = vunpack.i.h.bf16 %v3846_v33  ;;  %v3847_v44 = vunpack.i.l.bf16 %v3846_v33 }
 0x67c   : > { %v3068_v11 = vpop.permute.xlu1 %3067 }
 0x67d   : > { %3733 = vmatmul.msk.f32.vlgmr.msrb.gmra.mxu0 %vm141_vm0, %v3068_v11  ;;  %v2055_v11 = vmul.f32 %v4069_v27, %v2054_v9 }
 0x67e   : > { %v3076_v48 = vpop.permute.xlu0 %3075 }
 0x680   : > { %v3861_v2 = vpop.permute.xlu2 %3860 }
 0x681   : > { %v3862_v8 = vunpack.i.l.bf16 %v3861_v2  ;;  %v3863_v18 = vunpack.i.h.bf16 %v3861_v2 }
 0x684   : > { %v2649_v26 = vpop.permute.xlu1 %2648 }
 0x685   : > { %3713 = vmatmul.msk.f32.gmra.mxu1 %vm141_vm0, %v2649_v26  ;;  %3734 = vmatmul.msk.f32.gmra.mxu0 %vm141_vm0, %v3070_v34  ;;  %v2056_v26 = vadd.f32 %v4069_v27, %v2055_v11 }
 0x686   : > { %v3080_v36 = vpop.permute.xlu0 %3079 }
 0x689   : > { %3885 = vrot.lane.b32.xlu2 %v5729_v5, %s4221_s22 }
 0x68c   : > { %v3074_v54 = vpop.permute.xlu1 %3073 }
 0x68d   : > { %3714 = vmatmul.msk.f32.gmra.mxu1 %vm141_vm0, %v2651_v10  ;;  %3735 = vmatmul.msk.f32.gmra.mxu0 %vm141_vm0, %v3072_v61  ;;  %v2061_v10 = vand.u32 2147483647, %v5549_v21 }
 0x68e   : > { %v3851_v38 = vpop.permute.xlu0 %3850 }
 0x68f   : > { %v3853_v13 = vunpack.i.h.bf16 %v3851_v38  ;;  %v3852_v29 = vunpack.i.l.bf16 %v3851_v38  ;;  %vm2062_vm11 = vcmp.eq.f32.partialorder %v2061_v10, 8.507059e+37 }
 0x694   : > { %v2655_v43 = vpop.permute.xlu1 %2654 }
 0x695   : > { %3715 = vmatmul.msk.f32.gmra.mxu1 %vm141_vm0, %v2653_v25  ;;  %3736 = vmatmul.msk.f32.gmra.mxu0 %vm141_vm0, %v3074_v54  ;;  %v2063_v25 = vand.u32 2147483648, %v5549_v21 }
 0x69c   : > { %v3082_v62 = vpop.permute.xlu1 %3081 }
 0x69d   : > { %3716 = vmatmul.msk.f32.gmra.mxu1 %vm141_vm0, %v2655_v43  ;;  %3737 = vmatmul.msk.f32.gmra.mxu0 %vm141_vm0, %v3076_v48 }
 0x6a4   : > { %v3856_v39 = vpop.permute.xlu1 %3855 }
 0x6a5   : > { %v3857_v47 = vunpack.i.l.bf16 %v3856_v39  ;;  %3738 = vmatmul.msk.f32.gmra.mxu0 %vm141_vm0, %v3078_v17  ;;  %3740 = vmatmul.msk.f32.vlgmr.msra.gmra.mxu1 %vm141_vm0, %v3082_v62  ;;  %v3858_v56 = vunpack.i.h.bf16 %v3856_v39  ;;  %v2064_v17 = vor.u32 1.1754944e-38, %v2063_v25 }
 0x6a7   : > { %2019 = vmatpush.msra.mxu3 %v3857_v47 }
 0x6a9   : > { %2020 = vmatpush.msra.mxu3 %v3858_v56 }
 0x6ab   : > { %2021 = vmatpush.msra.mxu3 %v3862_v8 }
 0x6ac   : > { %v3866_v23 = vpop.permute.xlu1 %3865 }
 0x6ad   : > { %2022 = vmatpush.msra.mxu3 %v3863_v18  ;;  %3739 = vmatmul.msk.f32.gmra.mxu0 %vm141_vm0, %v3080_v36  ;;  %v3868_v40 = vunpack.i.h.bf16 %v3866_v23  ;;  %v3867_v59 = vunpack.i.l.bf16 %v3866_v23  ;;  %vm2058_vm0 = vweird.f32 %v4069_v27 }
 0x6ae   : > { %vm2059_vm10 = vmor %vm2057_vm9, %vm2058_vm0  ;;  %vm2162_vm0 = vweird.f32 %v5608_v1 }
 0x6af   : > { %2023 = vmatpush.msra.mxu3 %v3853_v13  ;;  %2446 = vmatpush.msra.mxu2 %v3867_v59  ;;  %v2060_v54 = vsel %vm2059_vm10, %v4069_v27, %v2056_v26 }
 0x6b0   : > { %v2065_v48 = vsel %vm2062_vm11, %v2064_v17, %v2060_v54 }
 0x6b1   : > { %2024 = vmatpush.msra.mxu3 %v3852_v29  ;;  %2447 = vmatpush.msra.mxu2 %v3868_v40 }
 0x6b3   : > { %2025 = vmatpush.msra.mxu3 %v3848_v16 }
 0x6b4   : > { %v5895_v36 = vpop.permute.xlu1 %3875 }
 0x6b5   : > { %2026 = vmatpush.msra.mxu3 %v3847_v44 }
 0x6b6   : > { %3669 = vmatmul.msk.f32.vlgmr.msra.gmra.mxu3 %vm231_vm1, %v5429_v31 }
 0x6ba   : > { %v5840_v14 = vpop.f32.mrf.mxu0 }
 0x6bc   : > { %v5908_v8 = vpop.permute.xlu1 %3880 }
 0x6bd   : > { %v5832_v42 = vpop.f32.mrf.mxu1 }
 0x6be   : > { %3670 = vmatmul.msk.f32.gmra.mxu3 %vm231_vm1, %v5473_v28  ;;  %v2745_v50 = vsel %vm231_vm1, %v5832_v42, -inf }
 0x6bf   : > { %2746 = vmax.xlane.f32.xlu1 %v2745_v50 }
 0x6c6   : > { %3671 = vmatmul.msk.f32.gmra.mxu3 %vm231_vm1, %v5493_v52 }
 0x6ce   : > { %3672 = vmatmul.msk.f32.gmra.mxu3 %vm231_vm1, %v5497_v35 }
 0x6d2   : > { %v5844_v15 = vpop.f32.mrf.mxu0 }
 0x6d3   : > { %v2336_v9 = vsel %vm231_vm1, %v5844_v15, -inf }
 0x6d4   : > { %v5868_v35 = vpop.f32.mrf.mxu1 }
 0x6d6   : > { %3673 = vmatmul.msk.f32.gmra.mxu3 %vm231_vm1, %v5482_v57 }
 0x6d8   : > { %3895 = vrot.lane.b32.xlu1 %v5745_v22, %s4221_s22 }
 0x6da   : > { %v5850_v31 = vpop.f32.mrf.mxu0 }
 0x6db   : > { %v2339_v28 = vsel %vm231_vm1, %v5850_v31, -inf }
 0x6dc   : > { %2340 = vmax.xlane.f32.xlu2 %v2339_v28  ;;  %v5870_v51 = vpop.f32.mrf.mxu1 }
 0x6de   : > { %3674 = vmatmul.msk.f32.gmra.mxu3 %vm231_vm1, %v5547_v3  ;;  %v2320_v3 = vpop.xlane.xlu2 %2319 }
 0x6df   : > { %v2342_v29 = vsub.f32 %v5702_v0, %v2320_v3 }
 0x6e0   : > { %3900 = vrot.lane.b32.xlu1 %v5759_v12, %s4221_s22 }
 0x6e1   : > { %v2350_v59 = vmul.f32 1.442695, %v2342_v29  ;;  %v3883_v29 = vunpack.i.h.bf16 %v5908_v8 }
 0x6e3   : > { %4070 = vpow2.f32 %v2350_v59 }
 0x6e4   : > { %v5880_v37 = vpop.f32.mrf.mxu1 }
 0x6e5   : > { %v2754_v39 = vsel %vm231_vm1, %v5880_v37, -inf }
 0x6e6   : > { %3675 = vmatmul.msk.f32.gmra.mxu3 %vm231_vm1, %v5563_v55  ;;  %v2751_v55 = vsel %vm231_vm1, %v5870_v51, -inf }
 0x6e7   : > { %v2326_v13 = vpop.xlane.xlu1 %2325 }
 0x6e8   : > { %3905 = vrot.lane.b32.xlu1 %v5729_v5, %s4220_s21  ;;  %v2329_v5 = vpop.xlane.xlu2 %2328  ;;  %v2344_v23 = vsub.f32 %v5768_v63, %v2326_v13 }
 0x6ea   : > { %v2354_v44 = vmul.f32 1.442695, %v2344_v23 }
 0x6ec   : > { %4072 = vpow2.f32 %v2354_v44 }
 0x6ee   : > { %3676 = vmatmul.msk.f32.gmra.mxu3 %vm231_vm1, %v5487_v53 }
 0x6f0   : > { %v5877_v53 = vpop.xlane.xlu2 %2331 }
 0x6f8   : > { %v3886_v7 = vpop.permute.xlu2 %3885 }
 0x6f9   : > { %v3888_v32 = vunpack.i.h.bf16 %v3886_v7  ;;  %v3887_v60 = vunpack.i.l.bf16 %v3886_v7 }
 0x6fa   : > { %v5864_v57 = vpop.f32.mrf.mxu0 }
 0x6fb   : > { %v3172_v52 = vsel %vm231_vm1, %v5864_v57, -inf  ;;  %2873 = vmatpush.msrb.mxu3 %v3887_v60  ;;  %v2333_v60 = vsel %vm231_vm1, %v5840_v14, -inf }
 0x6fc   : > { %3173 = vmax.xlane.f32.xlu2 %v3172_v52  ;;  %v2345_v52 = vsub.f32 %v5779_v41, %v2329_v5 }
 0x6fd   : > { %2874 = vmatpush.msrb.mxu3 %v3888_v32  ;;  %v2321_v32 = vsel %vm231_vm1, %v5753_v45, -inf }
 0x6fe   : > { %v2356_v3 = vmul.f32 1.442695, %v2345_v52 }
 0x700   : > { %4074 = vpow2.f32 %v2356_v3 }
 0x702   : > { %v5884_v61 = vpop.f32.mrf.mxu1  ;;  %v5886_v34 = vpop.f32.mrf.mxu0 }
 0x703   : > { %v2757_v16 = vsel %vm231_vm1, %v5884_v61, -inf }
 0x70a   : > { %v5891_v33 = vpop.f32.mrf.mxu1  ;;  %v5893_v62 = vpop.f32.mrf.mxu0 }
 0x70b   : > { %v3178_v21 = vsel %vm231_vm1, %v5893_v62, -inf }
 0x712   : > { %2752 = vmax.xlane.f32.xlu1 %v2751_v55  ;;  %v5904_v47 = vpop.f32.mrf.mxu1  ;;  %v5906_v2 = vpop.f32.mrf.mxu0 }
 0x713   : > { %v3181_v56 = vsel %vm231_vm1, %v5906_v2, -inf  ;;  %v4071_v55 = vpop.eup %4070 }
 0x714   : > { %3910 = vrot.lane.b32.xlu2 %v5617_v19, %s4220_s21  ;;  %v5931_v27 = vpop.eup %4072  ;;  %v2366_v30 = vsel %vm231_vm1, %v4071_v55, 0.0 }
 0x715   : > { %v2372_v7 = vsel %vm231_vm1, %v5931_v27, 0.0  ;;  %v5936_v41 = vpop.eup %4074 }
 0x716   : > { %v2375_v5 = vsel %vm231_vm1, %v5936_v41, 0.0 }
 0x71a   : > { %v5912_v38 = vpop.f32.mrf.mxu1  ;;  %v5914_v18 = vpop.f32.mrf.mxu0 }
 0x71b   : > { %v3184_v40 = vsel %vm231_vm1, %v5914_v18, -inf }
 0x722   : > { %v5922_v50 = vpop.f32.mrf.mxu0  ;;  %v5924_v28 = vpop.f32.mrf.mxu1 }
 0x723   : > { %v3193_v0 = vsel %vm231_vm1, %v5924_v28, -inf  ;;  %v3187_v63 = vsel %vm231_vm1, %v5922_v50, -inf }
 0x72b   : > { %3920 = vrot.lane.b32.xlu1 %v5759_v12, %s4220_s21 }
 0x732   : > { %v2747_v11 = vpop.xlane.xlu1 %2746 }
 0x739   : > { %v2028_v43 = vpop.f32.mrf.mxu3 }
 0x73a   : > { %v2066_v12 = vmul.f32 %v2065_v48, %v2028_v43 }
 0x73c   : > { %2180 = vrot.lane.b32.xlu0 %v2066_v12, %s4218_s19  ;;  %v3877_v12 = vunpack.i.l.bf16 %v5895_v36 }
 0x73d   : > { %2755 = vmax.xlane.f32.xlu2 %v2754_v39 }
 0x744   : > { %3870 = vrot.lane.b32.xlu0 %v5617_v19, %s4219_s20 }
 0x745   : > { %3179 = vmax.xlane.f32.xlu2 %v3178_v21  ;;  %v3878_v21 = vunpack.i.h.bf16 %v5895_v36 }
 0x74a   : > { %v5948_v26 = vpop.permute.xlu1 %3895 }
 0x74d   : > { %3182 = vmax.xlane.f32.xlu2 %v3181_v56  ;;  %v3882_v56 = vunpack.i.l.bf16 %v5908_v8 }
 0x74f   : > { %v5952_v10 = vpop.xlane.xlu2 %2340 }
 0x752   : > { %v5954_v54 = vpop.permute.xlu1 %3900 }
 0x755   : > { %2758 = vmax.xlane.f32.xlu1 %v2757_v16  ;;  %3185 = vmax.xlane.f32.xlu2 %v3184_v40 }
 0x75a   : > { %v5963_v13 = vpop.permute.xlu1 %3905 }
 0x75b   : > { %v3907_v23 = vunpack.i.l.bf16 %v5963_v13  ;;  %v3908_v16 = vunpack.i.h.bf16 %v5963_v13 }
 0x75d   : > { %3194 = vmax.xlane.f32.xlu1 %v3193_v0  ;;  %3188 = vmax.xlane.f32.xlu2 %v3187_v63 }
 0x765   : > { %2373 = vadd.xlane.f32.xlu1 %v2372_v7  ;;  %2367 = vadd.xlane.f32.xlu2 %v2366_v30 }
 0x76d   : > { %2376 = vadd.xlane.f32.xlu2 %v2375_v5 }
 0x76e   : > { %2322 = vmax.xlane.f32.xlu0 %v2321_v32 }
 0x76f   : > { %v5959_v39 = vpop.xlane.xlu2 %3173 }
 0x776   : > { %2334 = vmax.xlane.f32.xlu0 %v2333_v60 }
 0x777   : > { %v5968_v40 = vpop.permute.xlu2 %3910 }
 0x778   : > { %v3912_v36 = vunpack.i.l.bf16 %v5968_v40  ;;  %v3913_v59 = vunpack.i.h.bf16 %v5968_v40 }
 0x77e   : > { %2337 = vmax.xlane.f32.xlu0 %v2336_v9 }
 0x792   : > { %3890 = vrot.lane.b32.xlu0 %v5617_v19, %s4221_s22  ;;  %v2748_v19 = vsel %vm231_vm1, %v5868_v35, -inf }
 0x7ae   : > { %v2181_v25 = vpop.permute.xlu0 %2180 }
 0x7af   : > { %2205 = vst.msk [vmem:[%s4643_s18] sm:$0xff] %vm2204_vm12, %v2181_v25  ;;  %v3175_v25 = vsel %vm231_vm1, %v5886_v34, -inf }
 0x7b0   : > { %v2756_v5 = vpop.xlane.xlu2 %2755 }
 0x7b1   : > { %v2772_v60 = vsub.f32 %v5880_v37, %v2756_v5 }
 0x7b6   : > { %v3871_v17 = vpop.permute.xlu0 %3870 }
 0x7b7   : > { %v3872_v43 = vunpack.i.l.bf16 %v3871_v17  ;;  %v3873_v48 = vunpack.i.h.bf16 %v3871_v17 }
 0x7b9   : > { %2448 = vmatpush.msra.mxu2 %v3872_v43 }
 0x7bb   : > { %2449 = vmatpush.msra.mxu2 %v3873_v48 }
 0x7bc   : > { %2749 = vmax.xlane.f32.xlu0 %v2748_v19 }
 0x7bd   : > { %2450 = vmatpush.msra.mxu2 %v3877_v12 }
 0x7bf   : > { %2451 = vmatpush.msra.mxu2 %v3878_v21 }
 0x7c1   : > { %2452 = vmatpush.msra.mxu2 %v3882_v56  ;;  %v3897_v56 = vunpack.i.l.bf16 %v5948_v26 }
 0x7c3   : > { %2453 = vmatpush.msra.mxu2 %v3883_v29  ;;  %v2763_v29 = vsel %vm231_vm1, %v5904_v47, -inf }
 0x7c4   : > { %3693 = vmatmul.msk.f32.vlgmr.msra.gmra.mxu2 %vm231_vm1, %v4071_v55  ;;  %v2769_v55 = vsub.f32 %v5832_v42, %v2747_v11  ;;  %v2783_v11 = vmul.f32 1.442695, %v2772_v60 }
 0x7c5   : > { %3300 = vmatpush.msrb.mxu2 %v3907_v23 }
 0x7c6   : > { %v2777_v30 = vmul.f32 1.442695, %v2769_v55 }
 0x7c7   : > { %3301 = vmatpush.msrb.mxu2 %v3908_v16 }
 0x7c9   : > { %3302 = vmatpush.msrb.mxu2 %v3912_v36 }
 0x7cb   : > { %3303 = vmatpush.msrb.mxu2 %v3913_v59 }
 0x7d0   : > { %3915 = vrot.lane.b32.xlu0 %v5745_v22, %s4220_s21 }
 0x7e1   : > { %v2323_v8 = vpop.xlane.xlu0 %2322 }
 0x7e2   : > { %v2343_v44 = vsub.f32 %v5753_v45, %v2323_v8  ;;  %v3898_v8 = vunpack.i.h.bf16 %v5948_v26 }
 0x7e4   : > { %v2352_v52 = vmul.f32 1.442695, %v2343_v44  ;;  %v3902_v44 = vunpack.i.l.bf16 %v5954_v54 }
 0x7e6   : > { %4076 = vpow2.f32 %v2352_v52  ;;  %v2349_v52 = vsub.f32 %v5850_v31, %v5952_v10  ;;  %v6027_v31 = vpop.f32.mrf.mxu0 }
 0x7e7   : > { %v3190_v26 = vsel %vm231_vm1, %v6027_v31, -inf }
 0x7e8   : > { %v2364_v55 = vmul.f32 1.442695, %v2349_v52 }
 0x7e9   : > { %v2335_v0 = vpop.xlane.xlu0 %2334 }
 0x7ea   : > { %v2347_v63 = vsub.f32 %v5840_v14, %v2335_v0  ;;  %v2346_v14 = vsub.f32 %v5803_v20, %v5877_v53  ;;  %v2760_v20 = vsel %vm231_vm1, %v5891_v33, -inf  ;;  %v3903_v0 = vunpack.i.h.bf16 %v5954_v54  ;;  %v2753_v54 = vpop.xlane.xlu1 %2752 }
 0x7ec   : > { %v5985_v3 = vpop.eup %4076  ;;  %v2360_v7 = vmul.f32 1.442695, %v2347_v63  ;;  %v2358_v17 = vmul.f32 1.442695, %v2346_v14  ;;  %v2766_v63 = vsel %vm231_vm1, %v5912_v38, -inf }
 0x7ed   : > { %3694 = vmatmul.msk.f32.gmra.mxu2 %vm231_vm1, %v5985_v3  ;;  %v2369_v13 = vsel %vm231_vm1, %v5985_v3, 0.0 }
 0x7ee   : > { %4078 = vpow2.f32 %v2360_v7 }
 0x7ef   : > { %4080 = vpow2.f32 %v2777_v30 }
 0x7f1   : > { %v2338_v22 = vpop.xlane.xlu0 %2337 }
 0x7f2   : > { %v2348_v32 = vsub.f32 %v5844_v15, %v2338_v22 }
 0x7f4   : > { %v4079_v45 = vpop.eup %4078  ;;  %v2362_v9 = vmul.f32 1.442695, %v2348_v32 }
 0x7f5   : > { %3695 = vmatmul.msk.f32.gmra.mxu2 %vm231_vm1, %v5931_v27  ;;  %v2381_v42 = vsel %vm231_vm1, %v4079_v45, 0.0  ;;  %v4081_v15 = vpop.eup %4080 }
 0x7f6   : > { %4082 = vpow2.f32 %v2362_v9  ;;  %2382 = vadd.xlane.f32.xlu1 %v2381_v42  ;;  %v2793_v37 = vsel %vm231_vm1, %v4081_v15, 0.0 }
 0x7f7   : > { %4084 = vpow2.f32 %v2783_v11 }
 0x7f8   : > { %4086 = vpow2.f32 %v2358_v17 }
 0x7f9   : > { %4088 = vpow2.f32 %v2364_v55 }
 0x7fa   : > { %3176 = vmax.xlane.f32.xlu0 %v3175_v25 }
 0x7fc   : > { %v4083_v43 = vpop.eup %4082 }
 0x7fd   : > { %3696 = vmatmul.msk.f32.gmra.mxu2 %vm231_vm1, %v5936_v41  ;;  %v2384_v27 = vsel %vm231_vm1, %v4083_v43, 0.0  ;;  %v6005_v53 = vpop.eup %4084 }
 0x7fe   : > { %2794 = vadd.xlane.f32.xlu1 %v2793_v37  ;;  %2385 = vadd.xlane.f32.xlu2 %v2384_v27  ;;  %v4087_v48 = vpop.eup %4086  ;;  %v2802_v41 = vsel %vm231_vm1, %v6005_v53, 0.0 }
 0x7ff   : > { %v4089_v10 = vpop.eup %4088 }
 0x802   : > { %2761 = vmax.xlane.f32.xlu0 %v2760_v20 }
 0x804   : > { %v3891_v12 = vpop.permute.xlu0 %3890 }
 0x805   : > { %v3892_v19 = vunpack.i.l.bf16 %v3891_v12  ;;  %3697 = vmatmul.msk.f32.gmra.mxu2 %vm231_vm1, %v4087_v48  ;;  %v3893_v21 = vunpack.i.h.bf16 %v3891_v12 }
 0x806   : > { %2803 = vadd.xlane.f32.xlu1 %v2802_v41 }
 0x807   : > { %2875 = vmatpush.msrb.mxu3 %v3892_v19 }
 0x809   : > { %2876 = vmatpush.msrb.mxu3 %v3893_v21 }
 0x80a   : > { %2764 = vmax.xlane.f32.xlu0 %v2763_v29 }
 0x80b   : > { %2877 = vmatpush.msrb.mxu3 %v3897_v56  ;;  %v6057_v56 = vpop.f32.mrf.mxu3 }
 0x80d   : > { %3698 = vmatmul.msk.f32.gmra.mxu2 %vm231_vm1, %v4079_v45  ;;  %2878 = vmatpush.msrb.mxu3 %v3898_v8 }
 0x80f   : > { %2879 = vmatpush.msrb.mxu3 %v3902_v44 }
 0x811   : > { %2880 = vmatpush.msrb.mxu3 %v3903_v0 }
 0x812   : > { %2767 = vmax.xlane.f32.xlu0 %v2766_v63  ;;  %3717 = vmatmul.msk.f32.vlgmr.msrb.gmra.mxu3 %vm231_vm1, %v4081_v15 }
 0x813   : > { %3760 = vmatpush.msra.mxu3 %v3907_v23  ;;  %v3921_v23 = vpop.permute.xlu1 %3920 }
 0x814   : > { %v3922_v17 = vunpack.i.l.bf16 %v3921_v23 }
 0x815   : > { %3699 = vmatmul.msk.f32.gmra.mxu2 %vm231_vm1, %v4083_v43  ;;  %3761 = vmatpush.msra.mxu3 %v3908_v16  ;;  %v2771_v16 = vsub.f32 %v5870_v51, %v2753_v54  ;;  %v3923_v43 = vunpack.i.h.bf16 %v3921_v23 }
 0x817   : > { %3762 = vmatpush.msra.mxu3 %v3912_v36  ;;  %v2378_v36 = vsel %vm231_vm1, %v4087_v48, 0.0  ;;  %v2781_v7 = vmul.f32 1.442695, %v2771_v16 }
 0x819   : > { %3763 = vmatpush.msra.mxu3 %v3913_v59  ;;  %4090 = vpow2.f32 %v2781_v7  ;;  %v2387_v59 = vsel %vm231_vm1, %v4089_v10, 0.0 }
 0x81a   : > { %3191 = vmax.xlane.f32.xlu0 %v3190_v26  ;;  %v6069_v26 = vpop.f32.mrf.mxu3 }
 0x81b   : > { %v2759_v30 = vpop.xlane.xlu1 %2758 }
 0x81c   : > { %v2773_v22 = vsub.f32 %v5884_v61, %v2759_v30 }
 0x81d   : > { %3700 = vmatmul.msk.f32.gmra.mxu2 %vm231_vm1, %v4089_v10 }
 0x81e   : > { %v2785_v45 = vmul.f32 1.442695, %v2773_v22 }
 0x81f   : > { %v4091_v3 = vpop.eup %4090 }
 0x820   : > { %v2799_v51 = vsel %vm231_vm1, %v4091_v3, 0.0 }
 0x822   : > { %2370 = vadd.xlane.f32.xlu0 %v2369_v13 }
 0x82a   : > { %2379 = vadd.xlane.f32.xlu0 %v2378_v36 }
 0x82f   : > { %v2750_v5 = vpop.xlane.xlu0 %2749 }
 0x830   : > { %v2770_v40 = vsub.f32 %v5868_v35, %v2750_v5  ;;  %v3196_v35 = vsub.f32 %v5864_v57, %v5959_v39  ;;  %v3180_v39 = vpop.xlane.xlu2 %3179 }
 0x831   : > { %v3198_v48 = vsub.f32 %v5893_v62, %v3180_v39 }
 0x832   : > { %v2779_v32 = vmul.f32 1.442695, %v2770_v40  ;;  %2388 = vadd.xlane.f32.xlu0 %v2387_v59  ;;  %v3204_v61 = vmul.f32 1.442695, %v3196_v35 }
 0x833   : > { %v3208_v19 = vmul.f32 1.442695, %v3198_v48 }
 0x834   : > { %4092 = vpow2.f32 %v2779_v32 }
 0x835   : > { %4094 = vpow2.f32 %v2785_v45 }
 0x836   : > { %4096 = vpow2.f32 %v3204_v61 }
 0x838   : > { %v3183_v12 = vpop.xlane.xlu2 %3182 }
 0x839   : > { %v3199_v8 = vsub.f32 %v5906_v2, %v3183_v12 }
 0x83a   : > { %v4093_v60 = vpop.eup %4092  ;;  %2800 = vadd.xlane.f32.xlu0 %v2799_v51 }
 0x83b   : > { %3718 = vmatmul.msk.f32.gmra.mxu3 %vm231_vm1, %v4093_v60  ;;  %v2796_v9 = vsel %vm231_vm1, %v4093_v60, 0.0  ;;  %v4095_v42 = vpop.eup %4094  ;;  %v3210_v44 = vmul.f32 1.442695, %v3199_v8 }
 0x83c   : > { %2797 = vadd.xlane.f32.xlu2 %v2796_v9  ;;  %v2805_v25 = vsel %vm231_vm1, %v4095_v42, 0.0  ;;  %v4097_v57 = vpop.eup %4096 }
 0x83d   : > { %v3220_v5 = vsel %vm231_vm1, %v4097_v57, 0.0 }
 0x842   : > { %v3916_v14 = vpop.permute.xlu0 %3915 }
 0x843   : > { %v3917_v11 = vunpack.i.l.bf16 %v3916_v14  ;;  %3719 = vmatmul.msk.f32.gmra.mxu3 %vm231_vm1, %v4091_v3  ;;  %v3918_v15 = vunpack.i.h.bf16 %v3916_v14 }
 0x844   : > { %2806 = vadd.xlane.f32.xlu2 %v2805_v25 }
 0x845   : > { %3304 = vmatpush.msrb.mxu2 %v3917_v11  ;;  %3764 = vmatpush.msra.mxu3 %v3917_v11 }
 0x847   : > { %3305 = vmatpush.msrb.mxu2 %v3918_v15  ;;  %3765 = vmatpush.msra.mxu3 %v3918_v15  ;;  %v6085_v3 = vpop.f32.mrf.mxu2 }
 0x849   : > { %3306 = vmatpush.msrb.mxu2 %v3922_v17  ;;  %3766 = vmatpush.msra.mxu3 %v3922_v17 }
 0x84b   : > { %3720 = vmatmul.msk.f32.gmra.mxu3 %vm231_vm1, %v6005_v53  ;;  %3307 = vmatpush.msrb.mxu2 %v3923_v43 }
 0x84c   : > { %3741 = vmatmul.msk.f32.vlgmr.msrb.gmra.mxu2 %vm231_vm1, %v4097_v57  ;;  %3767 = vmatpush.msra.mxu3 %v3923_v43 }
 0x853   : > { %3721 = vmatmul.msk.f32.gmra.mxu3 %vm231_vm1, %v4095_v42 }
 0x86d   : > { %v3177_v37 = vpop.xlane.xlu0 %3176 }
 0x86e   : > { %v3197_v27 = vsub.f32 %v5886_v34, %v3177_v37  ;;  %v3186_v34 = vpop.xlane.xlu2 %3185 }
 0x870   : > { %v3206_v20 = vmul.f32 1.442695, %v3197_v27  ;;  %v6106_v43 = vpop.f32.mrf.mxu2 }
 0x872   : > { %4098 = vpow2.f32 %v3206_v20 }
 0x873   : > { %4100 = vpow2.f32 %v3208_v19 }
 0x875   : > { %v2762_v41 = vpop.xlane.xlu0 %2761 }
 0x876   : > { %v2774_v21 = vsub.f32 %v5891_v33, %v2762_v41  ;;  %v3200_v33 = vsub.f32 %v5914_v18, %v3186_v34  ;;  %v3189_v13 = vpop.xlane.xlu2 %3188 }
 0x877   : > { %v3201_v30 = vsub.f32 %v5922_v50, %v3189_v13 }
 0x878   : > { %v4099_v53 = vpop.eup %4098  ;;  %v2787_v29 = vmul.f32 1.442695, %v2774_v21  ;;  %v3212_v10 = vmul.f32 1.442695, %v3200_v33  ;;  %v2078_v21 = vand.u32 2147483648, %v5581_v58 }
 0x879   : > { %3742 = vmatmul.msk.f32.gmra.mxu2 %vm231_vm1, %v4099_v53  ;;  %v6062_v0 = vpop.eup %4100  ;;  %v3214_v59 = vmul.f32 1.442695, %v3201_v30  ;;  %v3223_v9 = vsel %vm231_vm1, %v4099_v53, 0.0 }
 0x87a   : > { %4102 = vpow2.f32 %v2787_v29  ;;  %v3226_v19 = vsel %vm231_vm1, %v6062_v0, 0.0  ;;  %v6137_v33 = vor.u32 1.1754944e-38, %v2078_v21 }
 0x87b   : > { %4104 = vpow2.f32 %v3210_v44 }
 0x87d   : > { %v2765_v52 = vpop.xlane.xlu0 %2764 }
 0x87e   : > { %v2775_v62 = vsub.f32 %v5904_v47, %v2765_v52  ;;  %v3195_v47 = vpop.xlane.xlu1 %3194 }
 0x87f   : > { %v3203_v18 = vsub.f32 %v5924_v28, %v3195_v47 }
 0x880   : > { %v4103_v63 = vpop.eup %4102  ;;  %v2789_v55 = vmul.f32 1.442695, %v2775_v62  ;;  %v6130_v62 = vpop.xlane.xlu2 %2367 }
 0x881   : > { %3722 = vmatmul.msk.f32.gmra.mxu3 %vm231_vm1, %v4103_v63  ;;  %3743 = vmatmul.msk.f32.gmra.mxu2 %vm231_vm1, %v6062_v0  ;;  %v2808_v2 = vsel %vm231_vm1, %v4103_v63, 0.0  ;;  %v4105_v16 = vpop.eup %4104  ;;  %v3218_v28 = vmul.f32 1.442695, %v3203_v18  ;;  %v2490_v21 = vand.u32 2147483648, %v6130_v62 }
 0x882   : > { %4106 = vpow2.f32 %v2789_v55  ;;  %2809 = vadd.xlane.f32.xlu0 %v2808_v2  ;;  %v3229_v60 = vsel %vm231_vm1, %v4105_v16, 0.0  ;;  %v2076_v55 = vand.u32 2147483647, %v5581_v58 }
 0x883   : > { %4108 = vpow2.f32 %v3212_v10 }
 0x884   : > { %vm6189_vm6 = vcmp.eq.f32.partialorder %v2076_v55, 8.507059e+37 }
 0x885   : > { %v2768_v54 = vpop.xlane.xlu0 %2767 }
 0x886   : > { %v2776_v23 = vsub.f32 %v5912_v38, %v2768_v54  ;;  %v6079_v38 = vpop.f32.mrf.mxu3 }
 0x888   : > { %v4107_v36 = vpop.eup %4106  ;;  %v2791_v7 = vmul.f32 1.442695, %v2776_v23  ;;  %v2121_v23 = vand.u32 2147483647, %v5591_v4 }
 0x889   : > { %3723 = vmatmul.msk.f32.gmra.mxu3 %vm231_vm1, %v4107_v36  ;;  %3744 = vmatmul.msk.f32.gmra.mxu2 %vm231_vm1, %v4105_v16  ;;  %v2811_v40 = vsel %vm231_vm1, %v4107_v36, 0.0  ;;  %v4109_v32 = vpop.eup %4108  ;;  %v6149_v16 = vpop.f32.mrf.mxu2 }
 0x88a   : > { %4110 = vpow2.f32 %v2791_v7  ;;  %3221 = vadd.xlane.f32.xlu0 %v3220_v5  ;;  %2812 = vadd.xlane.f32.xlu1 %v2811_v40  ;;  %v3232_v27 = vsel %vm231_vm1, %v4109_v32, 0.0  ;;  %v2123_v7 = vand.u32 2147483648, %v5591_v4  ;;  %v6156_v5 = vpop.xlane.xlu1 %2373  ;;  %vm6199_vm8 = vcmp.eq.f32.partialorder %v2121_v23, 8.507059e+37 }
 0x88b   : > { %4112 = vrcp.f32 %v5581_v58  ;;  %v2518_v55 = vand.u32 2147483647, %v6156_v5 }
 0x88c   : > { %4114 = vrcp.f32 %v5591_v4 }
 0x88d   : > { %v3192_v50 = vpop.xlane.xlu0 %3191  ;;  %4116 = vrcp.f32 %v5608_v1 }
 0x88e   : > { %v3202_v22 = vsub.f32 %v6027_v31, %v3192_v50  ;;  %4118 = vrcp.f32 %v5631_v46  ;;  %v6101_v25 = vpop.f32.mrf.mxu3 }
 0x88f   : > { %4120 = vpow2.f32 %v3218_v28 }
 0x890   : > { %v4111_v45 = vpop.eup %4110  ;;  %v3216_v51 = vmul.f32 1.442695, %v3202_v22  ;;  %4122 = vpow2.f32 %v3214_v59  ;;  %v2168_v59 = vand.u32 2147483648, %v5608_v1  ;;  %v2091_v22 = vand.u32 2147483647, %v5631_v46 }
 0x891   : > { %3724 = vmatmul.msk.f32.gmra.mxu3 %vm231_vm1, %v4111_v45  ;;  %3745 = vmatmul.msk.f32.gmra.mxu2 %vm231_vm1, %v4109_v32  ;;  %v2814_v35 = vsel %vm231_vm1, %v4111_v45, 0.0  ;;  %v6092_v31 = vpop.eup %4112 }
 0x892   : > { %4124 = vpow2.f32 %v3216_v51  ;;  %3230 = vadd.xlane.f32.xlu0 %v3229_v60  ;;  %3224 = vadd.xlane.f32.xlu1 %v3223_v9  ;;  %v6094_v42 = vpop.eup %4114  ;;  %v2068_v17 = vmul.f32 %v6092_v31, %v5581_v58  ;;  %vm2073_vm14 = vweird.f32 %v6092_v31  ;;  %v2093_v60 = vand.u32 2147483648, %v5631_v46 }
 0x893   : > { %4126 = vrcp.f32 %v5659_v49  ;;  %2815 = vadd.xlane.f32.xlu2 %v2814_v35  ;;  %v6097_v61 = vpop.eup %4116  ;;  %v2113_v48 = vmul.f32 %v6094_v42, %v5591_v4  ;;  %vm2118_vm2 = vweird.f32 %v6094_v42  ;;  %vm2092_vm11 = vcmp.eq.f32.partialorder %v2091_v22, 8.507059e+37 }
 0x894   : > { %v6099_v14 = vpop.eup %4118  ;;  %4128 = vrcp.f32 %v5712_v24  ;;  %v2158_v12 = vmul.f32 %v6097_v61, %v5608_v1  ;;  %v2069_v41 = vsub.f32 1.0, %v2068_v17  ;;  %vm2163_vm5 = vweird.f32 %v6097_v61  ;;  %vm6214_vm10 = vmor %vm2117_vm15, %vm2118_vm2 }
 0x895   : > { %v4121_v11 = vpop.eup %4120  ;;  %v2083_v39 = vmul.f32 %v6099_v14, %v5631_v46  ;;  %4130 = vrcp.f32 %v5725_v6  ;;  %v2114_v44 = vsub.f32 1.0, %v2113_v48  ;;  %v6132_v63 = vpop.xlane.xlu0 %2370  ;;  %vm2088_vm4 = vweird.f32 %v6099_v14 }
 0x896   : > { %v4123_v15 = vpop.eup %4122  ;;  %v2159_v52 = vsub.f32 1.0, %v2158_v12  ;;  %v2070_v0 = vmul.f32 %v6092_v31, %v2069_v41  ;;  %v6142_v47 = vpop.f32.mrf.mxu3  ;;  %v3241_v36 = vsel %vm231_vm1, %v4121_v11, 0.0  ;;  %4132 = vrcp.f32 %v6132_v63  ;;  %vm6195_vm7 = vmor %vm2087_vm3, %vm2088_vm4 }
 0x897   : > { %v2084_v29 = vsub.f32 1.0, %v2083_v39  ;;  %v2115_v18 = vmul.f32 %v6094_v42, %v2114_v44  ;;  %v3235_v40 = vsel %vm231_vm1, %v4123_v15, 0.0  ;;  %4134 = vrcp.f32 %v6156_v5  ;;  %v6218_v12 = vpop.xlane.xlu2 %2376  ;;  %v6241_v44 = vpop.xlane.xlu1 %2382 }
 0x898   : > { %v4125_v57 = vpop.eup %4124  ;;  %v2160_v30 = vmul.f32 %v6097_v61, %v2159_v52  ;;  %v6160_v28 = vadd.f32 %v6092_v31, %v2070_v0  ;;  %v2124_v39 = vor.u32 1.1754944e-38, %v2123_v7  ;;  %v2169_v48 = vor.u32 1.1754944e-38, %v2168_v59 }
 0x899   : > { %v6111_v37 = vpop.eup %4126  ;;  %3746 = vmatmul.msk.f32.gmra.mxu2 %vm231_vm1, %v4123_v15  ;;  %3748 = vmatmul.msk.f32.vlgmr.msra.gmra.mxu3 %vm231_vm1, %v4121_v11  ;;  %v3238_v20 = vsel %vm231_vm1, %v4125_v57, 0.0  ;;  %v2085_v10 = vmul.f32 %v6099_v14, %v2084_v29  ;;  %v2116_v35 = vadd.f32 %v6094_v42, %v2115_v18  ;;  %4136 = vrcp.f32 %v6130_v62 }
 0x89a   : > { %3233 = vadd.xlane.f32.xlu1 %v3232_v27  ;;  %3239 = vadd.xlane.f32.xlu0 %v3238_v20  ;;  %v2098_v53 = vmul.f32 %v6111_v37, %v5659_v49  ;;  %v6126_v8 = vpop.eup %4128  ;;  %v6181_v11 = vadd.f32 %v6097_v61, %v2160_v30  ;;  %v2166_v27 = vand.u32 2147483647, %v5608_v1  ;;  %vm2103_vm9 = vweird.f32 %v6111_v37 }
 0x89b   : > { %3227 = vadd.xlane.f32.xlu2 %v3226_v19  ;;  %v6128_v34 = vpop.eup %4130  ;;  %v2128_v54 = vmul.f32 %v6126_v8, %v5712_v24  ;;  %v2086_v50 = vadd.f32 %v6099_v14, %v2085_v10  ;;  %v2094_v19 = vor.u32 1.1754944e-38, %v2093_v60  ;;  %v2120_v4 = vsel %vm6214_vm10, %v6094_v42, %v2116_v35 }
 0x89c   : > { %v2099_v2 = vsub.f32 1.0, %v2098_v53  ;;  %v2143_v13 = vmul.f32 %v6128_v34, %v5725_v6  ;;  %v6243_v52 = vpop.eup %4132  ;;  %v2106_v42 = vand.u32 2147483647, %v5659_v49  ;;  %4138 = vrcp.f32 %v6218_v12 }
 0x89d   : > { %v2129_v45 = vsub.f32 1.0, %v2128_v54  ;;  %v6220_v1 = vpop.xlane.xlu0 %2379  ;;  %v6256_v10 = vpop.eup %4134  ;;  %vm2132_vm3 = vweird.f32 %v5712_v24  ;;  %vm2133_vm2 = vweird.f32 %v6126_v8  ;;  %vm2148_vm4 = vweird.f32 %v6128_v34 }
 0x89e   : > { %v2100_v32 = vmul.f32 %v6111_v37, %v2099_v2  ;;  %v2144_v51 = vsub.f32 1.0, %v2143_v13  ;;  %v6234_v53 = vpop.f32.mrf.mxu3  ;;  %v2108_v2 = vand.u32 2147483648, %v5659_v49  ;;  %4140 = vrcp.f32 %v6220_v1 }
 0x89f   : > { %v2153_v18 = vand.u32 2147483648, %v5725_v6  ;;  %v2151_v30 = vand.u32 2147483647, %v5725_v6  ;;  %4142 = vrcp.f32 %v6241_v44  ;;  %vm2484_vm10 = vweird.f32 %v6130_v62 }
 0x8a0   : > { %v2101_v20 = vadd.f32 %v6111_v37, %v2100_v32  ;;  %v2145_v41 = vmul.f32 %v6128_v34, %v2144_v51  ;;  %v2109_v59 = vor.u32 1.1754944e-38, %v2108_v2  ;;  %v2520_v2 = vand.u32 2147483648, %v6156_v5 }
 0x8a1   : > { %3747 = vmatmul.msk.f32.gmra.mxu2 %vm231_vm1, %v4125_v57  ;;  %vm6175_vm1 = vmor %vm2072_vm13, %vm2073_vm14  ;;  %vm2102_vm14 = vweird.f32 %v5659_v49  ;;  %v2154_v9 = vor.u32 1.1754944e-38, %v2153_v18  ;;  %v2505_v18 = vand.u32 2147483648, %v6132_v63  ;;  %v2533_v22 = vand.u32 2147483647, %v6218_v12 }
 0x8a2   : > { %3242 = vadd.xlane.f32.xlu1 %v3241_v36  ;;  %v2075_v15 = vsel %vm6175_vm1, %v6092_v31, %v6160_v28  ;;  %v2090_v31 = vsel %vm6195_vm7, %v6099_v14, %v2086_v50  ;;  %v2130_v14 = vmul.f32 %v6126_v8, %v2129_v45  ;;  %vm6226_vm13 = vmor %vm2162_vm0, %vm2163_vm5  ;;  %v2146_v49 = vadd.f32 %v6128_v34, %v2145_v41 }
 0x8a3   : > { %3236 = vadd.xlane.f32.xlu2 %v3235_v40  ;;  %v2165_v29 = vsel %vm6226_vm13, %v6097_v61, %v6181_v11  ;;  %v2095_v0 = vsel %vm2092_vm11, %v2094_v19, %v2090_v31  ;;  %vm6247_vm15 = vmor %vm2102_vm14, %vm2103_vm9  ;;  %v6254_v61 = vpop.f32.mrf.mxu2  ;;  %v2136_v36 = vand.u32 2147483647, %v5712_v24  ;;  %vm2147_vm5 = vweird.f32 %v5725_v6  ;;  %v6313_v31 = vpop.xlane.xlu1 %2794 }
 0x8a4   : > { %v2096_v54 = vmul.f32 %v2095_v0, %v6069_v26  ;;  %v2105_v13 = vsel %vm6247_vm15, %v6111_v37, %v2101_v20  ;;  %v2131_v23 = vadd.f32 %v6126_v8, %v2130_v14  ;;  %v2138_v26 = vand.u32 2147483648, %v5712_v24  ;;  %vm6274_vm1 = vmor %vm2132_vm3, %vm2133_vm2  ;;  %v6283_v24 = vpop.eup %4136  ;;  %v6322_v14 = vpop.xlane.xlu2 %2385 }
 0x8a5   : > { %v2495_v37 = vmul.f32 %v6243_v52, %v6132_v63  ;;  %v2510_v40 = vmul.f32 %v6256_v10, %v6156_v5  ;;  %v2080_v28 = vsel %vm6189_vm6, %v6137_v33, %v2075_v15  ;;  %v2125_v50 = vsel %vm6199_vm8, %v2124_v39, %v2120_v4  ;;  %vm6292_vm7 = vmor %vm2147_vm5, %vm2148_vm4  ;;  %v6296_v6 = vpop.eup %4138  ;;  %v6304_v11 = vpop.xlane.xlu0 %2388 }
 0x8a6   : > { %vm2167_vm0 = vcmp.eq.f32.partialorder %v2166_v27, 8.507059e+37  ;;  %vm2107_vm9 = vcmp.eq.f32.partialorder %v2106_v42, 8.507059e+37  ;;  %v2135_v32 = vsel %vm6274_vm1, %v6126_v8, %v2131_v23  ;;  %v2150_v33 = vsel %vm6292_vm7, %v6128_v34, %v2146_v49  ;;  %v6306_v15 = vpop.eup %4140  ;;  %v2049_v34 = vpop.f32.mrf.mxu3 }
 0x8a7   : > { %v2170_v45 = vsel %vm2167_vm0, %v2169_v48, %v2165_v29  ;;  %v2110_v51 = vsel %vm2107_vm9, %v2109_v59, %v2105_v13  ;;  %v2139_v60 = vor.u32 1.1754944e-38, %v2138_v26  ;;  %v2496_v35 = vsub.f32 1.0, %v2495_v37  ;;  %v6315_v20 = vpop.eup %4142 }
 0x8a8   : > { %vm2137_vm6 = vcmp.eq.f32.partialorder %v2136_v36, 8.507059e+37  ;;  %vm2152_vm8 = vcmp.eq.f32.partialorder %v2151_v30, 8.507059e+37  ;;  %v2511_v58 = vsub.f32 1.0, %v2510_v40  ;;  %v2480_v17 = vmul.f32 %v6283_v24, %v6130_v62 }
 0x8a9   : > { %v2126_v8 = vmul.f32 %v2125_v50, %v6101_v25  ;;  %v2140_v57 = vsel %vm2137_vm6, %v2139_v60, %v2135_v32  ;;  %v2155_v39 = vsel %vm2152_vm8, %v2154_v9, %v2150_v33  ;;  %v2525_v27 = vmul.f32 %v6296_v6, %v6218_v12 }
 0x8aa   : > { %v2081_v46 = vmul.f32 %v2080_v28, %v6057_v56  ;;  %v2111_v48 = vmul.f32 %v2110_v51, %v6079_v38  ;;  %v6320_v19 = vmul.f32 %v2140_v57, %v6142_v47  ;;  %4144 = vrcp.f32 %v6304_v11 }
 0x8ab   : > { %v6324_v25 = vpop.f32.mrf.mxu2  ;;  %v2156_v41 = vmul.f32 %v2155_v39, %v6234_v53  ;;  %v2497_v4 = vmul.f32 %v6243_v52, %v2496_v35  ;;  %v2540_v56 = vmul.f32 %v6306_v15, %v6220_v1  ;;  %v6333_v38 = vmul.f32 %v2170_v45, %v2049_v34  ;;  %v6391_v51 = vpop.xlane.xlu1 %2803 }
 0x8ac   : > { %v2481_v47 = vsub.f32 1.0, %v2480_v17  ;;  %4146 = vrcp.f32 %v6313_v31  ;;  %v2512_v29 = vmul.f32 %v6256_v10, %v2511_v58  ;;  %v2526_v0 = vsub.f32 1.0, %v2525_v27 }
 0x8ad   : > { %v2555_v53 = vmul.f32 %v6315_v20, %v6241_v44  ;;  %4148 = vrcp.f32 %v6322_v14  ;;  %v2488_v42 = vand.u32 2147483647, %v6130_v62  ;;  %vm2514_vm11 = vweird.f32 %v6156_v5  ;;  %v6364_v28 = vpop.xlane.xlu0 %2800 }
 0x8ae   : > { %2184 = vrot.lane.b32.xlu0 %v2096_v54, %s4218_s19  ;;  %v6345_v54 = vor.u32 1.1754944e-38, %v2490_v21  ;;  %v2498_v13 = vadd.f32 %v6243_v52, %v2497_v4  ;;  %vm2500_vm13 = vweird.f32 %v6243_v52  ;;  %v2541_v23 = vsub.f32 1.0, %v2540_v56 }
 0x8af   : > { %v2482_v36 = vmul.f32 %v6283_v24, %v2481_v47  ;;  %v2513_v26 = vadd.f32 %v6256_v10, %v2512_v29  ;;  %vm2515_vm14 = vweird.f32 %v6256_v10  ;;  %v2556_v37 = vsub.f32 1.0, %v2555_v53  ;;  %v6408_v39 = vpop.xlane.xlu2 %2797 }
 0x8b0   : > { %v6349_v49 = vpop.eup %4144  ;;  %vm6357_vm15 = vcmp.eq.f32.partialorder %v2518_v55, 8.507059e+37  ;;  %v2527_v30 = vmul.f32 %v6296_v6, %v2526_v0  ;;  %vm2499_vm3 = vweird.f32 %v6132_v63  ;;  %v2503_v40 = vand.u32 2147483647, %v6132_v63  ;;  %vm6387_vm7 = vmor %vm2514_vm11, %vm2515_vm14 }
 0x8b1   : > { %vm2485_vm2 = vweird.f32 %v6283_v24  ;;  %v2521_v50 = vor.u32 1.1754944e-38, %v2520_v2  ;;  %vm2529_vm4 = vweird.f32 %v6218_v12  ;;  %vm6373_vm1 = vmor %vm2499_vm3, %vm2500_vm13  ;;  %vm6379_vm5 = vcmp.eq.f32.partialorder %v2488_v42, 8.507059e+37 }
 0x8b2   : > { %v6366_v59 = vpop.eup %4146  ;;  %v2535_v60 = vand.u32 2147483648, %v6218_v12  ;;  %v2542_v9 = vmul.f32 %v6306_v15, %v2541_v23  ;;  %v2585_v35 = vmul.f32 %v6349_v49, %v6304_v11  ;;  %v2502_v58 = vsel %vm6373_vm1, %v6243_v52, %v2498_v13  ;;  %v6413_v52 = vpop.f32.mrf.mxu3  ;;  %vm6424_vm6 = vmor %vm2484_vm10, %vm2485_vm2 }
 0x8b3   : > { %v6377_v33 = vpop.eup %4148  ;;  %v2483_v5 = vadd.f32 %v6283_v24, %v2482_v36  ;;  %v2517_v17 = vsel %vm6387_vm7, %v6256_v10, %v2513_v26  ;;  %v2506_v57 = vor.u32 1.1754944e-38, %v2505_v18  ;;  %4150 = vrcp.f32 %v6364_v28 }
 0x8b4   : > { %v2528_v34 = vadd.f32 %v6296_v6, %v2527_v30  ;;  %vm2530_vm0 = vweird.f32 %v6296_v6  ;;  %v2557_v27 = vmul.f32 %v6315_v20, %v2556_v37  ;;  %vm2504_vm9 = vcmp.eq.f32.partialorder %v2503_v40, 8.507059e+37 }
 0x8b5   : > { %v2570_v10 = vmul.f32 %v6377_v33, %v6322_v14  ;;  %4152 = vrcp.f32 %v6391_v51  ;;  %v2543_v21 = vadd.f32 %v6306_v15, %v2542_v9  ;;  %vm2545_vm8 = vweird.f32 %v6306_v15  ;;  %vm6436_vm11 = vmor %vm2529_vm4, %vm2530_vm0 }
 0x8b6   : > { %2188 = vrot.lane.b32.xlu0 %v2126_v8, %s4218_s19  ;;  %v6405_v8 = vpop.f32.mrf.mxu2  ;;  %v2586_v4 = vsub.f32 1.0, %v2585_v35  ;;  %4154 = vrcp.f32 %v6408_v39  ;;  %v2487_v56 = vsel %vm6424_vm6, %v6283_v24, %v2483_v5  ;;  %vm6440_vm10 = vcmp.eq.f32.partialorder %v2533_v22, 8.507059e+37 }
 0x8b7   : > { %v2536_v29 = vor.u32 1.1754944e-38, %v2535_v60  ;;  %v2550_v0 = vand.u32 2147483648, %v6220_v1  ;;  %v2532_v12 = vsel %vm6436_vm11, %v6296_v6, %v2528_v34  ;;  %vm2544_vm13 = vweird.f32 %v6220_v1  ;;  %v6501_v63 = vpop.xlane.xlu2 %2806 }
 0x8b8   : > { %v2548_v24 = vand.u32 2147483647, %v6220_v1  ;;  %v2522_v42 = vsel %vm6357_vm15, %v2521_v50, %v2517_v17  ;;  %vm2560_vm14 = vweird.f32 %v6315_v20  ;;  %vm6464_vm3 = vmor %vm2544_vm13, %vm2545_vm8  ;;  %v2571_v2 = vsub.f32 1.0, %v2570_v10 }
 0x8b9   : > { %v6455_v55 = vpop.eup %4150  ;;  %v2547_v13 = vsel %vm6464_vm3, %v6306_v15, %v2543_v21  ;;  %v2492_v36 = vsel %vm6379_vm5, %v6345_v54, %v2487_v56  ;;  %v2537_v26 = vsel %vm6440_vm10, %v2536_v29, %v2532_v12  ;;  %vm2559_vm15 = vweird.f32 %v6241_v44 }
 0x8ba   : > { %v2551_v18 = vor.u32 1.1754944e-38, %v2550_v0  ;;  %v2493_v7 = vmul.f32 %v2492_v36, %v6085_v3  ;;  %vm6486_vm2 = vmor %vm2559_vm15, %vm2560_vm14  ;;  %v2563_v30 = vand.u32 2147483647, %v6241_v44  ;;  %vm2549_vm4 = vcmp.eq.f32.partialorder %v2548_v24, 8.507059e+37 }
 0x8bb   : > { %2182 = vrot.lane.b32.xlu2 %v2081_v46, %s4218_s19  ;;  %2186 = vrot.lane.b32.xlu1 %v2111_v48, %s4218_s19  ;;  %v2907_v46 = vmul.f32 %v6366_v59, %v6313_v31  ;;  %v2507_v48 = vsel %vm2504_vm9, %v2506_v57, %v2502_v58  ;;  %v6473_v23 = vpop.eup %4152  ;;  %v2937_v54 = vmul.f32 %v6455_v55, %v6364_v28  ;;  %vm2590_vm1 = vweird.f32 %v6349_v49 }
 0x8bc   : > { %v2508_v53 = vmul.f32 %v2507_v48, %v6106_v43  ;;  %v2587_v43 = vmul.f32 %v6349_v49, %v2586_v4  ;;  %v6481_v37 = vpop.eup %4154  ;;  %v2523_v50 = vmul.f32 %v2522_v42, %v6149_v16  ;;  %v2552_v45 = vsel %vm2549_vm4, %v2551_v18, %v2547_v13 }
 0x8bd   : > { %v2908_v1 = vsub.f32 1.0, %v2907_v46  ;;  %v2572_v60 = vmul.f32 %v6377_v33, %v2571_v2  ;;  %v2952_v16 = vmul.f32 %v6473_v23, %v6391_v51  ;;  %vm2589_vm5 = vweird.f32 %v6304_v11 }
 0x8be   : > { %2192 = vrot.lane.b32.xlu0 %v2156_v41, %s4218_s19  ;;  %v6493_v40 = vpop.f32.mrf.mxu3  ;;  %v6499_v32 = vpop.f32.mrf.mxu2  ;;  %v2588_v9 = vadd.f32 %v6349_v49, %v2587_v43  ;;  %v2922_v35 = vmul.f32 %v6481_v37, %v6408_v39  ;;  %v2593_v58 = vand.u32 2147483647, %v6304_v11  ;;  %v2938_v5 = vsub.f32 1.0, %v2937_v54  ;;  %vm6523_vm9 = vmor %vm2589_vm5, %vm2590_vm1 }
 0x8bf   : > { %4156 = vrcp.f32 %v6501_v63  ;;  %v2553_v17 = vmul.f32 %v2552_v45, %v6324_v25  ;;  %vm2564_vm7 = vcmp.eq.f32.partialorder %v2563_v30, 8.507059e+37  ;;  %vm2911_vm0 = vweird.f32 %v6313_v31 }
 0x8c0   : > { %v2915_v57 = vand.u32 2147483647, %v6313_v31  ;;  %v2917_v34 = vand.u32 2147483648, %v6313_v31  ;;  %vm2912_vm6 = vweird.f32 %v6366_v59  ;;  %v2592_v25 = vsel %vm6523_vm9, %v6349_v49, %v2588_v9 }
 0x8c1   : > { %v2953_v10 = vsub.f32 1.0, %v2952_v16  ;;  %v2923_v21 = vsub.f32 1.0, %v2922_v35  ;;  %v2573_v4 = vadd.f32 %v6377_v33, %v2572_v60  ;;  %vm2575_vm8 = vweird.f32 %v6377_v33  ;;  %vm6546_vm10 = vmor %vm2911_vm0, %vm2912_vm6 }
 0x8c2   : > { %vm2594_vm11 = vcmp.eq.f32.partialorder %v2593_v58, 8.507059e+37  ;;  %v2939_v56 = vmul.f32 %v6455_v55, %v2938_v5  ;;  %v2538_v47 = vmul.f32 %v2537_v26, %v6254_v61  ;;  %v2580_v29 = vand.u32 2147483648, %v6322_v14 }
 0x8c3   : > { %2190 = vrot.lane.b32.xlu2 %v6320_v19, %s4218_s19  ;;  %2194 = vrot.lane.b32.xlu1 %v6333_v38, %s4218_s19  ;;  %v2558_v19 = vadd.f32 %v6315_v20, %v2557_v27  ;;  %v2565_v38 = vand.u32 2147483648, %v6241_v44  ;;  %v2909_v44 = vmul.f32 %v6366_v59, %v2908_v1  ;;  %vm6550_vm13 = vcmp.eq.f32.partialorder %v2915_v57, 8.507059e+37 }
 0x8c4   : > { %vm2574_vm14 = vweird.f32 %v6322_v14  ;;  %vm2942_vm15 = vweird.f32 %v6455_v55  ;;  %v2581_v1 = vor.u32 1.1754944e-38, %v2580_v29  ;;  %v2947_v43 = vand.u32 2147483648, %v6364_v28 }
 0x8c5   : > { %v2562_v3 = vsel %vm6486_vm2, %v6315_v20, %v2558_v19  ;;  %v2566_v22 = vor.u32 1.1754944e-38, %v2565_v38  ;;  %v2595_v20 = vand.u32 2147483648, %v6304_v11  ;;  %v2578_v11 = vand.u32 2147483647, %v6322_v14  ;;  %v6540_v49 = vpop.eup %4156  ;;  %vm6558_vm3 = vmor %vm2574_vm14, %vm2575_vm8 }
 0x8c6   : > { %2609 = vrot.lane.b32.xlu0 %v2508_v53, %s4217_s14  ;;  %v2910_v48 = vadd.f32 %v6366_v59, %v2909_v44  ;;  %v2888_v61 = vpop.f32.mrf.mxu3  ;;  %v2918_v53 = vor.u32 1.1754944e-38, %v2917_v34  ;;  %v2476_v31 = vpop.f32.mrf.mxu2  ;;  %v2924_v19 = vmul.f32 %v6481_v37, %v2923_v21  ;;  %v2954_v38 = vmul.f32 %v6473_v23, %v2953_v10 }
 0x8c7   : > { %v2567_v46 = vsel %vm2564_vm7, %v2566_v22, %v2562_v3  ;;  %v2596_v41 = vor.u32 1.1754944e-38, %v2595_v20  ;;  %v2577_v14 = vsel %vm6558_vm3, %v6377_v33, %v2573_v4  ;;  %vm2579_vm2 = vcmp.eq.f32.partialorder %v2578_v11, 8.507059e+37 }
 0x8c8   : > { %v2568_v62 = vmul.f32 %v2567_v46, %v6405_v8  ;;  %v2914_v8 = vsel %vm6546_vm10, %v6366_v59, %v2910_v48  ;;  %v2940_v59 = vadd.f32 %v6455_v55, %v2939_v56  ;;  %v2967_v2 = vmul.f32 %v6540_v49, %v6501_v63 }
 0x8c9   : > { %v2597_v0 = vsel %vm2594_vm11, %v2596_v41, %v2592_v25  ;;  %v2919_v13 = vsel %vm6550_vm13, %v2918_v53, %v2914_v8  ;;  %vm2941_vm4 = vweird.f32 %v6364_v28  ;;  %v2945_v36 = vand.u32 2147483647, %v6364_v28 }
 0x8ca   : > { %v2598_v6 = vmul.f32 %v2597_v0, %v2476_v31  ;;  %vm2957_vm1 = vweird.f32 %v6473_v23  ;;  %v2582_v33 = vsel %vm2579_vm2, %v2581_v1, %v2577_v14  ;;  %v2925_v26 = vadd.f32 %v6481_v37, %v2924_v19  ;;  %vm2943_vm7 = vmor %vm2941_vm4, %vm2942_vm15 }
 0x8cb   : > { %2607 = vrot.lane.b32.xlu2 %v2493_v7, %s4217_s14  ;;  %2611 = vrot.lane.b32.xlu1 %v2523_v50, %s4217_s14  ;;  %vm2927_vm5 = vweird.f32 %v6481_v37  ;;  %v2955_v18 = vadd.f32 %v6473_v23, %v2954_v38  ;;  %v2920_v7 = vmul.f32 %v2919_v13, %v6413_v52  ;;  %v2583_v15 = vmul.f32 %v2582_v33, %v6499_v32 }
 0x8cc   : > { %v2932_v30 = vand.u32 2147483648, %v6408_v39  ;;  %v2944_v28 = vsel %vm2943_vm7, %v6455_v55, %v2940_v59  ;;  %v2968_v54 = vsub.f32 1.0, %v2967_v2  ;;  %vm2926_vm0 = vweird.f32 %v6408_v39 }
 0x8cd   : > { %v2930_v50 = vand.u32 2147483647, %v6408_v39  ;;  %v2948_v3 = vor.u32 1.1754944e-38, %v2947_v43  ;;  %vm6589_vm9 = vmor %vm2926_vm0, %vm2927_vm5  ;;  %vm2946_vm6 = vcmp.eq.f32.partialorder %v2945_v36, 8.507059e+37  ;;  %v2962_v45 = vand.u32 2147483648, %v6391_v51 }
 0x8ce   : > { %2615 = vrot.lane.b32.xlu0 %v2553_v17, %s4217_s14  ;;  %v2929_v52 = vsel %vm6589_vm9, %v6481_v37, %v2925_v26  ;;  %vm2956_vm8 = vweird.f32 %v6391_v51  ;;  %v2960_v55 = vand.u32 2147483647, %v6391_v51  ;;  %v2933_v39 = vor.u32 1.1754944e-38, %v2932_v30  ;;  %v2891_v60 = vpop.f32.mrf.mxu3 }
 0x8cf   : > { %v2949_v32 = vsel %vm2946_vm6, %v2948_v3, %v2944_v28  ;;  %vm2958_vm11 = vmor %vm2956_vm8, %vm2957_vm1  ;;  %vm2931_vm10 = vcmp.eq.f32.partialorder %v2930_v50, 8.507059e+37  ;;  %v2969_v37 = vmul.f32 %v6540_v49, %v2968_v54  ;;  %v2963_v20 = vor.u32 1.1754944e-38, %v2962_v45  ;;  %v6616_v11 = vpop.f32.mrf.mxu2 }
 0x8d0   : > { %v2950_v44 = vmul.f32 %v2949_v32, %v2888_v61  ;;  %v2959_v9 = vsel %vm2958_vm11, %v6473_v23, %v2955_v18  ;;  %v2934_v16 = vsel %vm2931_vm10, %v2933_v39, %v2929_v52  ;;  %vm2961_vm13 = vcmp.eq.f32.partialorder %v2960_v55, 8.507059e+37 }
 0x8d1   : > { %v2964_v51 = vsel %vm2961_vm13, %v2963_v20, %v2959_v9  ;;  %v2935_v35 = vmul.f32 %v2934_v16, %v6493_v40  ;;  %v2970_v5 = vadd.f32 %v6540_v49, %v2969_v37  ;;  %vm2972_vm14 = vweird.f32 %v6540_v49 }
 0x8d2   : > { %v2965_v58 = vmul.f32 %v2964_v51, %v2891_v60  ;;  %v2977_v17 = vand.u32 2147483648, %v6501_v63  ;;  %vm2971_vm3 = vweird.f32 %v6501_v63  ;;  %v2975_v23 = vand.u32 2147483647, %v6501_v63 }
 0x8d3   : > { %2613 = vrot.lane.b32.xlu2 %v2538_v47, %s4217_s14  ;;  %2617 = vrot.lane.b32.xlu1 %v2568_v62, %s4217_s14  ;;  %vm2973_vm15 = vmor %vm2971_vm3, %vm2972_vm14 }
 0x8d4   : > { %v2974_v57 = vsel %vm2973_vm15, %v6540_v49, %v2970_v5  ;;  %v2978_v40 = vor.u32 1.1754944e-38, %v2977_v17  ;;  %vm2976_vm2 = vcmp.eq.f32.partialorder %v2975_v23, 8.507059e+37 }
 0x8d6   : > { %2621 = vrot.lane.b32.xlu0 %v2598_v6, %s4217_s14  ;;  %v2894_v34 = vpop.f32.mrf.mxu3  ;;  %v2979_v27 = vsel %vm2976_vm2, %v2978_v40, %v2974_v57 }
 0x8d7   : > { %v2980_v46 = vmul.f32 %v2979_v27, %v2894_v34 }
 0x8db   : > { %2619 = vrot.lane.b32.xlu2 %v2583_v15, %s4217_s14  ;;  %3034 = vrot.lane.b32.xlu1 %v2920_v7, %s4216_s13 }
 0x8de   : > { %3038 = vrot.lane.b32.xlu0 %v2950_v44, %s4216_s13 }
 0x8e3   : > { %3036 = vrot.lane.b32.xlu2 %v2935_v35, %s4216_s13  ;;  %3040 = vrot.lane.b32.xlu1 %v2965_v58, %s4216_s13 }
 0x8eb   : > { %3042 = vrot.lane.b32.xlu2 %v2980_v46, %s4216_s13 }
 0x8f5   : > { %v2810_v25 = vpop.xlane.xlu0 %2809 }
 0x8f6   : > { %4158 = vrcp.f32 %v2810_v25  ;;  %v2992_v56 = vand.u32 2147483648, %v2810_v25  ;;  %v2990_v62 = vand.u32 2147483647, %v2810_v25  ;;  %vm2986_vm1 = vweird.f32 %v2810_v25 }
 0x8f8   : > { %v2993_v12 = vor.u32 1.1754944e-38, %v2992_v56  ;;  %vm2991_vm7 = vcmp.eq.f32.partialorder %v2990_v62, 8.507059e+37 }
 0x8fc   : > { %v4159_v10 = vpop.eup %4158  ;;  %v6618_v63 = vpop.f32.mrf.mxu2 }
 0x8fd   : > { %v2982_v48 = vmul.f32 %v4159_v10, %v2810_v25  ;;  %v2813_v41 = vpop.xlane.xlu1 %2812  ;;  %v3222_v21 = vpop.xlane.xlu0 %3221  ;;  %vm2987_vm4 = vweird.f32 %v4159_v10 }
 0x8fe   : > { %4160 = vrcp.f32 %v2813_v41  ;;  %vm2988_vm5 = vmor %vm2986_vm1, %vm2987_vm4  ;;  %v3342_v53 = vand.u32 2147483647, %v3222_v21  ;;  %v3344_v14 = vand.u32 2147483648, %v3222_v21  ;;  %v3005_v43 = vand.u32 2147483647, %v2813_v41 }
 0x8ff   : > { %v2983_v4 = vsub.f32 1.0, %v2982_v48  ;;  %4162 = vrcp.f32 %v3222_v21  ;;  %v3007_v13 = vand.u32 2147483648, %v2813_v41  ;;  %vm3338_vm0 = vweird.f32 %v3222_v21 }
 0x900   : > { %vm6638_vm8 = vcmp.eq.f32.partialorder %v3342_v53, 8.507059e+37  ;;  %vm3001_vm11 = vweird.f32 %v2813_v41  ;;  %v3345_v15 = vor.u32 1.1754944e-38, %v3344_v14  ;;  %vm6642_vm10 = vcmp.eq.f32.partialorder %v3005_v43, 8.507059e+37 }
 0x901   : > { %v2984_v47 = vmul.f32 %v4159_v10, %v2983_v4  ;;  %v3008_v54 = vor.u32 1.1754944e-38, %v3007_v13 }
 0x903   : > { %v2985_v29 = vadd.f32 %v4159_v10, %v2984_v47 }
 0x904   : > { %v4161_v0 = vpop.eup %4160  ;;  %v2897_v49 = vpop.f32.mrf.mxu3 }
 0x905   : > { %v6620_v24 = vpop.f32.mrf.mxu2  ;;  %v6622_v61 = vpop.eup %4162  ;;  %v2997_v8 = vmul.f32 %v4161_v0, %v2813_v41  ;;  %v2989_v42 = vsel %vm2988_vm5, %v4159_v10, %v2985_v29  ;;  %vm3002_vm9 = vweird.f32 %v4161_v0 }
 0x906   : > { %v6624_v31 = vpop.xlane.xlu1 %3224  ;;  %v6626_v19 = vpop.xlane.xlu0 %3230  ;;  %v3334_v38 = vmul.f32 %v6622_v61, %v3222_v21  ;;  %v2994_v59 = vsel %vm2991_vm7, %v2993_v12, %v2989_v42  ;;  %vm3339_vm6 = vweird.f32 %v6622_v61  ;;  %vm3003_vm14 = vmor %vm3001_vm11, %vm3002_vm9 }
 0x907   : > { %4164 = vrcp.f32 %v6624_v31  ;;  %v6630_v6 = vpop.xlane.xlu2 %2815  ;;  %v2998_v1 = vsub.f32 1.0, %v2997_v8  ;;  %v2995_v2 = vmul.f32 %v2994_v59, %v2897_v49  ;;  %v3359_v33 = vand.u32 2147483648, %v6624_v31  ;;  %vm6655_vm3 = vmor %vm3338_vm0, %vm3339_vm6 }
 0x908   : > { %v3335_v36 = vsub.f32 1.0, %v3334_v38  ;;  %4166 = vrcp.f32 %v6630_v6  ;;  %vm3353_vm13 = vweird.f32 %v6624_v31  ;;  %v3357_v22 = vand.u32 2147483647, %v6624_v31 }
 0x909   : > { %4168 = vrcp.f32 %v6626_v19  ;;  %3044 = vrot.lane.b32.xlu0 %v2995_v2, %s4216_s13  ;;  %v2999_v26 = vmul.f32 %v4161_v0, %v2998_v1  ;;  %v3387_v52 = vand.u32 2147483647, %v6626_v19  ;;  %v6661_v39 = vor.u32 1.1754944e-38, %v3359_v33 }
 0x90a   : > { %v3336_v18 = vmul.f32 %v6622_v61, %v3335_v36  ;;  %v3389_v9 = vand.u32 2147483648, %v6626_v19  ;;  %vm3383_vm15 = vweird.f32 %v6626_v19  ;;  %v3020_v5 = vand.u32 2147483647, %v6630_v6 }
 0x90b   : > { %v3000_v30 = vadd.f32 %v4161_v0, %v2999_v26  ;;  %vm6684_vm2 = vcmp.eq.f32.partialorder %v3387_v52, 8.507059e+37  ;;  %vm3016_vm4 = vweird.f32 %v6630_v6  ;;  %v3022_v46 = vand.u32 2147483648, %v6630_v6 }
 0x90c   : > { %v3337_v3 = vadd.f32 %v6622_v61, %v3336_v18  ;;  %v2900_v44 = vpop.f32.mrf.mxu3  ;;  %vm6691_vm1 = vcmp.eq.f32.partialorder %v3357_v22, 8.507059e+37  ;;  %v3390_v41 = vor.u32 1.1754944e-38, %v3389_v9  ;;  %vm6700_vm7 = vcmp.eq.f32.partialorder %v3020_v5, 8.507059e+37 }
 0x90d   : > { %v6646_v50 = vpop.eup %4164  ;;  %v6651_v45 = vpop.f32.mrf.mxu2  ;;  %v3004_v60 = vsel %vm3003_vm14, %v4161_v0, %v3000_v30 }
 0x90e   : > { %v3349_v55 = vmul.f32 %v6646_v50, %v6624_v31  ;;  %v6664_v37 = vpop.xlane.xlu1 %3233  ;;  %v6666_v16 = vpop.eup %4166  ;;  %v3009_v20 = vsel %vm6642_vm10, %v3008_v54, %v3004_v60  ;;  %v3341_v58 = vsel %vm6655_vm3, %v6622_v61, %v3337_v3  ;;  %vm3354_vm5 = vweird.f32 %v6646_v50 }
 0x90f   : > { %4170 = vrcp.f32 %v6664_v37  ;;  %v6672_v51 = vpop.xlane.xlu2 %3227  ;;  %v6674_v35 = vpop.xlane.xlu0 %3239  ;;  %v3012_v57 = vmul.f32 %v6666_v16, %v6630_v6  ;;  %v3010_v34 = vmul.f32 %v3009_v20, %v2900_v44  ;;  %v3346_v4 = vsel %vm6638_vm8, %v3345_v15, %v3341_v58  ;;  %vm6717_vm6 = vmor %vm3353_vm13, %vm3354_vm5 }
 0x910   : > { %v4169_v17 = vpop.eup %4168  ;;  %v3350_v23 = vsub.f32 1.0, %v3349_v55  ;;  %4172 = vrcp.f32 %v6672_v51  ;;  %v3347_v62 = vmul.f32 %v3346_v4, %v6616_v11  ;;  %vm3017_vm0 = vweird.f32 %v6666_v16 }
 0x911   : > { %v3379_v40 = vmul.f32 %v4169_v17, %v6626_v19  ;;  %v3013_v48 = vsub.f32 1.0, %v3012_v57  ;;  %4174 = vrcp.f32 %v6674_v35  ;;  %3046 = vrot.lane.b32.xlu1 %v3010_v34, %s4216_s13  ;;  %vm3384_vm9 = vweird.f32 %v4169_v17  ;;  %vm3018_vm8 = vmor %vm3016_vm4, %vm3017_vm0 }
 0x912   : > { %v3351_v25 = vmul.f32 %v6646_v50, %v3350_v23  ;;  %v3372_v12 = vand.u32 2147483647, %v6672_v51  ;;  %v3023_v61 = vor.u32 1.1754944e-38, %v3022_v46  ;;  %v3374_v38 = vand.u32 2147483648, %v6672_v51  ;;  %3461 = vrot.lane.b32.xlu0 %v3347_v62, %s4215_s12  ;;  %vm3385_vm10 = vmor %vm3383_vm15, %vm3384_vm9 }
 0x913   : > { %v3380_v21 = vsub.f32 1.0, %v3379_v40  ;;  %v3014_v29 = vmul.f32 %v6666_v16, %v3013_v48  ;;  %v3402_v59 = vand.u32 2147483647, %v6664_v37  ;;  %v3404_v43 = vand.u32 2147483648, %v6664_v37 }
 0x914   : > { %v3352_v47 = vadd.f32 %v6646_v50, %v3351_v25  ;;  %v2903_v30 = vpop.f32.mrf.mxu3  ;;  %vm3398_vm14 = vweird.f32 %v6664_v37  ;;  %vm3368_vm15 = vweird.f32 %v6672_v51  ;;  %v3375_v20 = vor.u32 1.1754944e-38, %v3374_v38 }
 0x915   : > { %v4171_v0 = vpop.eup %4170  ;;  %v3381_v49 = vmul.f32 %v4169_v17, %v3380_v21  ;;  %v6709_v8 = vpop.f32.mrf.mxu2  ;;  %v3015_v14 = vadd.f32 %v6666_v16, %v3014_v29  ;;  %v3434_v62 = vand.u32 2147483648, %v6674_v35 }
 0x916   : > { %v6711_v53 = vpop.eup %4172  ;;  %v3394_v42 = vmul.f32 %v4171_v0, %v6664_v37  ;;  %v6726_v1 = vpop.xlane.xlu1 %3242  ;;  %vm3399_vm11 = vweird.f32 %v4171_v0  ;;  %v3356_v6 = vsel %vm6717_vm6, %v6646_v50, %v3352_v47  ;;  %v3432_v47 = vand.u32 2147483647, %v6674_v35 }
 0x917   : > { %v3382_v2 = vadd.f32 %v4169_v17, %v3381_v49  ;;  %v3364_v31 = vmul.f32 %v6711_v53, %v6672_v51  ;;  %v6735_v13 = vpop.xlane.xlu2 %3236  ;;  %v6737_v36 = vpop.eup %4174  ;;  %v3019_v26 = vsel %vm3018_vm8, %v6666_v16, %v3015_v14  ;;  %4176 = vrcp.f32 %v6726_v1  ;;  %vm3400_vm3 = vmor %vm3398_vm14, %vm3399_vm11 }
 0x918   : > { %v3395_v33 = vsub.f32 1.0, %v3394_v42  ;;  %v3424_v15 = vmul.f32 %v6737_v36, %v6674_v35  ;;  %v3024_v28 = vsel %vm6700_vm7, %v3023_v61, %v3019_v26  ;;  %4178 = vrcp.f32 %v6735_v13 }
 0x919   : > { %v3386_v18 = vsel %vm3385_vm10, %v4169_v17, %v3382_v2  ;;  %v3365_v7 = vsub.f32 1.0, %v3364_v31  ;;  %v3025_v54 = vmul.f32 %v3024_v28, %v2903_v30  ;;  %v3361_v32 = vsel %vm6691_vm1, %v6661_v39, %v3356_v6 }
 0x91a   : > { %v3391_v19 = vsel %vm6684_vm2, %v3390_v41, %v3386_v18  ;;  %v3396_v3 = vmul.f32 %v4171_v0, %v3395_v33  ;;  %v3425_v52 = vsub.f32 1.0, %v3424_v15  ;;  %vm3369_vm13 = vweird.f32 %v6711_v53 }
 0x91b   : > { %v3392_v22 = vmul.f32 %v3391_v19, %v6651_v45  ;;  %v3366_v50 = vmul.f32 %v6711_v53, %v3365_v7  ;;  %3048 = vrot.lane.b32.xlu2 %v3025_v54, %s4216_s13  ;;  %v3362_v44 = vmul.f32 %v3361_v32, %v6618_v63  ;;  %v3405_v45 = vor.u32 1.1754944e-38, %v3404_v43  ;;  %vm6773_vm4 = vmor %vm3368_vm15, %vm3369_vm13 }
 0x91c   : > { %v3397_v55 = vadd.f32 %v4171_v0, %v3396_v3  ;;  %vm3403_vm2 = vcmp.eq.f32.partialorder %v3402_v59, 8.507059e+37  ;;  %v3426_v37 = vmul.f32 %v6737_v36, %v3425_v52  ;;  %vm3373_vm1 = vcmp.eq.f32.partialorder %v3372_v12, 8.507059e+37  ;;  %v3330_v31 = vpop.f32.mrf.mxu3 }
 0x91d   : > { %v3367_v60 = vadd.f32 %v6711_v53, %v3366_v50  ;;  %v6765_v9 = vpop.f32.mrf.mxu2  ;;  %v4177_v16 = vpop.eup %4176  ;;  %3467 = vrot.lane.b32.xlu0 %v3392_v22, %s4215_s12  ;;  %3463 = vrot.lane.b32.xlu1 %v3362_v44, %s4215_s12  ;;  %v3447_v23 = vand.u32 2147483647, %v6726_v1  ;;  %v3449_v57 = vand.u32 2147483648, %v6726_v1  ;;  %vm3428_vm7 = vweird.f32 %v6674_v35 }
 0x91e   : > { %v3401_v39 = vsel %vm3400_vm3, %v4171_v0, %v3397_v55  ;;  %v3439_v51 = vmul.f32 %v4177_v16, %v6726_v1  ;;  %v4179_v17 = vpop.eup %4178  ;;  %vm3444_vm5 = vweird.f32 %v4177_v16  ;;  %v3427_v41 = vadd.f32 %v6737_v36, %v3426_v37 }
 0x91f   : > { %v3406_v58 = vsel %vm3403_vm2, %v3405_v45, %v3401_v39  ;;  %v2183_v5 = vpop.permute.xlu2 %2182  ;;  %v3371_v34 = vsel %vm6773_vm4, %v6711_v53, %v3367_v60  ;;  %v3409_v46 = vmul.f32 %v4179_v17, %v6735_v13  ;;  %vm3429_vm0 = vweird.f32 %v6737_v36 }
 0x920   : > { %2206 = vst.msk [vmem:[%s4643_s18 + $0x8] sm:$0xff] %vm2204_vm12, %v2183_v5  ;;  %v3407_v40 = vmul.f32 %v3406_v58, %v6709_v8  ;;  %v3440_v27 = vsub.f32 1.0, %v3439_v51  ;;  %v2185_v25 = vpop.permute.xlu0 %2184  ;;  %v3376_v10 = vsel %vm3373_vm1, %v3375_v20, %v3371_v34  ;;  %vm6793_vm9 = vmor %vm3428_vm7, %vm3429_vm0  ;;  %v3417_v29 = vand.u32 2147483647, %v6735_v13 }
 0x921   : > { %2207 = vst.msk [vmem:[%s4643_s18 + $0x10] sm:$0xff] %vm2204_vm12, %v2185_v25  ;;  %v3377_v48 = vmul.f32 %v3376_v10, %v6620_v24  ;;  %v3410_v21 = vsub.f32 1.0, %v3409_v46  ;;  %v3419_v24 = vand.u32 2147483648, %v6735_v13  ;;  %vm3443_vm6 = vweird.f32 %v6726_v1 }
 0x922   : > { %v3441_v4 = vmul.f32 %v4177_v16, %v3440_v27  ;;  %v3431_v0 = vsel %vm6793_vm9, %v6737_v36, %v3427_v41  ;;  %vm3414_vm8 = vweird.f32 %v4179_v17  ;;  %v3435_v8 = vor.u32 1.1754944e-38, %v3434_v62  ;;  %vm3445_vm10 = vmor %vm3443_vm6, %vm3444_vm5 }
 0x923   : > { %3465 = vrot.lane.b32.xlu2 %v3377_v48, %s4215_s12  ;;  %v3411_v49 = vmul.f32 %v4179_v17, %v3410_v21  ;;  %vm3413_vm11 = vweird.f32 %v6735_v13  ;;  %v3450_v35 = vor.u32 1.1754944e-38, %v3449_v57  ;;  %vm3433_vm13 = vcmp.eq.f32.partialorder %v3432_v47, 8.507059e+37 }
 0x924   : > { %v3442_v12 = vadd.f32 %v4177_v16, %v3441_v4  ;;  %vm3448_vm14 = vcmp.eq.f32.partialorder %v3447_v23, 8.507059e+37  ;;  %v3436_v42 = vsel %vm3433_vm13, %v3435_v8, %v3431_v0  ;;  %vm3415_vm3 = vmor %vm3413_vm11, %vm3414_vm8  ;;  %v3420_v14 = vor.u32 1.1754944e-38, %v3419_v24 }
 0x925   : > { %v3327_v61 = vpop.f32.mrf.mxu2  ;;  %3469 = vrot.lane.b32.xlu1 %v3407_v40, %s4215_s12  ;;  %v3412_v53 = vadd.f32 %v4179_v17, %v3411_v49  ;;  %vm3418_vm15 = vcmp.eq.f32.partialorder %v3417_v29, 8.507059e+37  ;;  %vm2631_vm2 = vcmask 786048   ;;  %vm3485_vm4 = vcmask 1048448  }
 0x926   : > { %v3446_v11 = vsel %vm3445_vm10, %v4177_v16, %v3442_v12  ;;  %v3437_v1 = vmul.f32 %v3436_v42, %v3327_v61 }
 0x927   : > { %v2191_v38 = vpop.permute.xlu2 %2190  ;;  %v3451_v59 = vsel %vm3448_vm14, %v3450_v35, %v3446_v11  ;;  %v3416_v2 = vsel %vm3415_vm3, %v4179_v17, %v3412_v53 }
 0x928   : > { %2210 = vst.msk [vmem:[%s4643_s18 + $0x28] sm:$0xff] %vm2204_vm12, %v2191_v38  ;;  %v2189_v43 = vpop.permute.xlu0 %2188  ;;  %v3421_v13 = vsel %vm3418_vm15, %v3420_v14, %v3416_v2  ;;  %v3452_v36 = vmul.f32 %v3451_v59, %v3330_v31  ;;  %3473 = vrot.lane.b32.xlu0 %v3437_v1, %s4215_s12 }
 0x929   : > { %2209 = vst.msk [vmem:[%s4643_s18 + $0x20] sm:$0xff] %vm2204_vm12, %v2189_v43  ;;  %v3422_v33 = vmul.f32 %v3421_v13, %v6765_v9 }
 0x92b   : > { %3471 = vrot.lane.b32.xlu2 %v3422_v33, %s4215_s12 }
 0x92d   : > { %3475 = vrot.lane.b32.xlu1 %v3452_v36, %s4215_s12  ;;  %v2187_v26 = vpop.permute.xlu1 %2186 }
 0x92e   : > { %2208 = vst.msk [vmem:[%s4643_s18 + $0x18] sm:$0xff] %vm2204_vm12, %v2187_v26 }
 0x92f   : > { %v2608_v6 = vpop.permute.xlu2 %2607 }
 0x930   : > { %2632 = vst.msk [vmem:[%s4643_s18] sm:$0xff] %vm2631_vm2, %v2608_v6  ;;  %v2193_v18 = vpop.permute.xlu0 %2192 }
 0x931   : > { %2211 = vst.msk [vmem:[%s4643_s18 + $0x30] sm:$0xff] %vm2204_vm12, %v2193_v18 }
 0x935   : > { %v2195_v7 = vpop.permute.xlu1 %2194 }
 0x936   : > { %2212 = vst.msk [vmem:[%s4643_s18 + $0x38] sm:$0xff] %vm2204_vm12, %v2195_v7  ;;  %vm3058_vm12 = vcmask 917248  }
 0x937   : > { %v2614_v15 = vpop.permute.xlu2 %2613 }
 0x938   : > { %2635 = vst.msk [vmem:[%s4643_s18 + $0x18] sm:$0xff] %vm2631_vm2, %v2614_v15  ;;  %v2610_v30 = vpop.permute.xlu0 %2609 }
 0x939   : > { %2633 = vst.msk [vmem:[%s4643_s18 + $0x8] sm:$0xff] %vm2631_vm2, %v2610_v30 }
 0x93d   : > { %v2612_v28 = vpop.permute.xlu1 %2611 }
 0x93e   : > { %2634 = vst.msk [vmem:[%s4643_s18 + $0x10] sm:$0xff] %vm2631_vm2, %v2612_v28 }
 0x93f   : > { %v2620_v19 = vpop.permute.xlu2 %2619 }
 0x940   : > { %2638 = vst.msk [vmem:[%s4643_s18 + $0x30] sm:$0xff] %vm2631_vm2, %v2620_v19  ;;  %v2616_v54 = vpop.permute.xlu0 %2615 }
 0x941   : > { %2636 = vst.msk [vmem:[%s4643_s18 + $0x20] sm:$0xff] %vm2631_vm2, %v2616_v54 }
 0x945   : > { %v2618_v3 = vpop.permute.xlu1 %2617 }
 0x946   : > { %2637 = vst.msk [vmem:[%s4643_s18 + $0x28] sm:$0xff] %vm2631_vm2, %v2618_v3 }
 0x947   : > { %v3037_v22 = vpop.permute.xlu2 %3036 }
 0x948   : > { %3060 = vst.msk [vmem:[%s4643_s18 + $0x8] sm:$0xff] %vm3058_vm12, %v3037_v22  ;;  %v2622_v50 = vpop.permute.xlu0 %2621 }
 0x949   : > { %2639 = vst.msk [vmem:[%s4643_s18 + $0x38] sm:$0xff] %vm2631_vm2, %v2622_v50 }
 0x94d   : > { %v3035_v52 = vpop.permute.xlu1 %3034 }
 0x94e   : > { %3059 = vst.msk [vmem:[%s4643_s18] sm:$0xff] %vm3058_vm12, %v3035_v52 }
 0x94f   : > { %v3043_v32 = vpop.permute.xlu2 %3042 }
 0x950   : > { %3063 = vst.msk [vmem:[%s4643_s18 + $0x20] sm:$0xff] %vm3058_vm12, %v3043_v32  ;;  %v3039_v55 = vpop.permute.xlu0 %3038 }
 0x951   : > { %3061 = vst.msk [vmem:[%s4643_s18 + $0x10] sm:$0xff] %vm3058_vm12, %v3039_v55 }
 0x955   : > { %v3041_v44 = vpop.permute.xlu1 %3040 }
 0x956   : > { %3062 = vst.msk [vmem:[%s4643_s18 + $0x18] sm:$0xff] %vm3058_vm12, %v3041_v44 }
 0x975   : > { %v3049_v60 = vpop.permute.xlu2 %3048 }
 0x976   : > { %3066 = vst.msk [vmem:[%s4643_s18 + $0x38] sm:$0xff] %vm3058_vm12, %v3049_v60 }
 0x97b   : > { %v3045_v45 = vpop.permute.xlu0 %3044 }
 0x97c   : > { %3064 = vst.msk [vmem:[%s4643_s18 + $0x28] sm:$0xff] %vm3058_vm12, %v3045_v45 }
 0x97d   : > { %v3466_v9 = vpop.permute.xlu2 %3465 }
 0x97e   : > { %3488 = vst.msk [vmem:[%s4643_s18 + $0x10] sm:$0xff] %vm3485_vm4, %v3466_v9 }
 0x983   : > { %v3047_v16 = vpop.permute.xlu1 %3046 }
 0x984   : > { %3065 = vst.msk [vmem:[%s4643_s18 + $0x30] sm:$0xff] %vm3058_vm12, %v3047_v16  ;;  %v3462_v37 = vpop.permute.xlu0 %3461 }
 0x985   : > { %v3472_v39 = vpop.permute.xlu2 %3471  ;;  %3486 = vst.msk [vmem:[%s4643_s18] sm:$0xff] %vm3485_vm4, %v3462_v37 }
 0x986   : > { %3491 = vst.msk [vmem:[%s4643_s18 + $0x28] sm:$0xff] %vm3485_vm4, %v3472_v39 }
 0x98f   : > { %v3468_v63 = vpop.permute.xlu0 %3467  ;;  %v3464_v20 = vpop.permute.xlu1 %3463 }
 0x990   : > { %3489 = vst.msk [vmem:[%s4643_s18 + $0x18] sm:$0xff] %vm3485_vm4, %v3468_v63 }
 0x991   : > { %3487 = vst.msk [vmem:[%s4643_s18 + $0x8] sm:$0xff] %vm3485_vm4, %v3464_v20 }
 0x997   : > { %v3470_v58 = vpop.permute.xlu1 %3469 }
 0x998   : > { %3490 = vst.msk [vmem:[%s4643_s18 + $0x20] sm:$0xff] %vm3485_vm4, %v3470_v58 }
 0x99a   : > { %v3474_v51 = vpop.permute.xlu0 %3473 }
 0x99b   : > { %3492 = vst.msk [vmem:[%s4643_s18 + $0x30] sm:$0xff] %vm3485_vm4, %v3474_v51 }
 0x99f   : > { %v3476_v5 = vpop.permute.xlu1 %3475 }
 0x9a0   : > { %3493 = vst.msk [vmem:[%s4643_s18 + $0x38] sm:$0xff] %vm3485_vm4, %v3476_v5 }
 0x9a1 PF: > { %s11_s6 = sadd.s32 1, %s4213_s6  }
 0x9a2   : > { %p8_p4 = scmp.ge.s32.totalorder %s11_s6, 4  }
 0x9a4   :  { %10 = sbr.rel (!%p8_p4) target bundleno = 1 (0x1), region = 54 }

</bundles_post_ra>
